<compile_context>
chip_gen: v7x
topology: tpu7x:2x2x1
jax: 0.10.0
libtpu: 0.0.40
codegen_flags: <defaults>
</compile_context>

<pallas_src>
import jax
import jax.numpy as jnp
from jax import lax
from jax.experimental import pallas as pl
from jax.experimental.pallas import tpu as pltpu

NUM_CHORDS = 24
H_IN, W_IN = 12, 100  # implied by Linear(32 * 3 * 25, 128) after two /2 pools
FLAT_DIM = 3 * 32 * 25  # 2400, flattened in (h, c, w) order (wf1 is permuted to match)


# ----------------------------- Pallas kernels ------------------------------

def _features_kernel(x_ref, w1_ref, b1_ref, w2_ref, b2_ref,
                     t1e_ref, t1o_ref, t2e_ref, t2o_ref, out_ref):
    """conv1+relu+pool1+conv2+relu+pool2 for one image, fully in VMEM/vregs."""
    f32 = jnp.float32
    bf16 = jnp.bfloat16

    xp = x_ref[0]            # (12, 102) f32, W zero-padded by 1 on each side
    w1 = w1_ref[...]         # (16, 9)  f32, [cout, dy*3+dx]
    b1 = b1_ref[...]         # (16, 1)  f32
    b2 = b2_ref[...]         # (32, 1)  f32
    t1e = t1e_ref[...]       # (100, 52) f32  even-column selector (+ conv2 W-pad)
    t1o = t1o_ref[...]       # (100, 52) f32  odd-column selector
    t2e = t2e_ref[...]       # (50, 25)  f32
    t2o = t2o_ref[...]       # (50, 25)  f32

    w1_taps = [w1[:, k:k + 1] for k in range(9)]      # each (16, 1)
    w2_taps = [w2_ref[k] for k in range(9)]           # each (32, 16) bf16

    def conv1_row(y):
        """ReLU(conv1) output row y as (16, 100); VPU broadcast-FMAs (Cin=1)."""
        acc = jnp.zeros((16, 100), f32)
        for dy in range(3):
            r = y + dy - 1
            if r < 0 or r >= 12:
                continue                                   # zero padding row
            for dx in range(3):
                k = dy * 3 + dx
                acc = acc + w1_taps[k] * xp[r:r + 1, dx:dx + 100]
        return jnp.maximum(acc + b1, 0.0)                  # (16, 100)

    # conv1 + ReLU fused with 2x2 maxpool -> 6 W-padded pooled rows (16, 52)
    p1 = []
    for i in range(6):
        rm = jnp.maximum(conv1_row(2 * i), conv1_row(2 * i + 1))   # (16, 100)
        pooled = jnp.maximum(
            jnp.dot(rm, t1e, preferred_element_type=f32),
            jnp.dot(rm, t1o, preferred_element_type=f32))          # (16, 52)
        p1.append(pooled.astype(bf16))

    def conv2_row(y):
        """ReLU(conv2) output row y as (32, 50); 9 per-tap MXU matmuls."""
        acc = jnp.zeros((32, 50), f32)
        for dy in range(3):
            r = y + dy - 1
            if r < 0 or r >= 6:
                continue                                   # zero padding row
            src = p1[r]                                    # (16, 52) bf16
            for dx in range(3):
                k = dy * 3 + dx
                acc = acc + jnp.dot(w2_taps[k], src[:, dx:dx + 50],
                                    preferred_element_type=f32)    # (32, 50)
        return jnp.maximum(acc + b2, 0.0)

    # conv2 + ReLU fused with 2x2 maxpool; emit pooled rows (32, 25)
    for i2 in range(3):
        rm = jnp.maximum(conv2_row(2 * i2), conv2_row(2 * i2 + 1))  # (32, 50)
        out_ref[0, i2, :, :] = jnp.maximum(
            jnp.dot(rm, t2e, preferred_element_type=f32),
            jnp.dot(rm, t2o, preferred_element_type=f32))           # (32, 25)


def _classifier_kernel(a_ref, w1_ref, b1_ref, w2_ref, b2_ref, o_ref):
    """fc1 (2400->128) + ReLU + fc2 (128->128 padded) fused; bf16 MXU, f32 acc."""
    f32 = jnp.float32
    bf16 = jnp.bfloat16
    h = jnp.dot(a_ref[...].astype(bf16), w1_ref[...],
                preferred_element_type=f32) + b1_ref[...]
    h = jnp.maximum(h, 0.0)
    # TODO(synk): nn.Dropout(0.5) is identity at inference; training-mode stochastic dropout not implemented.
    o_ref[...] = jnp.dot(h.astype(bf16), w2_ref[...],
                         preferred_element_type=f32) + b2_ref[...]


# -------------------------- parameter preparation ---------------------------

def init_params(key):
    ks = jax.random.split(key, 8)
    s = 0.05
    return {
        "w1":  jax.random.normal(ks[0], (16, 1, 3, 3), jnp.float32) * s,
        "b1":  jax.random.normal(ks[1], (16,), jnp.float32) * s,
        "w2":  jax.random.normal(ks[2], (32, 16, 3, 3), jnp.float32) * s,
        "b2":  jax.random.normal(ks[3], (32,), jnp.float32) * s,
        "wf1": jax.random.normal(ks[4], (32 * 3 * 25, 128), jnp.float32) * s,
        "bf1": jax.random.normal(ks[5], (128,), jnp.float32) * s,
        "wf2": jax.random.normal(ks[6], (128, NUM_CHORDS), jnp.float32) * s,
        "bf2": jax.random.normal(ks[7], (NUM_CHORDS,), jnp.float32) * s,
    }


def prepare_params(params):
    """One-time weight re-layouts (done outside the per-call forward)."""
    f32, bf16 = jnp.float32, jnp.bfloat16
    prep = {}
    # conv1 taps: (16, 9) with column index dy*3+dx (kept f32 for the VPU path)
    prep["w1r"] = params["w1"].reshape(16, 9).astype(f32)
    prep["b1c"] = params["b1"].reshape(16, 1).astype(f32)
    # conv2 taps: (9, 32, 16) = [dy*3+dx, cout, cin] in bf16 for the MXU
    prep["w2t"] = jnp.transpose(params["w2"], (2, 3, 0, 1)).reshape(9, 32, 16).astype(bf16)
    prep["b2c"] = params["b2"].reshape(32, 1).astype(f32)
    # fc1: fold the torch NCHW flatten order (c,h,w) into our (h,c,w) order
    prep["wf1"] = (params["wf1"].reshape(32, 3, 25, 128)
                   .transpose(1, 0, 2, 3).reshape(FLAT_DIM, 128).astype(bf16))
    prep["bf1"] = params["bf1"].reshape(1, 128).astype(f32)
    # fc2: pad output width to 128 lanes (zero columns), slice to 24 outside
    wf2p = jnp.zeros((128, 128), f32).at[:, :NUM_CHORDS].set(params["wf2"])
    prep["wf2"] = wf2p.astype(bf16)
    prep["bf2"] = jnp.zeros((1, 128), f32).at[0, :NUM_CHORDS].set(params["bf2"])

    # Exact 0/1 selection matrices for 2x2 W-pooling.  t1* also embed the
    # 1-column zero padding conv2's SAME convolution needs (hence width 52).
    x1 = jnp.arange(100)[:, None]
    j1 = jnp.arange(50)[None, :]
    t1e_core = (x1 == 2 * j1).astype(f32)
    t1o_core = (x1 == 2 * j1 + 1).astype(f32)
    zcol = jnp.zeros((100, 1), f32)
    prep["t1e"] = jnp.concatenate([zcol, t1e_core, zcol], axis=1)   # (100, 52)
    prep["t1o"] = jnp.concatenate([zcol, t1o_core, zcol], axis=1)   # (100, 52)
    x2 = jnp.arange(50)[:, None]
    j2 = jnp.arange(25)[None, :]
    prep["t2e"] = (x2 == 2 * j2).astype(f32)                         # (50, 25)
    prep["t2o"] = (x2 == 2 * j2 + 1).astype(f32)                     # (50, 25)
    return prep


# --------------------------------- forward ----------------------------------

@jax.jit
def chord_classifier_forward(prep, x):
    """x: (B, 12, 100) float32 -> logits (B, 24)."""
    bsz, h_in, w_in = x.shape
    assert (h_in, w_in) == (H_IN, W_IN)

    # Tiny W-pad of the raw input so all conv shifts are plain static slices.
    xpad = jnp.pad(x.astype(jnp.float32), ((0, 0), (0, 0), (1, 1)))  # (B,12,102)

    feat = pl.pallas_call(
        _features_kernel,
        out_shape=jax.ShapeDtypeStruct((bsz, 3, 32, 25), jnp.float32),
        grid=(bsz,),
        in_specs=[
            pl.BlockSpec((1, H_IN, W_IN + 2), lambda b: (b, 0, 0)),
            pl.BlockSpec((16, 9), lambda b: (0, 0)),
            pl.BlockSpec((16, 1), lambda b: (0, 0)),
            pl.BlockSpec((9, 32, 16), lambda b: (0, 0, 0)),
            pl.BlockSpec((32, 1), lambda b: (0, 0)),
            pl.BlockSpec((100, 52), lambda b: (0, 0)),
            pl.BlockSpec((100, 52), lambda b: (0, 0)),
            pl.BlockSpec((50, 25), lambda b: (0, 0)),
            pl.BlockSpec((50, 25), lambda b: (0, 0)),
        ],
        out_specs=pl.BlockSpec((1, 3, 32, 25), lambda b: (b, 0, 0, 0)),
        compiler_params=pltpu.CompilerParams(
            dimension_semantics=("parallel",)),
    )(xpad, prep["w1r"], prep["b1c"], prep["w2t"], prep["b2c"],
      prep["t1e"], prep["t1o"], prep["t2e"], prep["t2o"])

    # Free (bitcast) reshape: (B, 3, 32, 25) -> (B, 2400) in (h, c, w) order,
    # which is exactly the row order prep["wf1"] was permuted to.
    flat = feat.reshape(bsz, FLAT_DIM)

    logits_pad = pl.pallas_call(
        _classifier_kernel,
        out_shape=jax.ShapeDtypeStruct((bsz, 128), jnp.float32),
        grid=(1,),
        in_specs=[
            pl.BlockSpec((bsz, FLAT_DIM), lambda i: (0, 0)),
            pl.BlockSpec((FLAT_DIM, 128), lambda i: (0, 0)),
            pl.BlockSpec((1, 128), lambda i: (0, 0)),
            pl.BlockSpec((128, 128), lambda i: (0, 0)),
            pl.BlockSpec((1, 128), lambda i: (0, 0)),
        ],
        out_specs=pl.BlockSpec((bsz, 128), lambda i: (0, 0)),
        compiler_params=pltpu.CompilerParams(
            dimension_semantics=("arbitrary",)),
    )(flat, prep["wf1"], prep["bf1"], prep["wf2"], prep["bf2"])

    return logits_pad[:, :NUM_CHORDS]


# --------------------------- pure-JAX reference ----------------------------

def reference_forward(params, x):
    xb = x[:, None, :, :].astype(jnp.float32)  # NCHW

    def conv(x_nchw, w, b):
        y = lax.conv_general_dilated(
            x_nchw, w, (1, 1), "SAME",
            dimension_numbers=("NCHW", "OIHW", "NCHW"))
        return jnp.maximum(y + b[None, :, None, None], 0.0)

    def pool(x_nchw):
        return lax.reduce_window(x_nchw, -jnp.inf, lax.max,
                                 (1, 1, 2, 2), (1, 1, 2, 2), "VALID")

    h = pool(conv(xb, params["w1"], params["b1"]))
    h = pool(conv(h, params["w2"], params["b2"]))
    h = h.reshape(x.shape[0], -1)
    h = jnp.maximum(h @ params["wf1"] + params["bf1"], 0.0)
    return h @ params["wf2"] + params["bf2"]


# ----------------------------------- main -----------------------------------

if __name__ == "__main__":
    key = jax.random.PRNGKey(0)
    pkey, xkey = jax.random.split(key)
    params = init_params(pkey)
    prep = prepare_params(params)

    x = jax.random.normal(xkey, (2, H_IN, W_IN), jnp.float32)  # (B=2, 12, 100)

    out = chord_classifier_forward(prep, x)
    out = jax.block_until_ready(out)

    assert out.shape == (2, NUM_CHORDS), out.shape
    ref = reference_forward(params, x)
    err = float(jnp.max(jnp.abs(out - ref)))
    assert jnp.allclose(out, ref, atol=2e-2, rtol=2e-2), f"max abs err {err}"

    print("KERNEL_OK")
</pallas_src>

<mosaic_0001>
module attributes {stable_mosaic.version = 11 : i64} {
  func.func @_classifier_kernel(%arg0: i32, %arg1: memref<2x2400xf32, #tpu.memory_space<vmem>>, %arg2: memref<2400x128xbf16, #tpu.memory_space<vmem>>, %arg3: memref<1x128xf32, #tpu.memory_space<vmem>>, %arg4: memref<128x128xbf16, #tpu.memory_space<vmem>>, %arg5: memref<1x128xf32, #tpu.memory_space<vmem>>, %arg6: memref<2x128xf32, #tpu.memory_space<vmem>>) attributes {dimension_semantics = [#tpu.dimension_semantics<arbitrary>], iteration_bounds = array<i64: 1>, scalar_prefetch = 0 : i64, scratch_operands = 0 : i64, tpu.core_type = #tpu.core_type<tc>, window_params = [{pipeline_mode = #tpu.pipeline_mode<synchronous>, transform_indices = @transform_0, window_bounds = array<i64: 2, 2400>}, {pipeline_mode = #tpu.pipeline_mode<synchronous>, transform_indices = @transform_1, window_bounds = array<i64: 2400, 128>}, {pipeline_mode = #tpu.pipeline_mode<synchronous>, transform_indices = @transform_2, window_bounds = array<i64: 1, 128>}, {pipeline_mode = #tpu.pipeline_mode<synchronous>, transform_indices = @transform_3, window_bounds = array<i64: 128, 128>}, {pipeline_mode = #tpu.pipeline_mode<synchronous>, transform_indices = @transform_4, window_bounds = array<i64: 1, 128>}, {pipeline_mode = #tpu.pipeline_mode<synchronous>, transform_indices = @transform_5, window_bounds = array<i64: 2, 128>}]} {
    %c0 = arith.constant 0 : index
    %c0_0 = arith.constant 0 : index
    %0 = vector.load %arg1[%c0, %c0_0] : memref<2x2400xf32, #tpu.memory_space<vmem>>, vector<2x2400xf32>
    %1 = arith.truncf %0 : vector<2x2400xf32> to vector<2x2400xbf16>
    %c0_1 = arith.constant 0 : index
    %c0_2 = arith.constant 0 : index
    %2 = vector.load %arg2[%c0_1, %c0_2] : memref<2400x128xbf16, #tpu.memory_space<vmem>>, vector<2400x128xbf16>
    %cst = arith.constant dense<0.000000e+00> : vector<2x128xf32>
    %3 = tpu.matmul %1, %2, %cst {dimension_numbers = #tpu.dot_dimension_numbers<[1], [0], [0], [1], [0, 0, 1, 1], [], []>} : vector<2x2400xbf16>, vector<2400x128xbf16>, vector<2x128xf32> -> vector<2x128xf32>
    %c0_3 = arith.constant 0 : index
    %c0_4 = arith.constant 0 : index
    %4 = vector.load %arg3[%c0_3, %c0_4] : memref<1x128xf32, #tpu.memory_space<vmem>>, vector<1x128xf32>
    %5 = vector.broadcast %4 : vector<1x128xf32> to vector<2x128xf32>
    %6 = arith.addf %3, %5 : vector<2x128xf32>
    %cst_5 = arith.constant 0.000000e+00 : f32
    %7 = vector.broadcast %cst_5 : f32 to vector<2x128xf32>
    %8 = arith.maximumf %6, %7 : vector<2x128xf32>
    %9 = arith.truncf %8 : vector<2x128xf32> to vector<2x128xbf16>
    %c0_6 = arith.constant 0 : index
    %c0_7 = arith.constant 0 : index
    %10 = vector.load %arg4[%c0_6, %c0_7] : memref<128x128xbf16, #tpu.memory_space<vmem>>, vector<128x128xbf16>
    %cst_8 = arith.constant dense<0.000000e+00> : vector<2x128xf32>
    %11 = tpu.matmul %9, %10, %cst_8 {dimension_numbers = #tpu.dot_dimension_numbers<[1], [0], [0], [1], [0, 0, 1, 1], [], []>} : vector<2x128xbf16>, vector<128x128xbf16>, vector<2x128xf32> -> vector<2x128xf32>
    %c0_9 = arith.constant 0 : index
    %c0_10 = arith.constant 0 : index
    %12 = vector.load %arg5[%c0_9, %c0_10] : memref<1x128xf32, #tpu.memory_space<vmem>>, vector<1x128xf32>
    %13 = vector.broadcast %12 : vector<1x128xf32> to vector<2x128xf32>
    %14 = arith.addf %11, %13 : vector<2x128xf32>
    %c0_11 = arith.constant 0 : index
    %c0_12 = arith.constant 0 : index
    %15 = vector.load %arg6[%c0_11, %c0_12] : memref<2x128xf32, #tpu.memory_space<vmem>>, vector<2x128xf32>
    tpu.vector_store %arg6[%c0_11, %c0_12], %14 {strides = array<i32>} : memref<2x128xf32, #tpu.memory_space<vmem>>, vector<2x128xf32>,
    return
  }
  func.func @transform_0(%arg0: i32) -> (i32, i32) {
    %c0_i32 = arith.constant 0 : i32
    %c0_i32_0 = arith.constant 0 : i32
    %c0_i32_1 = arith.constant 0 : i32
    return %c0_i32, %c0_i32_0 : i32, i32
  }
  func.func @transform_1(%arg0: i32) -> (i32, i32) {
    %c0_i32 = arith.constant 0 : i32
    %c0_i32_0 = arith.constant 0 : i32
    %c0_i32_1 = arith.constant 0 : i32
    return %c0_i32, %c0_i32_0 : i32, i32
  }
  func.func @transform_2(%arg0: i32) -> (i32, i32) {
    %c0_i32 = arith.constant 0 : i32
    %c0_i32_0 = arith.constant 0 : i32
    %c0_i32_1 = arith.constant 0 : i32
    return %c0_i32, %c0_i32_0 : i32, i32
  }
  func.func @transform_3(%arg0: i32) -> (i32, i32) {
    %c0_i32 = arith.constant 0 : i32
    %c0_i32_0 = arith.constant 0 : i32
    %c0_i32_1 = arith.constant 0 : i32
    return %c0_i32, %c0_i32_0 : i32, i32
  }
  func.func @transform_4(%arg0: i32) -> (i32, i32) {
    %c0_i32 = arith.constant 0 : i32
    %c0_i32_0 = arith.constant 0 : i32
    %c0_i32_1 = arith.constant 0 : i32
    return %c0_i32, %c0_i32_0 : i32, i32
  }
  func.func @transform_5(%arg0: i32) -> (i32, i32) {
    %c0_i32 = arith.constant 0 : i32
    %c0_i32_0 = arith.constant 0 : i32
    %c0_i32_1 = arith.constant 0 : i32
    return %c0_i32, %c0_i32_0 : i32, i32
  }
}

module attributes {stable_mosaic.version = 11 : i64} {
  func.func @_features_kernel(%arg0: i32, %arg1: memref<1x12x102xf32, #tpu.memory_space<vmem>>, %arg2: memref<16x9xf32, #tpu.memory_space<vmem>>, %arg3: memref<16x1xf32, #tpu.memory_space<vmem>>, %arg4: memref<9x32x16xbf16, #tpu.memory_space<vmem>>, %arg5: memref<32x1xf32, #tpu.memory_space<vmem>>, %arg6: memref<100x52xf32, #tpu.memory_space<vmem>>, %arg7: memref<100x52xf32, #tpu.memory_space<vmem>>, %arg8: memref<50x25xf32, #tpu.memory_space<vmem>>, %arg9: memref<50x25xf32, #tpu.memory_space<vmem>>, %arg10: memref<1x3x32x25xf32, #tpu.memory_space<vmem>>) attributes {dimension_semantics = [#tpu.dimension_semantics<parallel>], iteration_bounds = array<i64: 2>, scalar_prefetch = 0 : i64, scratch_operands = 0 : i64, tpu.core_type = #tpu.core_type<tc>, window_params = [{transform_indices = @transform_0, window_bounds = array<i64: 1, 12, 102>}, {pipeline_mode = #tpu.pipeline_mode<synchronous>, transform_indices = @transform_1, window_bounds = array<i64: 16, 9>}, {pipeline_mode = #tpu.pipeline_mode<synchronous>, transform_indices = @transform_2, window_bounds = array<i64: 16, 1>}, {pipeline_mode = #tpu.pipeline_mode<synchronous>, transform_indices = @transform_3, window_bounds = array<i64: 9, 32, 16>}, {pipeline_mode = #tpu.pipeline_mode<synchronous>, transform_indices = @transform_4, window_bounds = array<i64: 32, 1>}, {pipeline_mode = #tpu.pipeline_mode<synchronous>, transform_indices = @transform_5, window_bounds = array<i64: 100, 52>}, {pipeline_mode = #tpu.pipeline_mode<synchronous>, transform_indices = @transform_6, window_bounds = array<i64: 100, 52>}, {pipeline_mode = #tpu.pipeline_mode<synchronous>, transform_indices = @transform_7, window_bounds = array<i64: 50, 25>}, {pipeline_mode = #tpu.pipeline_mode<synchronous>, transform_indices = @transform_8, window_bounds = array<i64: 50, 25>}, {transform_indices = @transform_9, window_bounds = array<i64: 1, 3, 32, 25>}]} {
    %c0 = arith.constant 0 : index
    %c0_0 = arith.constant 0 : index
    %c0_1 = arith.constant 0 : index
    %0 = vector.load %arg1[%c0, %c0_0, %c0_1] : memref<1x12x102xf32, #tpu.memory_space<vmem>>, vector<1x12x102xf32>
    %1 = vector.shape_cast %0 : vector<1x12x102xf32> to vector<12x102xf32>
    %c0_2 = arith.constant 0 : index
    %c0_3 = arith.constant 0 : index
    %2 = vector.load %arg2[%c0_2, %c0_3] : memref<16x9xf32, #tpu.memory_space<vmem>>, vector<16x9xf32>
    %c0_4 = arith.constant 0 : index
    %c0_5 = arith.constant 0 : index
    %3 = vector.load %arg3[%c0_4, %c0_5] : memref<16x1xf32, #tpu.memory_space<vmem>>, vector<16x1xf32>
    %c0_6 = arith.constant 0 : index
    %c0_7 = arith.constant 0 : index
    %4 = vector.load %arg5[%c0_6, %c0_7] : memref<32x1xf32, #tpu.memory_space<vmem>>, vector<32x1xf32>
    %c0_8 = arith.constant 0 : index
    %c0_9 = arith.constant 0 : index
    %5 = vector.load %arg6[%c0_8, %c0_9] : memref<100x52xf32, #tpu.memory_space<vmem>>, vector<100x52xf32>
    %c0_10 = arith.constant 0 : index
    %c0_11 = arith.constant 0 : index
    %6 = vector.load %arg7[%c0_10, %c0_11] : memref<100x52xf32, #tpu.memory_space<vmem>>, vector<100x52xf32>
    %c0_12 = arith.constant 0 : index
    %c0_13 = arith.constant 0 : index
    %7 = vector.load %arg8[%c0_12, %c0_13] : memref<50x25xf32, #tpu.memory_space<vmem>>, vector<50x25xf32>
    %c0_14 = arith.constant 0 : index
    %c0_15 = arith.constant 0 : index
    %8 = vector.load %arg9[%c0_14, %c0_15] : memref<50x25xf32, #tpu.memory_space<vmem>>, vector<50x25xf32>
    %9 = vector.extract_strided_slice %2 {offsets = [0, 0], sizes = [16, 1], strides = [1, 1]} : vector<16x9xf32> to vector<16x1xf32>
    %10 = vector.extract_strided_slice %2 {offsets = [0, 1], sizes = [16, 1], strides = [1, 1]} : vector<16x9xf32> to vector<16x1xf32>
    %11 = vector.extract_strided_slice %2 {offsets = [0, 2], sizes = [16, 1], strides = [1, 1]} : vector<16x9xf32> to vector<16x1xf32>
    %12 = vector.extract_strided_slice %2 {offsets = [0, 3], sizes = [16, 1], strides = [1, 1]} : vector<16x9xf32> to vector<16x1xf32>
    %13 = vector.extract_strided_slice %2 {offsets = [0, 4], sizes = [16, 1], strides = [1, 1]} : vector<16x9xf32> to vector<16x1xf32>
    %14 = vector.extract_strided_slice %2 {offsets = [0, 5], sizes = [16, 1], strides = [1, 1]} : vector<16x9xf32> to vector<16x1xf32>
    %15 = vector.extract_strided_slice %2 {offsets = [0, 6], sizes = [16, 1], strides = [1, 1]} : vector<16x9xf32> to vector<16x1xf32>
    %16 = vector.extract_strided_slice %2 {offsets = [0, 7], sizes = [16, 1], strides = [1, 1]} : vector<16x9xf32> to vector<16x1xf32>
    %17 = vector.extract_strided_slice %2 {offsets = [0, 8], sizes = [16, 1], strides = [1, 1]} : vector<16x9xf32> to vector<16x1xf32>
    %c0_16 = arith.constant 0 : index
    %c0_17 = arith.constant 0 : index
    %c0_18 = arith.constant 0 : index
    %18 = vector.load %arg4[%c0_16, %c0_17, %c0_18] : memref<9x32x16xbf16, #tpu.memory_space<vmem>>, vector<1x32x16xbf16>
    %19 = vector.shape_cast %18 : vector<1x32x16xbf16> to vector<32x16xbf16>
    %c1 = arith.constant 1 : index
    %c0_19 = arith.constant 0 : index
    %c0_20 = arith.constant 0 : index
    %20 = vector.load %arg4[%c1, %c0_19, %c0_20] : memref<9x32x16xbf16, #tpu.memory_space<vmem>>, vector<1x32x16xbf16>
    %21 = vector.shape_cast %20 : vector<1x32x16xbf16> to vector<32x16xbf16>
    %c2 = arith.constant 2 : index
    %c0_21 = arith.constant 0 : index
    %c0_22 = arith.constant 0 : index
    %22 = vector.load %arg4[%c2, %c0_21, %c0_22] : memref<9x32x16xbf16, #tpu.memory_space<vmem>>, vector<1x32x16xbf16>
    %23 = vector.shape_cast %22 : vector<1x32x16xbf16> to vector<32x16xbf16>
    %c3 = arith.constant 3 : index
    %c0_23 = arith.constant 0 : index
    %c0_24 = arith.constant 0 : index
    %24 = vector.load %arg4[%c3, %c0_23, %c0_24] : memref<9x32x16xbf16, #tpu.memory_space<vmem>>, vector<1x32x16xbf16>
    %25 = vector.shape_cast %24 : vector<1x32x16xbf16> to vector<32x16xbf16>
    %c4 = arith.constant 4 : index
    %c0_25 = arith.constant 0 : index
    %c0_26 = arith.constant 0 : index
    %26 = vector.load %arg4[%c4, %c0_25, %c0_26] : memref<9x32x16xbf16, #tpu.memory_space<vmem>>, vector<1x32x16xbf16>
    %27 = vector.shape_cast %26 : vector<1x32x16xbf16> to vector<32x16xbf16>
    %c5 = arith.constant 5 : index
    %c0_27 = arith.constant 0 : index
    %c0_28 = arith.constant 0 : index
    %28 = vector.load %arg4[%c5, %c0_27, %c0_28] : memref<9x32x16xbf16, #tpu.memory_space<vmem>>, vector<1x32x16xbf16>
    %29 = vector.shape_cast %28 : vector<1x32x16xbf16> to vector<32x16xbf16>
    %c6 = arith.constant 6 : index
    %c0_29 = arith.constant 0 : index
    %c0_30 = arith.constant 0 : index
    %30 = vector.load %arg4[%c6, %c0_29, %c0_30] : memref<9x32x16xbf16, #tpu.memory_space<vmem>>, vector<1x32x16xbf16>
    %31 = vector.shape_cast %30 : vector<1x32x16xbf16> to vector<32x16xbf16>
    %c7 = arith.constant 7 : index
    %c0_31 = arith.constant 0 : index
    %c0_32 = arith.constant 0 : index
    %32 = vector.load %arg4[%c7, %c0_31, %c0_32] : memref<9x32x16xbf16, #tpu.memory_space<vmem>>, vector<1x32x16xbf16>
    %33 = vector.shape_cast %32 : vector<1x32x16xbf16> to vector<32x16xbf16>
    %c8 = arith.constant 8 : index
    %c0_33 = arith.constant 0 : index
    %c0_34 = arith.constant 0 : index
    %34 = vector.load %arg4[%c8, %c0_33, %c0_34] : memref<9x32x16xbf16, #tpu.memory_space<vmem>>, vector<1x32x16xbf16>
    %35 = vector.shape_cast %34 : vector<1x32x16xbf16> to vector<32x16xbf16>
    %cst = arith.constant 0.000000e+00 : f32
    %36 = vector.broadcast %cst : f32 to vector<16x100xf32>
    %37 = vector.extract_strided_slice %1 {offsets = [0, 0], sizes = [1, 100], strides = [1, 1]} : vector<12x102xf32> to vector<1x100xf32>
    %38 = vector.broadcast %12 : vector<16x1xf32> to vector<16x100xf32>
    %39 = vector.broadcast %37 : vector<1x100xf32> to vector<16x100xf32>
    %40 = arith.mulf %38, %39 : vector<16x100xf32>
    %41 = arith.addf %36, %40 : vector<16x100xf32>
    %42 = vector.extract_strided_slice %1 {offsets = [0, 1], sizes = [1, 100], strides = [1, 1]} : vector<12x102xf32> to vector<1x100xf32>
    %43 = vector.broadcast %13 : vector<16x1xf32> to vector<16x100xf32>
    %44 = vector.broadcast %42 : vector<1x100xf32> to vector<16x100xf32>
    %45 = arith.mulf %43, %44 : vector<16x100xf32>
    %46 = arith.addf %41, %45 : vector<16x100xf32>
    %47 = vector.extract_strided_slice %1 {offsets = [0, 2], sizes = [1, 100], strides = [1, 1]} : vector<12x102xf32> to vector<1x100xf32>
    %48 = vector.broadcast %14 : vector<16x1xf32> to vector<16x100xf32>
    %49 = vector.broadcast %47 : vector<1x100xf32> to vector<16x100xf32>
    %50 = arith.mulf %48, %49 : vector<16x100xf32>
    %51 = arith.addf %46, %50 : vector<16x100xf32>
    %52 = vector.extract_strided_slice %1 {offsets = [1, 0], sizes = [1, 100], strides = [1, 1]} : vector<12x102xf32> to vector<1x100xf32>
    %53 = vector.broadcast %15 : vector<16x1xf32> to vector<16x100xf32>
    %54 = vector.broadcast %52 : vector<1x100xf32> to vector<16x100xf32>
    %55 = arith.mulf %53, %54 : vector<16x100xf32>
    %56 = arith.addf %51, %55 : vector<16x100xf32>
    %57 = vector.extract_strided_slice %1 {offsets = [1, 1], sizes = [1, 100], strides = [1, 1]} : vector<12x102xf32> to vector<1x100xf32>
    %58 = vector.broadcast %16 : vector<16x1xf32> to vector<16x100xf32>
    %59 = vector.broadcast %57 : vector<1x100xf32> to vector<16x100xf32>
    %60 = arith.mulf %58, %59 : vector<16x100xf32>
    %61 = arith.addf %56, %60 : vector<16x100xf32>
    %62 = vector.extract_strided_slice %1 {offsets = [1, 2], sizes = [1, 100], strides = [1, 1]} : vector<12x102xf32> to vector<1x100xf32>
    %63 = vector.broadcast %17 : vector<16x1xf32> to vector<16x100xf32>
    %64 = vector.broadcast %62 : vector<1x100xf32> to vector<16x100xf32>
    %65 = arith.mulf %63, %64 : vector<16x100xf32>
    %66 = arith.addf %61, %65 : vector<16x100xf32>
    %67 = vector.broadcast %3 : vector<16x1xf32> to vector<16x100xf32>
    %68 = arith.addf %66, %67 : vector<16x100xf32>
    %cst_35 = arith.constant 0.000000e+00 : f32
    %69 = vector.broadcast %cst_35 : f32 to vector<16x100xf32>
    %70 = arith.maximumf %68, %69 : vector<16x100xf32>
    %cst_36 = arith.constant 0.000000e+00 : f32
    %71 = vector.broadcast %cst_36 : f32 to vector<16x100xf32>
    %72 = vector.extract_strided_slice %1 {offsets = [0, 0], sizes = [1, 100], strides = [1, 1]} : vector<12x102xf32> to vector<1x100xf32>
    %73 = vector.broadcast %9 : vector<16x1xf32> to vector<16x100xf32>
    %74 = vector.broadcast %72 : vector<1x100xf32> to vector<16x100xf32>
    %75 = arith.mulf %73, %74 : vector<16x100xf32>
    %76 = arith.addf %71, %75 : vector<16x100xf32>
    %77 = vector.extract_strided_slice %1 {offsets = [0, 1], sizes = [1, 100], strides = [1, 1]} : vector<12x102xf32> to vector<1x100xf32>
    %78 = vector.broadcast %10 : vector<16x1xf32> to vector<16x100xf32>
    %79 = vector.broadcast %77 : vector<1x100xf32> to vector<16x100xf32>
    %80 = arith.mulf %78, %79 : vector<16x100xf32>
    %81 = arith.addf %76, %80 : vector<16x100xf32>
    %82 = vector.extract_strided_slice %1 {offsets = [0, 2], sizes = [1, 100], strides = [1, 1]} : vector<12x102xf32> to vector<1x100xf32>
    %83 = vector.broadcast %11 : vector<16x1xf32> to vector<16x100xf32>
    %84 = vector.broadcast %82 : vector<1x100xf32> to vector<16x100xf32>
    %85 = arith.mulf %83, %84 : vector<16x100xf32>
    %86 = arith.addf %81, %85 : vector<16x100xf32>
    %87 = vector.extract_strided_slice %1 {offsets = [1, 0], sizes = [1, 100], strides = [1, 1]} : vector<12x102xf32> to vector<1x100xf32>
    %88 = vector.broadcast %12 : vector<16x1xf32> to vector<16x100xf32>
    %89 = vector.broadcast %87 : vector<1x100xf32> to vector<16x100xf32>
    %90 = arith.mulf %88, %89 : vector<16x100xf32>
    %91 = arith.addf %86, %90 : vector<16x100xf32>
    %92 = vector.extract_strided_slice %1 {offsets = [1, 1], sizes = [1, 100], strides = [1, 1]} : vector<12x102xf32> to vector<1x100xf32>
    %93 = vector.broadcast %13 : vector<16x1xf32> to vector<16x100xf32>
    %94 = vector.broadcast %92 : vector<1x100xf32> to vector<16x100xf32>
    %95 = arith.mulf %93, %94 : vector<16x100xf32>
    %96 = arith.addf %91, %95 : vector<16x100xf32>
    %97 = vector.extract_strided_slice %1 {offsets = [1, 2], sizes = [1, 100], strides = [1, 1]} : vector<12x102xf32> to vector<1x100xf32>
    %98 = vector.broadcast %14 : vector<16x1xf32> to vector<16x100xf32>
    %99 = vector.broadcast %97 : vector<1x100xf32> to vector<16x100xf32>
    %100 = arith.mulf %98, %99 : vector<16x100xf32>
    %101 = arith.addf %96, %100 : vector<16x100xf32>
    %102 = vector.extract_strided_slice %1 {offsets = [2, 0], sizes = [1, 100], strides = [1, 1]} : vector<12x102xf32> to vector<1x100xf32>
    %103 = vector.broadcast %15 : vector<16x1xf32> to vector<16x100xf32>
    %104 = vector.broadcast %102 : vector<1x100xf32> to vector<16x100xf32>
    %105 = arith.mulf %103, %104 : vector<16x100xf32>
    %106 = arith.addf %101, %105 : vector<16x100xf32>
    %107 = vector.extract_strided_slice %1 {offsets = [2, 1], sizes = [1, 100], strides = [1, 1]} : vector<12x102xf32> to vector<1x100xf32>
    %108 = vector.broadcast %16 : vector<16x1xf32> to vector<16x100xf32>
    %109 = vector.broadcast %107 : vector<1x100xf32> to vector<16x100xf32>
    %110 = arith.mulf %108, %109 : vector<16x100xf32>
    %111 = arith.addf %106, %110 : vector<16x100xf32>
    %112 = vector.extract_strided_slice %1 {offsets = [2, 2], sizes = [1, 100], strides = [1, 1]} : vector<12x102xf32> to vector<1x100xf32>
    %113 = vector.broadcast %17 : vector<16x1xf32> to vector<16x100xf32>
    %114 = vector.broadcast %112 : vector<1x100xf32> to vector<16x100xf32>
    %115 = arith.mulf %113, %114 : vector<16x100xf32>
    %116 = arith.addf %111, %115 : vector<16x100xf32>
    %117 = vector.broadcast %3 : vector<16x1xf32> to vector<16x100xf32>
    %118 = arith.addf %116, %117 : vector<16x100xf32>
    %cst_37 = arith.constant 0.000000e+00 : f32
    %119 = vector.broadcast %cst_37 : f32 to vector<16x100xf32>
    %120 = arith.maximumf %118, %119 : vector<16x100xf32>
    %121 = arith.maximumf %70, %120 : vector<16x100xf32>
    %cst_38 = arith.constant dense<0.000000e+00> : vector<16x52xf32>
    %122 = tpu.matmul %121, %5, %cst_38 {dimension_numbers = #tpu.dot_dimension_numbers<[1], [0], [0], [1], [0, 0, 1, 1], [], []>} : vector<16x100xf32>, vector<100x52xf32>, vector<16x52xf32> -> vector<16x52xf32>
    %cst_39 = arith.constant dense<0.000000e+00> : vector<16x52xf32>
    %123 = tpu.matmul %121, %6, %cst_39 {dimension_numbers = #tpu.dot_dimension_numbers<[1], [0], [0], [1], [0, 0, 1, 1], [], []>} : vector<16x100xf32>, vector<100x52xf32>, vector<16x52xf32> -> vector<16x52xf32>
    %124 = arith.maximumf %122, %123 : vector<16x52xf32>
    %125 = arith.truncf %124 : vector<16x52xf32> to vector<16x52xbf16>
    %cst_40 = arith.constant 0.000000e+00 : f32
    %126 = vector.broadcast %cst_40 : f32 to vector<16x100xf32>
    %127 = vector.extract_strided_slice %1 {offsets = [1, 0], sizes = [1, 100], strides = [1, 1]} : vector<12x102xf32> to vector<1x100xf32>
    %128 = vector.broadcast %9 : vector<16x1xf32> to vector<16x100xf32>
    %129 = vector.broadcast %127 : vector<1x100xf32> to vector<16x100xf32>
    %130 = arith.mulf %128, %129 : vector<16x100xf32>
    %131 = arith.addf %126, %130 : vector<16x100xf32>
    %132 = vector.extract_strided_slice %1 {offsets = [1, 1], sizes = [1, 100], strides = [1, 1]} : vector<12x102xf32> to vector<1x100xf32>
    %133 = vector.broadcast %10 : vector<16x1xf32> to vector<16x100xf32>
    %134 = vector.broadcast %132 : vector<1x100xf32> to vector<16x100xf32>
    %135 = arith.mulf %133, %134 : vector<16x100xf32>
    %136 = arith.addf %131, %135 : vector<16x100xf32>
    %137 = vector.extract_strided_slice %1 {offsets = [1, 2], sizes = [1, 100], strides = [1, 1]} : vector<12x102xf32> to vector<1x100xf32>
    %138 = vector.broadcast %11 : vector<16x1xf32> to vector<16x100xf32>
    %139 = vector.broadcast %137 : vector<1x100xf32> to vector<16x100xf32>
    %140 = arith.mulf %138, %139 : vector<16x100xf32>
    %141 = arith.addf %136, %140 : vector<16x100xf32>
    %142 = vector.extract_strided_slice %1 {offsets = [2, 0], sizes = [1, 100], strides = [1, 1]} : vector<12x102xf32> to vector<1x100xf32>
    %143 = vector.broadcast %12 : vector<16x1xf32> to vector<16x100xf32>
    %144 = vector.broadcast %142 : vector<1x100xf32> to vector<16x100xf32>
    %145 = arith.mulf %143, %144 : vector<16x100xf32>
    %146 = arith.addf %141, %145 : vector<16x100xf32>
    %147 = vector.extract_strided_slice %1 {offsets = [2, 1], sizes = [1, 100], strides = [1, 1]} : vector<12x102xf32> to vector<1x100xf32>
    %148 = vector.broadcast %13 : vector<16x1xf32> to vector<16x100xf32>
    %149 = vector.broadcast %147 : vector<1x100xf32> to vector<16x100xf32>
    %150 = arith.mulf %148, %149 : vector<16x100xf32>
    %151 = arith.addf %146, %150 : vector<16x100xf32>
    %152 = vector.extract_strided_slice %1 {offsets = [2, 2], sizes = [1, 100], strides = [1, 1]} : vector<12x102xf32> to vector<1x100xf32>
    %153 = vector.broadcast %14 : vector<16x1xf32> to vector<16x100xf32>
    %154 = vector.broadcast %152 : vector<1x100xf32> to vector<16x100xf32>
    %155 = arith.mulf %153, %154 : vector<16x100xf32>
    %156 = arith.addf %151, %155 : vector<16x100xf32>
    %157 = vector.extract_strided_slice %1 {offsets = [3, 0], sizes = [1, 100], strides = [1, 1]} : vector<12x102xf32> to vector<1x100xf32>
    %158 = vector.broadcast %15 : vector<16x1xf32> to vector<16x100xf32>
    %159 = vector.broadcast %157 : vector<1x100xf32> to vector<16x100xf32>
    %160 = arith.mulf %158, %159 : vector<16x100xf32>
    %161 = arith.addf %156, %160 : vector<16x100xf32>
    %162 = vector.extract_strided_slice %1 {offsets = [3, 1], sizes = [1, 100], strides = [1, 1]} : vector<12x102xf32> to vector<1x100xf32>
    %163 = vector.broadcast %16 : vector<16x1xf32> to vector<16x100xf32>
    %164 = vector.broadcast %162 : vector<1x100xf32> to vector<16x100xf32>
    %165 = arith.mulf %163, %164 : vector<16x100xf32>
    %166 = arith.addf %161, %165 : vector<16x100xf32>
    %167 = vector.extract_strided_slice %1 {offsets = [3, 2], sizes = [1, 100], strides = [1, 1]} : vector<12x102xf32> to vector<1x100xf32>
    %168 = vector.broadcast %17 : vector<16x1xf32> to vector<16x100xf32>
    %169 = vector.broadcast %167 : vector<1x100xf32> to vector<16x100xf32>
    %170 = arith.mulf %168, %169 : vector<16x100xf32>
    %171 = arith.addf %166, %170 : vector<16x100xf32>
    %172 = vector.broadcast %3 : vector<16x1xf32> to vector<16x100xf32>
    %173 = arith.addf %171, %172 : vector<16x100xf32>
    %cst_41 = arith.constant 0.000000e+00 : f32
    %174 = vector.broadcast %cst_41 : f32 to vector<16x100xf32>
    %175 = arith.maximumf %173, %174 : vector<16x100xf32>
    %cst_42 = arith.constant 0.000000e+00 : f32
    %176 = vector.broadcast %cst_42 : f32 to vector<16x100xf32>
    %177 = vector.extract_strided_slice %1 {offsets = [2, 0], sizes = [1, 100], strides = [1, 1]} : vector<12x102xf32> to vector<1x100xf32>
    %178 = vector.broadcast %9 : vector<16x1xf32> to vector<16x100xf32>
    %179 = vector.broadcast %177 : vector<1x100xf32> to vector<16x100xf32>
    %180 = arith.mulf %178, %179 : vector<16x100xf32>
    %181 = arith.addf %176, %180 : vector<16x100xf32>
    %182 = vector.extract_strided_slice %1 {offsets = [2, 1], sizes = [1, 100], strides = [1, 1]} : vector<12x102xf32> to vector<1x100xf32>
    %183 = vector.broadcast %10 : vector<16x1xf32> to vector<16x100xf32>
    %184 = vector.broadcast %182 : vector<1x100xf32> to vector<16x100xf32>
    %185 = arith.mulf %183, %184 : vector<16x100xf32>
    %186 = arith.addf %181, %185 : vector<16x100xf32>
    %187 = vector.extract_strided_slice %1 {offsets = [2, 2], sizes = [1, 100], strides = [1, 1]} : vector<12x102xf32> to vector<1x100xf32>
    %188 = vector.broadcast %11 : vector<16x1xf32> to vector<16x100xf32>
    %189 = vector.broadcast %187 : vector<1x100xf32> to vector<16x100xf32>
    %190 = arith.mulf %188, %189 : vector<16x100xf32>
    %191 = arith.addf %186, %190 : vector<16x100xf32>
    %192 = vector.extract_strided_slice %1 {offsets = [3, 0], sizes = [1, 100], strides = [1, 1]} : vector<12x102xf32> to vector<1x100xf32>
    %193 = vector.broadcast %12 : vector<16x1xf32> to vector<16x100xf32>
    %194 = vector.broadcast %192 : vector<1x100xf32> to vector<16x100xf32>
    %195 = arith.mulf %193, %194 : vector<16x100xf32>
    %196 = arith.addf %191, %195 : vector<16x100xf32>
    %197 = vector.extract_strided_slice %1 {offsets = [3, 1], sizes = [1, 100], strides = [1, 1]} : vector<12x102xf32> to vector<1x100xf32>
    %198 = vector.broadcast %13 : vector<16x1xf32> to vector<16x100xf32>
    %199 = vector.broadcast %197 : vector<1x100xf32> to vector<16x100xf32>
    %200 = arith.mulf %198, %199 : vector<16x100xf32>
    %201 = arith.addf %196, %200 : vector<16x100xf32>
    %202 = vector.extract_strided_slice %1 {offsets = [3, 2], sizes = [1, 100], strides = [1, 1]} : vector<12x102xf32> to vector<1x100xf32>
    %203 = vector.broadcast %14 : vector<16x1xf32> to vector<16x100xf32>
    %204 = vector.broadcast %202 : vector<1x100xf32> to vector<16x100xf32>
    %205 = arith.mulf %203, %204 : vector<16x100xf32>
    %206 = arith.addf %201, %205 : vector<16x100xf32>
    %207 = vector.extract_strided_slice %1 {offsets = [4, 0], sizes = [1, 100], strides = [1, 1]} : vector<12x102xf32> to vector<1x100xf32>
    %208 = vector.broadcast %15 : vector<16x1xf32> to vector<16x100xf32>
    %209 = vector.broadcast %207 : vector<1x100xf32> to vector<16x100xf32>
    %210 = arith.mulf %208, %209 : vector<16x100xf32>
    %211 = arith.addf %206, %210 : vector<16x100xf32>
    %212 = vector.extract_strided_slice %1 {offsets = [4, 1], sizes = [1, 100], strides = [1, 1]} : vector<12x102xf32> to vector<1x100xf32>
    %213 = vector.broadcast %16 : vector<16x1xf32> to vector<16x100xf32>
    %214 = vector.broadcast %212 : vector<1x100xf32> to vector<16x100xf32>
    %215 = arith.mulf %213, %214 : vector<16x100xf32>
    %216 = arith.addf %211, %215 : vector<16x100xf32>
    %217 = vector.extract_strided_slice %1 {offsets = [4, 2], sizes = [1, 100], strides = [1, 1]} : vector<12x102xf32> to vector<1x100xf32>
    %218 = vector.broadcast %17 : vector<16x1xf32> to vector<16x100xf32>
    %219 = vector.broadcast %217 : vector<1x100xf32> to vector<16x100xf32>
    %220 = arith.mulf %218, %219 : vector<16x100xf32>
    %221 = arith.addf %216, %220 : vector<16x100xf32>
    %222 = vector.broadcast %3 : vector<16x1xf32> to vector<16x100xf32>
    %223 = arith.addf %221, %222 : vector<16x100xf32>
    %cst_43 = arith.constant 0.000000e+00 : f32
    %224 = vector.broadcast %cst_43 : f32 to vector<16x100xf32>
    %225 = arith.maximumf %223, %224 : vector<16x100xf32>
    %226 = arith.maximumf %175, %225 : vector<16x100xf32>
    %cst_44 = arith.constant dense<0.000000e+00> : vector<16x52xf32>
    %227 = tpu.matmul %226, %5, %cst_44 {dimension_numbers = #tpu.dot_dimension_numbers<[1], [0], [0], [1], [0, 0, 1, 1], [], []>} : vector<16x100xf32>, vector<100x52xf32>, vector<16x52xf32> -> vector<16x52xf32>
    %cst_45 = arith.constant dense<0.000000e+00> : vector<16x52xf32>
    %228 = tpu.matmul %226, %6, %cst_45 {dimension_numbers = #tpu.dot_dimension_numbers<[1], [0], [0], [1], [0, 0, 1, 1], [], []>} : vector<16x100xf32>, vector<100x52xf32>, vector<16x52xf32> -> vector<16x52xf32>
    %229 = arith.maximumf %227, %228 : vector<16x52xf32>
    %230 = arith.truncf %229 : vector<16x52xf32> to vector<16x52xbf16>
    %cst_46 = arith.constant 0.000000e+00 : f32
    %231 = vector.broadcast %cst_46 : f32 to vector<16x100xf32>
    %232 = vector.extract_strided_slice %1 {offsets = [3, 0], sizes = [1, 100], strides = [1, 1]} : vector<12x102xf32> to vector<1x100xf32>
    %233 = vector.broadcast %9 : vector<16x1xf32> to vector<16x100xf32>
    %234 = vector.broadcast %232 : vector<1x100xf32> to vector<16x100xf32>
    %235 = arith.mulf %233, %234 : vector<16x100xf32>
    %236 = arith.addf %231, %235 : vector<16x100xf32>
    %237 = vector.extract_strided_slice %1 {offsets = [3, 1], sizes = [1, 100], strides = [1, 1]} : vector<12x102xf32> to vector<1x100xf32>
    %238 = vector.broadcast %10 : vector<16x1xf32> to vector<16x100xf32>
    %239 = vector.broadcast %237 : vector<1x100xf32> to vector<16x100xf32>
    %240 = arith.mulf %238, %239 : vector<16x100xf32>
    %241 = arith.addf %236, %240 : vector<16x100xf32>
    %242 = vector.extract_strided_slice %1 {offsets = [3, 2], sizes = [1, 100], strides = [1, 1]} : vector<12x102xf32> to vector<1x100xf32>
    %243 = vector.broadcast %11 : vector<16x1xf32> to vector<16x100xf32>
    %244 = vector.broadcast %242 : vector<1x100xf32> to vector<16x100xf32>
    %245 = arith.mulf %243, %244 : vector<16x100xf32>
    %246 = arith.addf %241, %245 : vector<16x100xf32>
    %247 = vector.extract_strided_slice %1 {offsets = [4, 0], sizes = [1, 100], strides = [1, 1]} : vector<12x102xf32> to vector<1x100xf32>
    %248 = vector.broadcast %12 : vector<16x1xf32> to vector<16x100xf32>
    %249 = vector.broadcast %247 : vector<1x100xf32> to vector<16x100xf32>
    %250 = arith.mulf %248, %249 : vector<16x100xf32>
    %251 = arith.addf %246, %250 : vector<16x100xf32>
    %252 = vector.extract_strided_slice %1 {offsets = [4, 1], sizes = [1, 100], strides = [1, 1]} : vector<12x102xf32> to vector<1x100xf32>
    %253 = vector.broadcast %13 : vector<16x1xf32> to vector<16x100xf32>
    %254 = vector.broadcast %252 : vector<1x100xf32> to vector<16x100xf32>
    %255 = arith.mulf %253, %254 : vector<16x100xf32>
    %256 = arith.addf %251, %255 : vector<16x100xf32>
    %257 = vector.extract_strided_slice %1 {offsets = [4, 2], sizes = [1, 100], strides = [1, 1]} : vector<12x102xf32> to vector<1x100xf32>
    %258 = vector.broadcast %14 : vector<16x1xf32> to vector<16x100xf32>
    %259 = vector.broadcast %257 : vector<1x100xf32> to vector<16x100xf32>
    %260 = arith.mulf %258, %259 : vector<16x100xf32>
    %261 = arith.addf %256, %260 : vector<16x100xf32>
    %262 = vector.extract_strided_slice %1 {offsets = [5, 0], sizes = [1, 100], strides = [1, 1]} : vector<12x102xf32> to vector<1x100xf32>
    %263 = vector.broadcast %15 : vector<16x1xf32> to vector<16x100xf32>
    %264 = vector.broadcast %262 : vector<1x100xf32> to vector<16x100xf32>
    %265 = arith.mulf %263, %264 : vector<16x100xf32>
    %266 = arith.addf %261, %265 : vector<16x100xf32>
    %267 = vector.extract_strided_slice %1 {offsets = [5, 1], sizes = [1, 100], strides = [1, 1]} : vector<12x102xf32> to vector<1x100xf32>
    %268 = vector.broadcast %16 : vector<16x1xf32> to vector<16x100xf32>
    %269 = vector.broadcast %267 : vector<1x100xf32> to vector<16x100xf32>
    %270 = arith.mulf %268, %269 : vector<16x100xf32>
    %271 = arith.addf %266, %270 : vector<16x100xf32>
    %272 = vector.extract_strided_slice %1 {offsets = [5, 2], sizes = [1, 100], strides = [1, 1]} : vector<12x102xf32> to vector<1x100xf32>
    %273 = vector.broadcast %17 : vector<16x1xf32> to vector<16x100xf32>
    %274 = vector.broadcast %272 : vector<1x100xf32> to vector<16x100xf32>
    %275 = arith.mulf %273, %274 : vector<16x100xf32>
    %276 = arith.addf %271, %275 : vector<16x100xf32>
    %277 = vector.broadcast %3 : vector<16x1xf32> to vector<16x100xf32>
    %278 = arith.addf %276, %277 : vector<16x100xf32>
    %cst_47 = arith.constant 0.000000e+00 : f32
    %279 = vector.broadcast %cst_47 : f32 to vector<16x100xf32>
    %280 = arith.maximumf %278, %279 : vector<16x100xf32>
    %cst_48 = arith.constant 0.000000e+00 : f32
    %281 = vector.broadcast %cst_48 : f32 to vector<16x100xf32>
    %282 = vector.extract_strided_slice %1 {offsets = [4, 0], sizes = [1, 100], strides = [1, 1]} : vector<12x102xf32> to vector<1x100xf32>
    %283 = vector.broadcast %9 : vector<16x1xf32> to vector<16x100xf32>
    %284 = vector.broadcast %282 : vector<1x100xf32> to vector<16x100xf32>
    %285 = arith.mulf %283, %284 : vector<16x100xf32>
    %286 = arith.addf %281, %285 : vector<16x100xf32>
    %287 = vector.extract_strided_slice %1 {offsets = [4, 1], sizes = [1, 100], strides = [1, 1]} : vector<12x102xf32> to vector<1x100xf32>
    %288 = vector.broadcast %10 : vector<16x1xf32> to vector<16x100xf32>
    %289 = vector.broadcast %287 : vector<1x100xf32> to vector<16x100xf32>
    %290 = arith.mulf %288, %289 : vector<16x100xf32>
    %291 = arith.addf %286, %290 : vector<16x100xf32>
    %292 = vector.extract_strided_slice %1 {offsets = [4, 2], sizes = [1, 100], strides = [1, 1]} : vector<12x102xf32> to vector<1x100xf32>
    %293 = vector.broadcast %11 : vector<16x1xf32> to vector<16x100xf32>
    %294 = vector.broadcast %292 : vector<1x100xf32> to vector<16x100xf32>
    %295 = arith.mulf %293, %294 : vector<16x100xf32>
    %296 = arith.addf %291, %295 : vector<16x100xf32>
    %297 = vector.extract_strided_slice %1 {offsets = [5, 0], sizes = [1, 100], strides = [1, 1]} : vector<12x102xf32> to vector<1x100xf32>
    %298 = vector.broadcast %12 : vector<16x1xf32> to vector<16x100xf32>
    %299 = vector.broadcast %297 : vector<1x100xf32> to vector<16x100xf32>
    %300 = arith.mulf %298, %299 : vector<16x100xf32>
    %301 = arith.addf %296, %300 : vector<16x100xf32>
    %302 = vector.extract_strided_slice %1 {offsets = [5, 1], sizes = [1, 100], strides = [1, 1]} : vector<12x102xf32> to vector<1x100xf32>
    %303 = vector.broadcast %13 : vector<16x1xf32> to vector<16x100xf32>
    %304 = vector.broadcast %302 : vector<1x100xf32> to vector<16x100xf32>
    %305 = arith.mulf %303, %304 : vector<16x100xf32>
    %306 = arith.addf %301, %305 : vector<16x100xf32>
    %307 = vector.extract_strided_slice %1 {offsets = [5, 2], sizes = [1, 100], strides = [1, 1]} : vector<12x102xf32> to vector<1x100xf32>
    %308 = vector.broadcast %14 : vector<16x1xf32> to vector<16x100xf32>
    %309 = vector.broadcast %307 : vector<1x100xf32> to vector<16x100xf32>
    %310 = arith.mulf %308, %309 : vector<16x100xf32>
    %311 = arith.addf %306, %310 : vector<16x100xf32>
    %312 = vector.extract_strided_slice %1 {offsets = [6, 0], sizes = [1, 100], strides = [1, 1]} : vector<12x102xf32> to vector<1x100xf32>
    %313 = vector.broadcast %15 : vector<16x1xf32> to vector<16x100xf32>
    %314 = vector.broadcast %312 : vector<1x100xf32> to vector<16x100xf32>
    %315 = arith.mulf %313, %314 : vector<16x100xf32>
    %316 = arith.addf %311, %315 : vector<16x100xf32>
    %317 = vector.extract_strided_slice %1 {offsets = [6, 1], sizes = [1, 100], strides = [1, 1]} : vector<12x102xf32> to vector<1x100xf32>
    %318 = vector.broadcast %16 : vector<16x1xf32> to vector<16x100xf32>
    %319 = vector.broadcast %317 : vector<1x100xf32> to vector<16x100xf32>
    %320 = arith.mulf %318, %319 : vector<16x100xf32>
    %321 = arith.addf %316, %320 : vector<16x100xf32>
    %322 = vector.extract_strided_slice %1 {offsets = [6, 2], sizes = [1, 100], strides = [1, 1]} : vector<12x102xf32> to vector<1x100xf32>
    %323 = vector.broadcast %17 : vector<16x1xf32> to vector<16x100xf32>
    %324 = vector.broadcast %322 : vector<1x100xf32> to vector<16x100xf32>
    %325 = arith.mulf %323, %324 : vector<16x100xf32>
    %326 = arith.addf %321, %325 : vector<16x100xf32>
    %327 = vector.broadcast %3 : vector<16x1xf32> to vector<16x100xf32>
    %328 = arith.addf %326, %327 : vector<16x100xf32>
    %cst_49 = arith.constant 0.000000e+00 : f32
    %329 = vector.broadcast %cst_49 : f32 to vector<16x100xf32>
    %330 = arith.maximumf %328, %329 : vector<16x100xf32>
    %331 = arith.maximumf %280, %330 : vector<16x100xf32>
    %cst_50 = arith.constant dense<0.000000e+00> : vector<16x52xf32>
    %332 = tpu.matmul %331, %5, %cst_50 {dimension_numbers = #tpu.dot_dimension_numbers<[1], [0], [0], [1], [0, 0, 1, 1], [], []>} : vector<16x100xf32>, vector<100x52xf32>, vector<16x52xf32> -> vector<16x52xf32>
    %cst_51 = arith.constant dense<0.000000e+00> : vector<16x52xf32>
    %333 = tpu.matmul %331, %6, %cst_51 {dimension_numbers = #tpu.dot_dimension_numbers<[1], [0], [0], [1], [0, 0, 1, 1], [], []>} : vector<16x100xf32>, vector<100x52xf32>, vector<16x52xf32> -> vector<16x52xf32>
    %334 = arith.maximumf %332, %333 : vector<16x52xf32>
    %335 = arith.truncf %334 : vector<16x52xf32> to vector<16x52xbf16>
    %cst_52 = arith.constant 0.000000e+00 : f32
    %336 = vector.broadcast %cst_52 : f32 to vector<16x100xf32>
    %337 = vector.extract_strided_slice %1 {offsets = [5, 0], sizes = [1, 100], strides = [1, 1]} : vector<12x102xf32> to vector<1x100xf32>
    %338 = vector.broadcast %9 : vector<16x1xf32> to vector<16x100xf32>
    %339 = vector.broadcast %337 : vector<1x100xf32> to vector<16x100xf32>
    %340 = arith.mulf %338, %339 : vector<16x100xf32>
    %341 = arith.addf %336, %340 : vector<16x100xf32>
    %342 = vector.extract_strided_slice %1 {offsets = [5, 1], sizes = [1, 100], strides = [1, 1]} : vector<12x102xf32> to vector<1x100xf32>
    %343 = vector.broadcast %10 : vector<16x1xf32> to vector<16x100xf32>
    %344 = vector.broadcast %342 : vector<1x100xf32> to vector<16x100xf32>
    %345 = arith.mulf %343, %344 : vector<16x100xf32>
    %346 = arith.addf %341, %345 : vector<16x100xf32>
    %347 = vector.extract_strided_slice %1 {offsets = [5, 2], sizes = [1, 100], strides = [1, 1]} : vector<12x102xf32> to vector<1x100xf32>
    %348 = vector.broadcast %11 : vector<16x1xf32> to vector<16x100xf32>
    %349 = vector.broadcast %347 : vector<1x100xf32> to vector<16x100xf32>
    %350 = arith.mulf %348, %349 : vector<16x100xf32>
    %351 = arith.addf %346, %350 : vector<16x100xf32>
    %352 = vector.extract_strided_slice %1 {offsets = [6, 0], sizes = [1, 100], strides = [1, 1]} : vector<12x102xf32> to vector<1x100xf32>
    %353 = vector.broadcast %12 : vector<16x1xf32> to vector<16x100xf32>
    %354 = vector.broadcast %352 : vector<1x100xf32> to vector<16x100xf32>
    %355 = arith.mulf %353, %354 : vector<16x100xf32>
    %356 = arith.addf %351, %355 : vector<16x100xf32>
    %357 = vector.extract_strided_slice %1 {offsets = [6, 1], sizes = [1, 100], strides = [1, 1]} : vector<12x102xf32> to vector<1x100xf32>
    %358 = vector.broadcast %13 : vector<16x1xf32> to vector<16x100xf32>
    %359 = vector.broadcast %357 : vector<1x100xf32> to vector<16x100xf32>
    %360 = arith.mulf %358, %359 : vector<16x100xf32>
    %361 = arith.addf %356, %360 : vector<16x100xf32>
    %362 = vector.extract_strided_slice %1 {offsets = [6, 2], sizes = [1, 100], strides = [1, 1]} : vector<12x102xf32> to vector<1x100xf32>
    %363 = vector.broadcast %14 : vector<16x1xf32> to vector<16x100xf32>
    %364 = vector.broadcast %362 : vector<1x100xf32> to vector<16x100xf32>
    %365 = arith.mulf %363, %364 : vector<16x100xf32>
    %366 = arith.addf %361, %365 : vector<16x100xf32>
    %367 = vector.extract_strided_slice %1 {offsets = [7, 0], sizes = [1, 100], strides = [1, 1]} : vector<12x102xf32> to vector<1x100xf32>
    %368 = vector.broadcast %15 : vector<16x1xf32> to vector<16x100xf32>
    %369 = vector.broadcast %367 : vector<1x100xf32> to vector<16x100xf32>
    %370 = arith.mulf %368, %369 : vector<16x100xf32>
    %371 = arith.addf %366, %370 : vector<16x100xf32>
    %372 = vector.extract_strided_slice %1 {offsets = [7, 1], sizes = [1, 100], strides = [1, 1]} : vector<12x102xf32> to vector<1x100xf32>
    %373 = vector.broadcast %16 : vector<16x1xf32> to vector<16x100xf32>
    %374 = vector.broadcast %372 : vector<1x100xf32> to vector<16x100xf32>
    %375 = arith.mulf %373, %374 : vector<16x100xf32>
    %376 = arith.addf %371, %375 : vector<16x100xf32>
    %377 = vector.extract_strided_slice %1 {offsets = [7, 2], sizes = [1, 100], strides = [1, 1]} : vector<12x102xf32> to vector<1x100xf32>
    %378 = vector.broadcast %17 : vector<16x1xf32> to vector<16x100xf32>
    %379 = vector.broadcast %377 : vector<1x100xf32> to vector<16x100xf32>
    %380 = arith.mulf %378, %379 : vector<16x100xf32>
    %381 = arith.addf %376, %380 : vector<16x100xf32>
    %382 = vector.broadcast %3 : vector<16x1xf32> to vector<16x100xf32>
    %383 = arith.addf %381, %382 : vector<16x100xf32>
    %cst_53 = arith.constant 0.000000e+00 : f32
    %384 = vector.broadcast %cst_53 : f32 to vector<16x100xf32>
    %385 = arith.maximumf %383, %384 : vector<16x100xf32>
    %cst_54 = arith.constant 0.000000e+00 : f32
    %386 = vector.broadcast %cst_54 : f32 to vector<16x100xf32>
    %387 = vector.extract_strided_slice %1 {offsets = [6, 0], sizes = [1, 100], strides = [1, 1]} : vector<12x102xf32> to vector<1x100xf32>
    %388 = vector.broadcast %9 : vector<16x1xf32> to vector<16x100xf32>
    %389 = vector.broadcast %387 : vector<1x100xf32> to vector<16x100xf32>
    %390 = arith.mulf %388, %389 : vector<16x100xf32>
    %391 = arith.addf %386, %390 : vector<16x100xf32>
    %392 = vector.extract_strided_slice %1 {offsets = [6, 1], sizes = [1, 100], strides = [1, 1]} : vector<12x102xf32> to vector<1x100xf32>
    %393 = vector.broadcast %10 : vector<16x1xf32> to vector<16x100xf32>
    %394 = vector.broadcast %392 : vector<1x100xf32> to vector<16x100xf32>
    %395 = arith.mulf %393, %394 : vector<16x100xf32>
    %396 = arith.addf %391, %395 : vector<16x100xf32>
    %397 = vector.extract_strided_slice %1 {offsets = [6, 2], sizes = [1, 100], strides = [1, 1]} : vector<12x102xf32> to vector<1x100xf32>
    %398 = vector.broadcast %11 : vector<16x1xf32> to vector<16x100xf32>
    %399 = vector.broadcast %397 : vector<1x100xf32> to vector<16x100xf32>
    %400 = arith.mulf %398, %399 : vector<16x100xf32>
    %401 = arith.addf %396, %400 : vector<16x100xf32>
    %402 = vector.extract_strided_slice %1 {offsets = [7, 0], sizes = [1, 100], strides = [1, 1]} : vector<12x102xf32> to vector<1x100xf32>
    %403 = vector.broadcast %12 : vector<16x1xf32> to vector<16x100xf32>
    %404 = vector.broadcast %402 : vector<1x100xf32> to vector<16x100xf32>
    %405 = arith.mulf %403, %404 : vector<16x100xf32>
    %406 = arith.addf %401, %405 : vector<16x100xf32>
    %407 = vector.extract_strided_slice %1 {offsets = [7, 1], sizes = [1, 100], strides = [1, 1]} : vector<12x102xf32> to vector<1x100xf32>
    %408 = vector.broadcast %13 : vector<16x1xf32> to vector<16x100xf32>
    %409 = vector.broadcast %407 : vector<1x100xf32> to vector<16x100xf32>
    %410 = arith.mulf %408, %409 : vector<16x100xf32>
    %411 = arith.addf %406, %410 : vector<16x100xf32>
    %412 = vector.extract_strided_slice %1 {offsets = [7, 2], sizes = [1, 100], strides = [1, 1]} : vector<12x102xf32> to vector<1x100xf32>
    %413 = vector.broadcast %14 : vector<16x1xf32> to vector<16x100xf32>
    %414 = vector.broadcast %412 : vector<1x100xf32> to vector<16x100xf32>
    %415 = arith.mulf %413, %414 : vector<16x100xf32>
    %416 = arith.addf %411, %415 : vector<16x100xf32>
    %417 = vector.extract_strided_slice %1 {offsets = [8, 0], sizes = [1, 100], strides = [1, 1]} : vector<12x102xf32> to vector<1x100xf32>
    %418 = vector.broadcast %15 : vector<16x1xf32> to vector<16x100xf32>
    %419 = vector.broadcast %417 : vector<1x100xf32> to vector<16x100xf32>
    %420 = arith.mulf %418, %419 : vector<16x100xf32>
    %421 = arith.addf %416, %420 : vector<16x100xf32>
    %422 = vector.extract_strided_slice %1 {offsets = [8, 1], sizes = [1, 100], strides = [1, 1]} : vector<12x102xf32> to vector<1x100xf32>
    %423 = vector.broadcast %16 : vector<16x1xf32> to vector<16x100xf32>
    %424 = vector.broadcast %422 : vector<1x100xf32> to vector<16x100xf32>
    %425 = arith.mulf %423, %424 : vector<16x100xf32>
    %426 = arith.addf %421, %425 : vector<16x100xf32>
    %427 = vector.extract_strided_slice %1 {offsets = [8, 2], sizes = [1, 100], strides = [1, 1]} : vector<12x102xf32> to vector<1x100xf32>
    %428 = vector.broadcast %17 : vector<16x1xf32> to vector<16x100xf32>
    %429 = vector.broadcast %427 : vector<1x100xf32> to vector<16x100xf32>
    %430 = arith.mulf %428, %429 : vector<16x100xf32>
    %431 = arith.addf %426, %430 : vector<16x100xf32>
    %432 = vector.broadcast %3 : vector<16x1xf32> to vector<16x100xf32>
    %433 = arith.addf %431, %432 : vector<16x100xf32>
    %cst_55 = arith.constant 0.000000e+00 : f32
    %434 = vector.broadcast %cst_55 : f32 to vector<16x100xf32>
    %435 = arith.maximumf %433, %434 : vector<16x100xf32>
    %436 = arith.maximumf %385, %435 : vector<16x100xf32>
    %cst_56 = arith.constant dense<0.000000e+00> : vector<16x52xf32>
    %437 = tpu.matmul %436, %5, %cst_56 {dimension_numbers = #tpu.dot_dimension_numbers<[1], [0], [0], [1], [0, 0, 1, 1], [], []>} : vector<16x100xf32>, vector<100x52xf32>, vector<16x52xf32> -> vector<16x52xf32>
    %cst_57 = arith.constant dense<0.000000e+00> : vector<16x52xf32>
    %438 = tpu.matmul %436, %6, %cst_57 {dimension_numbers = #tpu.dot_dimension_numbers<[1], [0], [0], [1], [0, 0, 1, 1], [], []>} : vector<16x100xf32>, vector<100x52xf32>, vector<16x52xf32> -> vector<16x52xf32>
    %439 = arith.maximumf %437, %438 : vector<16x52xf32>
    %440 = arith.truncf %439 : vector<16x52xf32> to vector<16x52xbf16>
    %cst_58 = arith.constant 0.000000e+00 : f32
    %441 = vector.broadcast %cst_58 : f32 to vector<16x100xf32>
    %442 = vector.extract_strided_slice %1 {offsets = [7, 0], sizes = [1, 100], strides = [1, 1]} : vector<12x102xf32> to vector<1x100xf32>
    %443 = vector.broadcast %9 : vector<16x1xf32> to vector<16x100xf32>
    %444 = vector.broadcast %442 : vector<1x100xf32> to vector<16x100xf32>
    %445 = arith.mulf %443, %444 : vector<16x100xf32>
    %446 = arith.addf %441, %445 : vector<16x100xf32>
    %447 = vector.extract_strided_slice %1 {offsets = [7, 1], sizes = [1, 100], strides = [1, 1]} : vector<12x102xf32> to vector<1x100xf32>
    %448 = vector.broadcast %10 : vector<16x1xf32> to vector<16x100xf32>
    %449 = vector.broadcast %447 : vector<1x100xf32> to vector<16x100xf32>
    %450 = arith.mulf %448, %449 : vector<16x100xf32>
    %451 = arith.addf %446, %450 : vector<16x100xf32>
    %452 = vector.extract_strided_slice %1 {offsets = [7, 2], sizes = [1, 100], strides = [1, 1]} : vector<12x102xf32> to vector<1x100xf32>
    %453 = vector.broadcast %11 : vector<16x1xf32> to vector<16x100xf32>
    %454 = vector.broadcast %452 : vector<1x100xf32> to vector<16x100xf32>
    %455 = arith.mulf %453, %454 : vector<16x100xf32>
    %456 = arith.addf %451, %455 : vector<16x100xf32>
    %457 = vector.extract_strided_slice %1 {offsets = [8, 0], sizes = [1, 100], strides = [1, 1]} : vector<12x102xf32> to vector<1x100xf32>
    %458 = vector.broadcast %12 : vector<16x1xf32> to vector<16x100xf32>
    %459 = vector.broadcast %457 : vector<1x100xf32> to vector<16x100xf32>
    %460 = arith.mulf %458, %459 : vector<16x100xf32>
    %461 = arith.addf %456, %460 : vector<16x100xf32>
    %462 = vector.extract_strided_slice %1 {offsets = [8, 1], sizes = [1, 100], strides = [1, 1]} : vector<12x102xf32> to vector<1x100xf32>
    %463 = vector.broadcast %13 : vector<16x1xf32> to vector<16x100xf32>
    %464 = vector.broadcast %462 : vector<1x100xf32> to vector<16x100xf32>
    %465 = arith.mulf %463, %464 : vector<16x100xf32>
    %466 = arith.addf %461, %465 : vector<16x100xf32>
    %467 = vector.extract_strided_slice %1 {offsets = [8, 2], sizes = [1, 100], strides = [1, 1]} : vector<12x102xf32> to vector<1x100xf32>
    %468 = vector.broadcast %14 : vector<16x1xf32> to vector<16x100xf32>
    %469 = vector.broadcast %467 : vector<1x100xf32> to vector<16x100xf32>
    %470 = arith.mulf %468, %469 : vector<16x100xf32>
    %471 = arith.addf %466, %470 : vector<16x100xf32>
    %472 = vector.extract_strided_slice %1 {offsets = [9, 0], sizes = [1, 100], strides = [1, 1]} : vector<12x102xf32> to vector<1x100xf32>
    %473 = vector.broadcast %15 : vector<16x1xf32> to vector<16x100xf32>
    %474 = vector.broadcast %472 : vector<1x100xf32> to vector<16x100xf32>
    %475 = arith.mulf %473, %474 : vector<16x100xf32>
    %476 = arith.addf %471, %475 : vector<16x100xf32>
    %477 = vector.extract_strided_slice %1 {offsets = [9, 1], sizes = [1, 100], strides = [1, 1]} : vector<12x102xf32> to vector<1x100xf32>
    %478 = vector.broadcast %16 : vector<16x1xf32> to vector<16x100xf32>
    %479 = vector.broadcast %477 : vector<1x100xf32> to vector<16x100xf32>
    %480 = arith.mulf %478, %479 : vector<16x100xf32>
    %481 = arith.addf %476, %480 : vector<16x100xf32>
    %482 = vector.extract_strided_slice %1 {offsets = [9, 2], sizes = [1, 100], strides = [1, 1]} : vector<12x102xf32> to vector<1x100xf32>
    %483 = vector.broadcast %17 : vector<16x1xf32> to vector<16x100xf32>
    %484 = vector.broadcast %482 : vector<1x100xf32> to vector<16x100xf32>
    %485 = arith.mulf %483, %484 : vector<16x100xf32>
    %486 = arith.addf %481, %485 : vector<16x100xf32>
    %487 = vector.broadcast %3 : vector<16x1xf32> to vector<16x100xf32>
    %488 = arith.addf %486, %487 : vector<16x100xf32>
    %cst_59 = arith.constant 0.000000e+00 : f32
    %489 = vector.broadcast %cst_59 : f32 to vector<16x100xf32>
    %490 = arith.maximumf %488, %489 : vector<16x100xf32>
    %cst_60 = arith.constant 0.000000e+00 : f32
    %491 = vector.broadcast %cst_60 : f32 to vector<16x100xf32>
    %492 = vector.extract_strided_slice %1 {offsets = [8, 0], sizes = [1, 100], strides = [1, 1]} : vector<12x102xf32> to vector<1x100xf32>
    %493 = vector.broadcast %9 : vector<16x1xf32> to vector<16x100xf32>
    %494 = vector.broadcast %492 : vector<1x100xf32> to vector<16x100xf32>
    %495 = arith.mulf %493, %494 : vector<16x100xf32>
    %496 = arith.addf %491, %495 : vector<16x100xf32>
    %497 = vector.extract_strided_slice %1 {offsets = [8, 1], sizes = [1, 100], strides = [1, 1]} : vector<12x102xf32> to vector<1x100xf32>
    %498 = vector.broadcast %10 : vector<16x1xf32> to vector<16x100xf32>
    %499 = vector.broadcast %497 : vector<1x100xf32> to vector<16x100xf32>
    %500 = arith.mulf %498, %499 : vector<16x100xf32>
    %501 = arith.addf %496, %500 : vector<16x100xf32>
    %502 = vector.extract_strided_slice %1 {offsets = [8, 2], sizes = [1, 100], strides = [1, 1]} : vector<12x102xf32> to vector<1x100xf32>
    %503 = vector.broadcast %11 : vector<16x1xf32> to vector<16x100xf32>
    %504 = vector.broadcast %502 : vector<1x100xf32> to vector<16x100xf32>
    %505 = arith.mulf %503, %504 : vector<16x100xf32>
    %506 = arith.addf %501, %505 : vector<16x100xf32>
    %507 = vector.extract_strided_slice %1 {offsets = [9, 0], sizes = [1, 100], strides = [1, 1]} : vector<12x102xf32> to vector<1x100xf32>
    %508 = vector.broadcast %12 : vector<16x1xf32> to vector<16x100xf32>
    %509 = vector.broadcast %507 : vector<1x100xf32> to vector<16x100xf32>
    %510 = arith.mulf %508, %509 : vector<16x100xf32>
    %511 = arith.addf %506, %510 : vector<16x100xf32>
    %512 = vector.extract_strided_slice %1 {offsets = [9, 1], sizes = [1, 100], strides = [1, 1]} : vector<12x102xf32> to vector<1x100xf32>
    %513 = vector.broadcast %13 : vector<16x1xf32> to vector<16x100xf32>
    %514 = vector.broadcast %512 : vector<1x100xf32> to vector<16x100xf32>
    %515 = arith.mulf %513, %514 : vector<16x100xf32>
    %516 = arith.addf %511, %515 : vector<16x100xf32>
    %517 = vector.extract_strided_slice %1 {offsets = [9, 2], sizes = [1, 100], strides = [1, 1]} : vector<12x102xf32> to vector<1x100xf32>
    %518 = vector.broadcast %14 : vector<16x1xf32> to vector<16x100xf32>
    %519 = vector.broadcast %517 : vector<1x100xf32> to vector<16x100xf32>
    %520 = arith.mulf %518, %519 : vector<16x100xf32>
    %521 = arith.addf %516, %520 : vector<16x100xf32>
    %522 = vector.extract_strided_slice %1 {offsets = [10, 0], sizes = [1, 100], strides = [1, 1]} : vector<12x102xf32> to vector<1x100xf32>
    %523 = vector.broadcast %15 : vector<16x1xf32> to vector<16x100xf32>
    %524 = vector.broadcast %522 : vector<1x100xf32> to vector<16x100xf32>
    %525 = arith.mulf %523, %524 : vector<16x100xf32>
    %526 = arith.addf %521, %525 : vector<16x100xf32>
    %527 = vector.extract_strided_slice %1 {offsets = [10, 1], sizes = [1, 100], strides = [1, 1]} : vector<12x102xf32> to vector<1x100xf32>
    %528 = vector.broadcast %16 : vector<16x1xf32> to vector<16x100xf32>
    %529 = vector.broadcast %527 : vector<1x100xf32> to vector<16x100xf32>
    %530 = arith.mulf %528, %529 : vector<16x100xf32>
    %531 = arith.addf %526, %530 : vector<16x100xf32>
    %532 = vector.extract_strided_slice %1 {offsets = [10, 2], sizes = [1, 100], strides = [1, 1]} : vector<12x102xf32> to vector<1x100xf32>
    %533 = vector.broadcast %17 : vector<16x1xf32> to vector<16x100xf32>
    %534 = vector.broadcast %532 : vector<1x100xf32> to vector<16x100xf32>
    %535 = arith.mulf %533, %534 : vector<16x100xf32>
    %536 = arith.addf %531, %535 : vector<16x100xf32>
    %537 = vector.broadcast %3 : vector<16x1xf32> to vector<16x100xf32>
    %538 = arith.addf %536, %537 : vector<16x100xf32>
    %cst_61 = arith.constant 0.000000e+00 : f32
    %539 = vector.broadcast %cst_61 : f32 to vector<16x100xf32>
    %540 = arith.maximumf %538, %539 : vector<16x100xf32>
    %541 = arith.maximumf %490, %540 : vector<16x100xf32>
    %cst_62 = arith.constant dense<0.000000e+00> : vector<16x52xf32>
    %542 = tpu.matmul %541, %5, %cst_62 {dimension_numbers = #tpu.dot_dimension_numbers<[1], [0], [0], [1], [0, 0, 1, 1], [], []>} : vector<16x100xf32>, vector<100x52xf32>, vector<16x52xf32> -> vector<16x52xf32>
    %cst_63 = arith.constant dense<0.000000e+00> : vector<16x52xf32>
    %543 = tpu.matmul %541, %6, %cst_63 {dimension_numbers = #tpu.dot_dimension_numbers<[1], [0], [0], [1], [0, 0, 1, 1], [], []>} : vector<16x100xf32>, vector<100x52xf32>, vector<16x52xf32> -> vector<16x52xf32>
    %544 = arith.maximumf %542, %543 : vector<16x52xf32>
    %545 = arith.truncf %544 : vector<16x52xf32> to vector<16x52xbf16>
    %cst_64 = arith.constant 0.000000e+00 : f32
    %546 = vector.broadcast %cst_64 : f32 to vector<16x100xf32>
    %547 = vector.extract_strided_slice %1 {offsets = [9, 0], sizes = [1, 100], strides = [1, 1]} : vector<12x102xf32> to vector<1x100xf32>
    %548 = vector.broadcast %9 : vector<16x1xf32> to vector<16x100xf32>
    %549 = vector.broadcast %547 : vector<1x100xf32> to vector<16x100xf32>
    %550 = arith.mulf %548, %549 : vector<16x100xf32>
    %551 = arith.addf %546, %550 : vector<16x100xf32>
    %552 = vector.extract_strided_slice %1 {offsets = [9, 1], sizes = [1, 100], strides = [1, 1]} : vector<12x102xf32> to vector<1x100xf32>
    %553 = vector.broadcast %10 : vector<16x1xf32> to vector<16x100xf32>
    %554 = vector.broadcast %552 : vector<1x100xf32> to vector<16x100xf32>
    %555 = arith.mulf %553, %554 : vector<16x100xf32>
    %556 = arith.addf %551, %555 : vector<16x100xf32>
    %557 = vector.extract_strided_slice %1 {offsets = [9, 2], sizes = [1, 100], strides = [1, 1]} : vector<12x102xf32> to vector<1x100xf32>
    %558 = vector.broadcast %11 : vector<16x1xf32> to vector<16x100xf32>
    %559 = vector.broadcast %557 : vector<1x100xf32> to vector<16x100xf32>
    %560 = arith.mulf %558, %559 : vector<16x100xf32>
    %561 = arith.addf %556, %560 : vector<16x100xf32>
    %562 = vector.extract_strided_slice %1 {offsets = [10, 0], sizes = [1, 100], strides = [1, 1]} : vector<12x102xf32> to vector<1x100xf32>
    %563 = vector.broadcast %12 : vector<16x1xf32> to vector<16x100xf32>
    %564 = vector.broadcast %562 : vector<1x100xf32> to vector<16x100xf32>
    %565 = arith.mulf %563, %564 : vector<16x100xf32>
    %566 = arith.addf %561, %565 : vector<16x100xf32>
    %567 = vector.extract_strided_slice %1 {offsets = [10, 1], sizes = [1, 100], strides = [1, 1]} : vector<12x102xf32> to vector<1x100xf32>
    %568 = vector.broadcast %13 : vector<16x1xf32> to vector<16x100xf32>
    %569 = vector.broadcast %567 : vector<1x100xf32> to vector<16x100xf32>
    %570 = arith.mulf %568, %569 : vector<16x100xf32>
    %571 = arith.addf %566, %570 : vector<16x100xf32>
    %572 = vector.extract_strided_slice %1 {offsets = [10, 2], sizes = [1, 100], strides = [1, 1]} : vector<12x102xf32> to vector<1x100xf32>
    %573 = vector.broadcast %14 : vector<16x1xf32> to vector<16x100xf32>
    %574 = vector.broadcast %572 : vector<1x100xf32> to vector<16x100xf32>
    %575 = arith.mulf %573, %574 : vector<16x100xf32>
    %576 = arith.addf %571, %575 : vector<16x100xf32>
    %577 = vector.extract_strided_slice %1 {offsets = [11, 0], sizes = [1, 100], strides = [1, 1]} : vector<12x102xf32> to vector<1x100xf32>
    %578 = vector.broadcast %15 : vector<16x1xf32> to vector<16x100xf32>
    %579 = vector.broadcast %577 : vector<1x100xf32> to vector<16x100xf32>
    %580 = arith.mulf %578, %579 : vector<16x100xf32>
    %581 = arith.addf %576, %580 : vector<16x100xf32>
    %582 = vector.extract_strided_slice %1 {offsets = [11, 1], sizes = [1, 100], strides = [1, 1]} : vector<12x102xf32> to vector<1x100xf32>
    %583 = vector.broadcast %16 : vector<16x1xf32> to vector<16x100xf32>
    %584 = vector.broadcast %582 : vector<1x100xf32> to vector<16x100xf32>
    %585 = arith.mulf %583, %584 : vector<16x100xf32>
    %586 = arith.addf %581, %585 : vector<16x100xf32>
    %587 = vector.extract_strided_slice %1 {offsets = [11, 2], sizes = [1, 100], strides = [1, 1]} : vector<12x102xf32> to vector<1x100xf32>
    %588 = vector.broadcast %17 : vector<16x1xf32> to vector<16x100xf32>
    %589 = vector.broadcast %587 : vector<1x100xf32> to vector<16x100xf32>
    %590 = arith.mulf %588, %589 : vector<16x100xf32>
    %591 = arith.addf %586, %590 : vector<16x100xf32>
    %592 = vector.broadcast %3 : vector<16x1xf32> to vector<16x100xf32>
    %593 = arith.addf %591, %592 : vector<16x100xf32>
    %cst_65 = arith.constant 0.000000e+00 : f32
    %594 = vector.broadcast %cst_65 : f32 to vector<16x100xf32>
    %595 = arith.maximumf %593, %594 : vector<16x100xf32>
    %cst_66 = arith.constant 0.000000e+00 : f32
    %596 = vector.broadcast %cst_66 : f32 to vector<16x100xf32>
    %597 = vector.extract_strided_slice %1 {offsets = [10, 0], sizes = [1, 100], strides = [1, 1]} : vector<12x102xf32> to vector<1x100xf32>
    %598 = vector.broadcast %9 : vector<16x1xf32> to vector<16x100xf32>
    %599 = vector.broadcast %597 : vector<1x100xf32> to vector<16x100xf32>
    %600 = arith.mulf %598, %599 : vector<16x100xf32>
    %601 = arith.addf %596, %600 : vector<16x100xf32>
    %602 = vector.extract_strided_slice %1 {offsets = [10, 1], sizes = [1, 100], strides = [1, 1]} : vector<12x102xf32> to vector<1x100xf32>
    %603 = vector.broadcast %10 : vector<16x1xf32> to vector<16x100xf32>
    %604 = vector.broadcast %602 : vector<1x100xf32> to vector<16x100xf32>
    %605 = arith.mulf %603, %604 : vector<16x100xf32>
    %606 = arith.addf %601, %605 : vector<16x100xf32>
    %607 = vector.extract_strided_slice %1 {offsets = [10, 2], sizes = [1, 100], strides = [1, 1]} : vector<12x102xf32> to vector<1x100xf32>
    %608 = vector.broadcast %11 : vector<16x1xf32> to vector<16x100xf32>
    %609 = vector.broadcast %607 : vector<1x100xf32> to vector<16x100xf32>
    %610 = arith.mulf %608, %609 : vector<16x100xf32>
    %611 = arith.addf %606, %610 : vector<16x100xf32>
    %612 = vector.extract_strided_slice %1 {offsets = [11, 0], sizes = [1, 100], strides = [1, 1]} : vector<12x102xf32> to vector<1x100xf32>
    %613 = vector.broadcast %12 : vector<16x1xf32> to vector<16x100xf32>
    %614 = vector.broadcast %612 : vector<1x100xf32> to vector<16x100xf32>
    %615 = arith.mulf %613, %614 : vector<16x100xf32>
    %616 = arith.addf %611, %615 : vector<16x100xf32>
    %617 = vector.extract_strided_slice %1 {offsets = [11, 1], sizes = [1, 100], strides = [1, 1]} : vector<12x102xf32> to vector<1x100xf32>
    %618 = vector.broadcast %13 : vector<16x1xf32> to vector<16x100xf32>
    %619 = vector.broadcast %617 : vector<1x100xf32> to vector<16x100xf32>
    %620 = arith.mulf %618, %619 : vector<16x100xf32>
    %621 = arith.addf %616, %620 : vector<16x100xf32>
    %622 = vector.extract_strided_slice %1 {offsets = [11, 2], sizes = [1, 100], strides = [1, 1]} : vector<12x102xf32> to vector<1x100xf32>
    %623 = vector.broadcast %14 : vector<16x1xf32> to vector<16x100xf32>
    %624 = vector.broadcast %622 : vector<1x100xf32> to vector<16x100xf32>
    %625 = arith.mulf %623, %624 : vector<16x100xf32>
    %626 = arith.addf %621, %625 : vector<16x100xf32>
    %627 = vector.broadcast %3 : vector<16x1xf32> to vector<16x100xf32>
    %628 = arith.addf %626, %627 : vector<16x100xf32>
    %cst_67 = arith.constant 0.000000e+00 : f32
    %629 = vector.broadcast %cst_67 : f32 to vector<16x100xf32>
    %630 = arith.maximumf %628, %629 : vector<16x100xf32>
    %631 = arith.maximumf %595, %630 : vector<16x100xf32>
    %cst_68 = arith.constant dense<0.000000e+00> : vector<16x52xf32>
    %632 = tpu.matmul %631, %5, %cst_68 {dimension_numbers = #tpu.dot_dimension_numbers<[1], [0], [0], [1], [0, 0, 1, 1], [], []>} : vector<16x100xf32>, vector<100x52xf32>, vector<16x52xf32> -> vector<16x52xf32>
    %cst_69 = arith.constant dense<0.000000e+00> : vector<16x52xf32>
    %633 = tpu.matmul %631, %6, %cst_69 {dimension_numbers = #tpu.dot_dimension_numbers<[1], [0], [0], [1], [0, 0, 1, 1], [], []>} : vector<16x100xf32>, vector<100x52xf32>, vector<16x52xf32> -> vector<16x52xf32>
    %634 = arith.maximumf %632, %633 : vector<16x52xf32>
    %635 = arith.truncf %634 : vector<16x52xf32> to vector<16x52xbf16>
    %cst_70 = arith.constant 0.000000e+00 : f32
    %636 = vector.broadcast %cst_70 : f32 to vector<32x50xf32>
    %637 = vector.extract_strided_slice %125 {offsets = [0, 0], sizes = [16, 50], strides = [1, 1]} : vector<16x52xbf16> to vector<16x50xbf16>
    %cst_71 = arith.constant dense<0.000000e+00> : vector<32x50xf32>
    %638 = tpu.matmul %25, %637, %cst_71 {dimension_numbers = #tpu.dot_dimension_numbers<[1], [0], [0], [1], [0, 0, 1, 1], [], []>} : vector<32x16xbf16>, vector<16x50xbf16>, vector<32x50xf32> -> vector<32x50xf32>
    %639 = arith.addf %636, %638 : vector<32x50xf32>
    %640 = vector.extract_strided_slice %125 {offsets = [0, 1], sizes = [16, 50], strides = [1, 1]} : vector<16x52xbf16> to vector<16x50xbf16>
    %cst_72 = arith.constant dense<0.000000e+00> : vector<32x50xf32>
    %641 = tpu.matmul %27, %640, %cst_72 {dimension_numbers = #tpu.dot_dimension_numbers<[1], [0], [0], [1], [0, 0, 1, 1], [], []>} : vector<32x16xbf16>, vector<16x50xbf16>, vector<32x50xf32> -> vector<32x50xf32>
    %642 = arith.addf %639, %641 : vector<32x50xf32>
    %643 = vector.extract_strided_slice %125 {offsets = [0, 2], sizes = [16, 50], strides = [1, 1]} : vector<16x52xbf16> to vector<16x50xbf16>
    %cst_73 = arith.constant dense<0.000000e+00> : vector<32x50xf32>
    %644 = tpu.matmul %29, %643, %cst_73 {dimension_numbers = #tpu.dot_dimension_numbers<[1], [0], [0], [1], [0, 0, 1, 1], [], []>} : vector<32x16xbf16>, vector<16x50xbf16>, vector<32x50xf32> -> vector<32x50xf32>
    %645 = arith.addf %642, %644 : vector<32x50xf32>
    %646 = vector.extract_strided_slice %230 {offsets = [0, 0], sizes = [16, 50], strides = [1, 1]} : vector<16x52xbf16> to vector<16x50xbf16>
    %cst_74 = arith.constant dense<0.000000e+00> : vector<32x50xf32>
    %647 = tpu.matmul %31, %646, %cst_74 {dimension_numbers = #tpu.dot_dimension_numbers<[1], [0], [0], [1], [0, 0, 1, 1], [], []>} : vector<32x16xbf16>, vector<16x50xbf16>, vector<32x50xf32> -> vector<32x50xf32>
    %648 = arith.addf %645, %647 : vector<32x50xf32>
    %649 = vector.extract_strided_slice %230 {offsets = [0, 1], sizes = [16, 50], strides = [1, 1]} : vector<16x52xbf16> to vector<16x50xbf16>
    %cst_75 = arith.constant dense<0.000000e+00> : vector<32x50xf32>
    %650 = tpu.matmul %33, %649, %cst_75 {dimension_numbers = #tpu.dot_dimension_numbers<[1], [0], [0], [1], [0, 0, 1, 1], [], []>} : vector<32x16xbf16>, vector<16x50xbf16>, vector<32x50xf32> -> vector<32x50xf32>
    %651 = arith.addf %648, %650 : vector<32x50xf32>
    %652 = vector.extract_strided_slice %230 {offsets = [0, 2], sizes = [16, 50], strides = [1, 1]} : vector<16x52xbf16> to vector<16x50xbf16>
    %cst_76 = arith.constant dense<0.000000e+00> : vector<32x50xf32>
    %653 = tpu.matmul %35, %652, %cst_76 {dimension_numbers = #tpu.dot_dimension_numbers<[1], [0], [0], [1], [0, 0, 1, 1], [], []>} : vector<32x16xbf16>, vector<16x50xbf16>, vector<32x50xf32> -> vector<32x50xf32>
    %654 = arith.addf %651, %653 : vector<32x50xf32>
    %655 = vector.broadcast %4 : vector<32x1xf32> to vector<32x50xf32>
    %656 = arith.addf %654, %655 : vector<32x50xf32>
    %cst_77 = arith.constant 0.000000e+00 : f32
    %657 = vector.broadcast %cst_77 : f32 to vector<32x50xf32>
    %658 = arith.maximumf %656, %657 : vector<32x50xf32>
    %cst_78 = arith.constant 0.000000e+00 : f32
    %659 = vector.broadcast %cst_78 : f32 to vector<32x50xf32>
    %660 = vector.extract_strided_slice %125 {offsets = [0, 0], sizes = [16, 50], strides = [1, 1]} : vector<16x52xbf16> to vector<16x50xbf16>
    %cst_79 = arith.constant dense<0.000000e+00> : vector<32x50xf32>
    %661 = tpu.matmul %19, %660, %cst_79 {dimension_numbers = #tpu.dot_dimension_numbers<[1], [0], [0], [1], [0, 0, 1, 1], [], []>} : vector<32x16xbf16>, vector<16x50xbf16>, vector<32x50xf32> -> vector<32x50xf32>
    %662 = arith.addf %659, %661 : vector<32x50xf32>
    %663 = vector.extract_strided_slice %125 {offsets = [0, 1], sizes = [16, 50], strides = [1, 1]} : vector<16x52xbf16> to vector<16x50xbf16>
    %cst_80 = arith.constant dense<0.000000e+00> : vector<32x50xf32>
    %664 = tpu.matmul %21, %663, %cst_80 {dimension_numbers = #tpu.dot_dimension_numbers<[1], [0], [0], [1], [0, 0, 1, 1], [], []>} : vector<32x16xbf16>, vector<16x50xbf16>, vector<32x50xf32> -> vector<32x50xf32>
    %665 = arith.addf %662, %664 : vector<32x50xf32>
    %666 = vector.extract_strided_slice %125 {offsets = [0, 2], sizes = [16, 50], strides = [1, 1]} : vector<16x52xbf16> to vector<16x50xbf16>
    %cst_81 = arith.constant dense<0.000000e+00> : vector<32x50xf32>
    %667 = tpu.matmul %23, %666, %cst_81 {dimension_numbers = #tpu.dot_dimension_numbers<[1], [0], [0], [1], [0, 0, 1, 1], [], []>} : vector<32x16xbf16>, vector<16x50xbf16>, vector<32x50xf32> -> vector<32x50xf32>
    %668 = arith.addf %665, %667 : vector<32x50xf32>
    %669 = vector.extract_strided_slice %230 {offsets = [0, 0], sizes = [16, 50], strides = [1, 1]} : vector<16x52xbf16> to vector<16x50xbf16>
    %cst_82 = arith.constant dense<0.000000e+00> : vector<32x50xf32>
    %670 = tpu.matmul %25, %669, %cst_82 {dimension_numbers = #tpu.dot_dimension_numbers<[1], [0], [0], [1], [0, 0, 1, 1], [], []>} : vector<32x16xbf16>, vector<16x50xbf16>, vector<32x50xf32> -> vector<32x50xf32>
    %671 = arith.addf %668, %670 : vector<32x50xf32>
    %672 = vector.extract_strided_slice %230 {offsets = [0, 1], sizes = [16, 50], strides = [1, 1]} : vector<16x52xbf16> to vector<16x50xbf16>
    %cst_83 = arith.constant dense<0.000000e+00> : vector<32x50xf32>
    %673 = tpu.matmul %27, %672, %cst_83 {dimension_numbers = #tpu.dot_dimension_numbers<[1], [0], [0], [1], [0, 0, 1, 1], [], []>} : vector<32x16xbf16>, vector<16x50xbf16>, vector<32x50xf32> -> vector<32x50xf32>
    %674 = arith.addf %671, %673 : vector<32x50xf32>
    %675 = vector.extract_strided_slice %230 {offsets = [0, 2], sizes = [16, 50], strides = [1, 1]} : vector<16x52xbf16> to vector<16x50xbf16>
    %cst_84 = arith.constant dense<0.000000e+00> : vector<32x50xf32>
    %676 = tpu.matmul %29, %675, %cst_84 {dimension_numbers = #tpu.dot_dimension_numbers<[1], [0], [0], [1], [0, 0, 1, 1], [], []>} : vector<32x16xbf16>, vector<16x50xbf16>, vector<32x50xf32> -> vector<32x50xf32>
    %677 = arith.addf %674, %676 : vector<32x50xf32>
    %678 = vector.extract_strided_slice %335 {offsets = [0, 0], sizes = [16, 50], strides = [1, 1]} : vector<16x52xbf16> to vector<16x50xbf16>
    %cst_85 = arith.constant dense<0.000000e+00> : vector<32x50xf32>
    %679 = tpu.matmul %31, %678, %cst_85 {dimension_numbers = #tpu.dot_dimension_numbers<[1], [0], [0], [1], [0, 0, 1, 1], [], []>} : vector<32x16xbf16>, vector<16x50xbf16>, vector<32x50xf32> -> vector<32x50xf32>
    %680 = arith.addf %677, %679 : vector<32x50xf32>
    %681 = vector.extract_strided_slice %335 {offsets = [0, 1], sizes = [16, 50], strides = [1, 1]} : vector<16x52xbf16> to vector<16x50xbf16>
    %cst_86 = arith.constant dense<0.000000e+00> : vector<32x50xf32>
    %682 = tpu.matmul %33, %681, %cst_86 {dimension_numbers = #tpu.dot_dimension_numbers<[1], [0], [0], [1], [0, 0, 1, 1], [], []>} : vector<32x16xbf16>, vector<16x50xbf16>, vector<32x50xf32> -> vector<32x50xf32>
    %683 = arith.addf %680, %682 : vector<32x50xf32>
    %684 = vector.extract_strided_slice %335 {offsets = [0, 2], sizes = [16, 50], strides = [1, 1]} : vector<16x52xbf16> to vector<16x50xbf16>
    %cst_87 = arith.constant dense<0.000000e+00> : vector<32x50xf32>
    %685 = tpu.matmul %35, %684, %cst_87 {dimension_numbers = #tpu.dot_dimension_numbers<[1], [0], [0], [1], [0, 0, 1, 1], [], []>} : vector<32x16xbf16>, vector<16x50xbf16>, vector<32x50xf32> -> vector<32x50xf32>
    %686 = arith.addf %683, %685 : vector<32x50xf32>
    %687 = vector.broadcast %4 : vector<32x1xf32> to vector<32x50xf32>
    %688 = arith.addf %686, %687 : vector<32x50xf32>
    %cst_88 = arith.constant 0.000000e+00 : f32
    %689 = vector.broadcast %cst_88 : f32 to vector<32x50xf32>
    %690 = arith.maximumf %688, %689 : vector<32x50xf32>
    %691 = arith.maximumf %658, %690 : vector<32x50xf32>
    %cst_89 = arith.constant dense<0.000000e+00> : vector<32x25xf32>
    %692 = tpu.matmul %691, %7, %cst_89 {dimension_numbers = #tpu.dot_dimension_numbers<[1], [0], [0], [1], [0, 0, 1, 1], [], []>} : vector<32x50xf32>, vector<50x25xf32>, vector<32x25xf32> -> vector<32x25xf32>
    %cst_90 = arith.constant dense<0.000000e+00> : vector<32x25xf32>
    %693 = tpu.matmul %691, %8, %cst_90 {dimension_numbers = #tpu.dot_dimension_numbers<[1], [0], [0], [1], [0, 0, 1, 1], [], []>} : vector<32x50xf32>, vector<50x25xf32>, vector<32x25xf32> -> vector<32x25xf32>
    %694 = arith.maximumf %692, %693 : vector<32x25xf32>
    %c0_91 = arith.constant 0 : index
    %c0_92 = arith.constant 0 : index
    %c0_93 = arith.constant 0 : index
    %c0_94 = arith.constant 0 : index
    %695 = vector.load %arg10[%c0_91, %c0_92, %c0_93, %c0_94] : memref<1x3x32x25xf32, #tpu.memory_space<vmem>>, vector<1x1x32x25xf32>
    %696 = vector.shape_cast %695 : vector<1x1x32x25xf32> to vector<32x25xf32>
    %697 = vector.shape_cast %694 : vector<32x25xf32> to vector<1x1x32x25xf32>
    tpu.vector_store %arg10[%c0_91, %c0_92, %c0_93, %c0_94], %697 {strides = array<i32>} : memref<1x3x32x25xf32, #tpu.memory_space<vmem>>, vector<1x1x32x25xf32>,
    %cst_95 = arith.constant 0.000000e+00 : f32
    %698 = vector.broadcast %cst_95 : f32 to vector<32x50xf32>
    %699 = vector.extract_strided_slice %230 {offsets = [0, 0], sizes = [16, 50], strides = [1, 1]} : vector<16x52xbf16> to vector<16x50xbf16>
    %cst_96 = arith.constant dense<0.000000e+00> : vector<32x50xf32>
    %700 = tpu.matmul %19, %699, %cst_96 {dimension_numbers = #tpu.dot_dimension_numbers<[1], [0], [0], [1], [0, 0, 1, 1], [], []>} : vector<32x16xbf16>, vector<16x50xbf16>, vector<32x50xf32> -> vector<32x50xf32>
    %701 = arith.addf %698, %700 : vector<32x50xf32>
    %702 = vector.extract_strided_slice %230 {offsets = [0, 1], sizes = [16, 50], strides = [1, 1]} : vector<16x52xbf16> to vector<16x50xbf16>
    %cst_97 = arith.constant dense<0.000000e+00> : vector<32x50xf32>
    %703 = tpu.matmul %21, %702, %cst_97 {dimension_numbers = #tpu.dot_dimension_numbers<[1], [0], [0], [1], [0, 0, 1, 1], [], []>} : vector<32x16xbf16>, vector<16x50xbf16>, vector<32x50xf32> -> vector<32x50xf32>
    %704 = arith.addf %701, %703 : vector<32x50xf32>
    %705 = vector.extract_strided_slice %230 {offsets = [0, 2], sizes = [16, 50], strides = [1, 1]} : vector<16x52xbf16> to vector<16x50xbf16>
    %cst_98 = arith.constant dense<0.000000e+00> : vector<32x50xf32>
    %706 = tpu.matmul %23, %705, %cst_98 {dimension_numbers = #tpu.dot_dimension_numbers<[1], [0], [0], [1], [0, 0, 1, 1], [], []>} : vector<32x16xbf16>, vector<16x50xbf16>, vector<32x50xf32> -> vector<32x50xf32>
    %707 = arith.addf %704, %706 : vector<32x50xf32>
    %708 = vector.extract_strided_slice %335 {offsets = [0, 0], sizes = [16, 50], strides = [1, 1]} : vector<16x52xbf16> to vector<16x50xbf16>
    %cst_99 = arith.constant dense<0.000000e+00> : vector<32x50xf32>
    %709 = tpu.matmul %25, %708, %cst_99 {dimension_numbers = #tpu.dot_dimension_numbers<[1], [0], [0], [1], [0, 0, 1, 1], [], []>} : vector<32x16xbf16>, vector<16x50xbf16>, vector<32x50xf32> -> vector<32x50xf32>
    %710 = arith.addf %707, %709 : vector<32x50xf32>
    %711 = vector.extract_strided_slice %335 {offsets = [0, 1], sizes = [16, 50], strides = [1, 1]} : vector<16x52xbf16> to vector<16x50xbf16>
    %cst_100 = arith.constant dense<0.000000e+00> : vector<32x50xf32>
    %712 = tpu.matmul %27, %711, %cst_100 {dimension_numbers = #tpu.dot_dimension_numbers<[1], [0], [0], [1], [0, 0, 1, 1], [], []>} : vector<32x16xbf16>, vector<16x50xbf16>, vector<32x50xf32> -> vector<32x50xf32>
    %713 = arith.addf %710, %712 : vector<32x50xf32>
    %714 = vector.extract_strided_slice %335 {offsets = [0, 2], sizes = [16, 50], strides = [1, 1]} : vector<16x52xbf16> to vector<16x50xbf16>
    %cst_101 = arith.constant dense<0.000000e+00> : vector<32x50xf32>
    %715 = tpu.matmul %29, %714, %cst_101 {dimension_numbers = #tpu.dot_dimension_numbers<[1], [0], [0], [1], [0, 0, 1, 1], [], []>} : vector<32x16xbf16>, vector<16x50xbf16>, vector<32x50xf32> -> vector<32x50xf32>
    %716 = arith.addf %713, %715 : vector<32x50xf32>
    %717 = vector.extract_strided_slice %440 {offsets = [0, 0], sizes = [16, 50], strides = [1, 1]} : vector<16x52xbf16> to vector<16x50xbf16>
    %cst_102 = arith.constant dense<0.000000e+00> : vector<32x50xf32>
    %718 = tpu.matmul %31, %717, %cst_102 {dimension_numbers = #tpu.dot_dimension_numbers<[1], [0], [0], [1], [0, 0, 1, 1], [], []>} : vector<32x16xbf16>, vector<16x50xbf16>, vector<32x50xf32> -> vector<32x50xf32>
    %719 = arith.addf %716, %718 : vector<32x50xf32>
    %720 = vector.extract_strided_slice %440 {offsets = [0, 1], sizes = [16, 50], strides = [1, 1]} : vector<16x52xbf16> to vector<16x50xbf16>
    %cst_103 = arith.constant dense<0.000000e+00> : vector<32x50xf32>
    %721 = tpu.matmul %33, %720, %cst_103 {dimension_numbers = #tpu.dot_dimension_numbers<[1], [0], [0], [1], [0, 0, 1, 1], [], []>} : vector<32x16xbf16>, vector<16x50xbf16>, vector<32x50xf32> -> vector<32x50xf32>
    %722 = arith.addf %719, %721 : vector<32x50xf32>
    %723 = vector.extract_strided_slice %440 {offsets = [0, 2], sizes = [16, 50], strides = [1, 1]} : vector<16x52xbf16> to vector<16x50xbf16>
    %cst_104 = arith.constant dense<0.000000e+00> : vector<32x50xf32>
    %724 = tpu.matmul %35, %723, %cst_104 {dimension_numbers = #tpu.dot_dimension_numbers<[1], [0], [0], [1], [0, 0, 1, 1], [], []>} : vector<32x16xbf16>, vector<16x50xbf16>, vector<32x50xf32> -> vector<32x50xf32>
    %725 = arith.addf %722, %724 : vector<32x50xf32>
    %726 = vector.broadcast %4 : vector<32x1xf32> to vector<32x50xf32>
    %727 = arith.addf %725, %726 : vector<32x50xf32>
    %cst_105 = arith.constant 0.000000e+00 : f32
    %728 = vector.broadcast %cst_105 : f32 to vector<32x50xf32>
    %729 = arith.maximumf %727, %728 : vector<32x50xf32>
    %cst_106 = arith.constant 0.000000e+00 : f32
    %730 = vector.broadcast %cst_106 : f32 to vector<32x50xf32>
    %731 = vector.extract_strided_slice %335 {offsets = [0, 0], sizes = [16, 50], strides = [1, 1]} : vector<16x52xbf16> to vector<16x50xbf16>
    %cst_107 = arith.constant dense<0.000000e+00> : vector<32x50xf32>
    %732 = tpu.matmul %19, %731, %cst_107 {dimension_numbers = #tpu.dot_dimension_numbers<[1], [0], [0], [1], [0, 0, 1, 1], [], []>} : vector<32x16xbf16>, vector<16x50xbf16>, vector<32x50xf32> -> vector<32x50xf32>
    %733 = arith.addf %730, %732 : vector<32x50xf32>
    %734 = vector.extract_strided_slice %335 {offsets = [0, 1], sizes = [16, 50], strides = [1, 1]} : vector<16x52xbf16> to vector<16x50xbf16>
    %cst_108 = arith.constant dense<0.000000e+00> : vector<32x50xf32>
    %735 = tpu.matmul %21, %734, %cst_108 {dimension_numbers = #tpu.dot_dimension_numbers<[1], [0], [0], [1], [0, 0, 1, 1], [], []>} : vector<32x16xbf16>, vector<16x50xbf16>, vector<32x50xf32> -> vector<32x50xf32>
    %736 = arith.addf %733, %735 : vector<32x50xf32>
    %737 = vector.extract_strided_slice %335 {offsets = [0, 2], sizes = [16, 50], strides = [1, 1]} : vector<16x52xbf16> to vector<16x50xbf16>
    %cst_109 = arith.constant dense<0.000000e+00> : vector<32x50xf32>
    %738 = tpu.matmul %23, %737, %cst_109 {dimension_numbers = #tpu.dot_dimension_numbers<[1], [0], [0], [1], [0, 0, 1, 1], [], []>} : vector<32x16xbf16>, vector<16x50xbf16>, vector<32x50xf32> -> vector<32x50xf32>
    %739 = arith.addf %736, %738 : vector<32x50xf32>
    %740 = vector.extract_strided_slice %440 {offsets = [0, 0], sizes = [16, 50], strides = [1, 1]} : vector<16x52xbf16> to vector<16x50xbf16>
    %cst_110 = arith.constant dense<0.000000e+00> : vector<32x50xf32>
    %741 = tpu.matmul %25, %740, %cst_110 {dimension_numbers = #tpu.dot_dimension_numbers<[1], [0], [0], [1], [0, 0, 1, 1], [], []>} : vector<32x16xbf16>, vector<16x50xbf16>, vector<32x50xf32> -> vector<32x50xf32>
    %742 = arith.addf %739, %741 : vector<32x50xf32>
    %743 = vector.extract_strided_slice %440 {offsets = [0, 1], sizes = [16, 50], strides = [1, 1]} : vector<16x52xbf16> to vector<16x50xbf16>
    %cst_111 = arith.constant dense<0.000000e+00> : vector<32x50xf32>
    %744 = tpu.matmul %27, %743, %cst_111 {dimension_numbers = #tpu.dot_dimension_numbers<[1], [0], [0], [1], [0, 0, 1, 1], [], []>} : vector<32x16xbf16>, vector<16x50xbf16>, vector<32x50xf32> -> vector<32x50xf32>
    %745 = arith.addf %742, %744 : vector<32x50xf32>
    %746 = vector.extract_strided_slice %440 {offsets = [0, 2], sizes = [16, 50], strides = [1, 1]} : vector<16x52xbf16> to vector<16x50xbf16>
    %cst_112 = arith.constant dense<0.000000e+00> : vector<32x50xf32>
    %747 = tpu.matmul %29, %746, %cst_112 {dimension_numbers = #tpu.dot_dimension_numbers<[1], [0], [0], [1], [0, 0, 1, 1], [], []>} : vector<32x16xbf16>, vector<16x50xbf16>, vector<32x50xf32> -> vector<32x50xf32>
    %748 = arith.addf %745, %747 : vector<32x50xf32>
    %749 = vector.extract_strided_slice %545 {offsets = [0, 0], sizes = [16, 50], strides = [1, 1]} : vector<16x52xbf16> to vector<16x50xbf16>
    %cst_113 = arith.constant dense<0.000000e+00> : vector<32x50xf32>
    %750 = tpu.matmul %31, %749, %cst_113 {dimension_numbers = #tpu.dot_dimension_numbers<[1], [0], [0], [1], [0, 0, 1, 1], [], []>} : vector<32x16xbf16>, vector<16x50xbf16>, vector<32x50xf32> -> vector<32x50xf32>
    %751 = arith.addf %748, %750 : vector<32x50xf32>
    %752 = vector.extract_strided_slice %545 {offsets = [0, 1], sizes = [16, 50], strides = [1, 1]} : vector<16x52xbf16> to vector<16x50xbf16>
    %cst_114 = arith.constant dense<0.000000e+00> : vector<32x50xf32>
    %753 = tpu.matmul %33, %752, %cst_114 {dimension_numbers = #tpu.dot_dimension_numbers<[1], [0], [0], [1], [0, 0, 1, 1], [], []>} : vector<32x16xbf16>, vector<16x50xbf16>, vector<32x50xf32> -> vector<32x50xf32>
    %754 = arith.addf %751, %753 : vector<32x50xf32>
    %755 = vector.extract_strided_slice %545 {offsets = [0, 2], sizes = [16, 50], strides = [1, 1]} : vector<16x52xbf16> to vector<16x50xbf16>
    %cst_115 = arith.constant dense<0.000000e+00> : vector<32x50xf32>
    %756 = tpu.matmul %35, %755, %cst_115 {dimension_numbers = #tpu.dot_dimension_numbers<[1], [0], [0], [1], [0, 0, 1, 1], [], []>} : vector<32x16xbf16>, vector<16x50xbf16>, vector<32x50xf32> -> vector<32x50xf32>
    %757 = arith.addf %754, %756 : vector<32x50xf32>
    %758 = vector.broadcast %4 : vector<32x1xf32> to vector<32x50xf32>
    %759 = arith.addf %757, %758 : vector<32x50xf32>
    %cst_116 = arith.constant 0.000000e+00 : f32
    %760 = vector.broadcast %cst_116 : f32 to vector<32x50xf32>
    %761 = arith.maximumf %759, %760 : vector<32x50xf32>
    %762 = arith.maximumf %729, %761 : vector<32x50xf32>
    %cst_117 = arith.constant dense<0.000000e+00> : vector<32x25xf32>
    %763 = tpu.matmul %762, %7, %cst_117 {dimension_numbers = #tpu.dot_dimension_numbers<[1], [0], [0], [1], [0, 0, 1, 1], [], []>} : vector<32x50xf32>, vector<50x25xf32>, vector<32x25xf32> -> vector<32x25xf32>
    %cst_118 = arith.constant dense<0.000000e+00> : vector<32x25xf32>
    %764 = tpu.matmul %762, %8, %cst_118 {dimension_numbers = #tpu.dot_dimension_numbers<[1], [0], [0], [1], [0, 0, 1, 1], [], []>} : vector<32x50xf32>, vector<50x25xf32>, vector<32x25xf32> -> vector<32x25xf32>
    %765 = arith.maximumf %763, %764 : vector<32x25xf32>
    %c0_119 = arith.constant 0 : index
    %c1_120 = arith.constant 1 : index
    %c0_121 = arith.constant 0 : index
    %c0_122 = arith.constant 0 : index
    %766 = vector.load %arg10[%c0_119, %c1_120, %c0_121, %c0_122] : memref<1x3x32x25xf32, #tpu.memory_space<vmem>>, vector<1x1x32x25xf32>
    %767 = vector.shape_cast %766 : vector<1x1x32x25xf32> to vector<32x25xf32>
    %768 = vector.shape_cast %765 : vector<32x25xf32> to vector<1x1x32x25xf32>
    tpu.vector_store %arg10[%c0_119, %c1_120, %c0_121, %c0_122], %768 {strides = array<i32>} : memref<1x3x32x25xf32, #tpu.memory_space<vmem>>, vector<1x1x32x25xf32>,
    %cst_123 = arith.constant 0.000000e+00 : f32
    %769 = vector.broadcast %cst_123 : f32 to vector<32x50xf32>
    %770 = vector.extract_strided_slice %440 {offsets = [0, 0], sizes = [16, 50], strides = [1, 1]} : vector<16x52xbf16> to vector<16x50xbf16>
    %cst_124 = arith.constant dense<0.000000e+00> : vector<32x50xf32>
    %771 = tpu.matmul %19, %770, %cst_124 {dimension_numbers = #tpu.dot_dimension_numbers<[1], [0], [0], [1], [0, 0, 1, 1], [], []>} : vector<32x16xbf16>, vector<16x50xbf16>, vector<32x50xf32> -> vector<32x50xf32>
    %772 = arith.addf %769, %771 : vector<32x50xf32>
    %773 = vector.extract_strided_slice %440 {offsets = [0, 1], sizes = [16, 50], strides = [1, 1]} : vector<16x52xbf16> to vector<16x50xbf16>
    %cst_125 = arith.constant dense<0.000000e+00> : vector<32x50xf32>
    %774 = tpu.matmul %21, %773, %cst_125 {dimension_numbers = #tpu.dot_dimension_numbers<[1], [0], [0], [1], [0, 0, 1, 1], [], []>} : vector<32x16xbf16>, vector<16x50xbf16>, vector<32x50xf32> -> vector<32x50xf32>
    %775 = arith.addf %772, %774 : vector<32x50xf32>
    %776 = vector.extract_strided_slice %440 {offsets = [0, 2], sizes = [16, 50], strides = [1, 1]} : vector<16x52xbf16> to vector<16x50xbf16>
    %cst_126 = arith.constant dense<0.000000e+00> : vector<32x50xf32>
    %777 = tpu.matmul %23, %776, %cst_126 {dimension_numbers = #tpu.dot_dimension_numbers<[1], [0], [0], [1], [0, 0, 1, 1], [], []>} : vector<32x16xbf16>, vector<16x50xbf16>, vector<32x50xf32> -> vector<32x50xf32>
    %778 = arith.addf %775, %777 : vector<32x50xf32>
    %779 = vector.extract_strided_slice %545 {offsets = [0, 0], sizes = [16, 50], strides = [1, 1]} : vector<16x52xbf16> to vector<16x50xbf16>
    %cst_127 = arith.constant dense<0.000000e+00> : vector<32x50xf32>
    %780 = tpu.matmul %25, %779, %cst_127 {dimension_numbers = #tpu.dot_dimension_numbers<[1], [0], [0], [1], [0, 0, 1, 1], [], []>} : vector<32x16xbf16>, vector<16x50xbf16>, vector<32x50xf32> -> vector<32x50xf32>
    %781 = arith.addf %778, %780 : vector<32x50xf32>
    %782 = vector.extract_strided_slice %545 {offsets = [0, 1], sizes = [16, 50], strides = [1, 1]} : vector<16x52xbf16> to vector<16x50xbf16>
    %cst_128 = arith.constant dense<0.000000e+00> : vector<32x50xf32>
    %783 = tpu.matmul %27, %782, %cst_128 {dimension_numbers = #tpu.dot_dimension_numbers<[1], [0], [0], [1], [0, 0, 1, 1], [], []>} : vector<32x16xbf16>, vector<16x50xbf16>, vector<32x50xf32> -> vector<32x50xf32>
    %784 = arith.addf %781, %783 : vector<32x50xf32>
    %785 = vector.extract_strided_slice %545 {offsets = [0, 2], sizes = [16, 50], strides = [1, 1]} : vector<16x52xbf16> to vector<16x50xbf16>
    %cst_129 = arith.constant dense<0.000000e+00> : vector<32x50xf32>
    %786 = tpu.matmul %29, %785, %cst_129 {dimension_numbers = #tpu.dot_dimension_numbers<[1], [0], [0], [1], [0, 0, 1, 1], [], []>} : vector<32x16xbf16>, vector<16x50xbf16>, vector<32x50xf32> -> vector<32x50xf32>
    %787 = arith.addf %784, %786 : vector<32x50xf32>
    %788 = vector.extract_strided_slice %635 {offsets = [0, 0], sizes = [16, 50], strides = [1, 1]} : vector<16x52xbf16> to vector<16x50xbf16>
    %cst_130 = arith.constant dense<0.000000e+00> : vector<32x50xf32>
    %789 = tpu.matmul %31, %788, %cst_130 {dimension_numbers = #tpu.dot_dimension_numbers<[1], [0], [0], [1], [0, 0, 1, 1], [], []>} : vector<32x16xbf16>, vector<16x50xbf16>, vector<32x50xf32> -> vector<32x50xf32>
    %790 = arith.addf %787, %789 : vector<32x50xf32>
    %791 = vector.extract_strided_slice %635 {offsets = [0, 1], sizes = [16, 50], strides = [1, 1]} : vector<16x52xbf16> to vector<16x50xbf16>
    %cst_131 = arith.constant dense<0.000000e+00> : vector<32x50xf32>
    %792 = tpu.matmul %33, %791, %cst_131 {dimension_numbers = #tpu.dot_dimension_numbers<[1], [0], [0], [1], [0, 0, 1, 1], [], []>} : vector<32x16xbf16>, vector<16x50xbf16>, vector<32x50xf32> -> vector<32x50xf32>
    %793 = arith.addf %790, %792 : vector<32x50xf32>
    %794 = vector.extract_strided_slice %635 {offsets = [0, 2], sizes = [16, 50], strides = [1, 1]} : vector<16x52xbf16> to vector<16x50xbf16>
    %cst_132 = arith.constant dense<0.000000e+00> : vector<32x50xf32>
    %795 = tpu.matmul %35, %794, %cst_132 {dimension_numbers = #tpu.dot_dimension_numbers<[1], [0], [0], [1], [0, 0, 1, 1], [], []>} : vector<32x16xbf16>, vector<16x50xbf16>, vector<32x50xf32> -> vector<32x50xf32>
    %796 = arith.addf %793, %795 : vector<32x50xf32>
    %797 = vector.broadcast %4 : vector<32x1xf32> to vector<32x50xf32>
    %798 = arith.addf %796, %797 : vector<32x50xf32>
    %cst_133 = arith.constant 0.000000e+00 : f32
    %799 = vector.broadcast %cst_133 : f32 to vector<32x50xf32>
    %800 = arith.maximumf %798, %799 : vector<32x50xf32>
    %cst_134 = arith.constant 0.000000e+00 : f32
    %801 = vector.broadcast %cst_134 : f32 to vector<32x50xf32>
    %802 = vector.extract_strided_slice %545 {offsets = [0, 0], sizes = [16, 50], strides = [1, 1]} : vector<16x52xbf16> to vector<16x50xbf16>
    %cst_135 = arith.constant dense<0.000000e+00> : vector<32x50xf32>
    %803 = tpu.matmul %19, %802, %cst_135 {dimension_numbers = #tpu.dot_dimension_numbers<[1], [0], [0], [1], [0, 0, 1, 1], [], []>} : vector<32x16xbf16>, vector<16x50xbf16>, vector<32x50xf32> -> vector<32x50xf32>
    %804 = arith.addf %801, %803 : vector<32x50xf32>
    %805 = vector.extract_strided_slice %545 {offsets = [0, 1], sizes = [16, 50], strides = [1, 1]} : vector<16x52xbf16> to vector<16x50xbf16>
    %cst_136 = arith.constant dense<0.000000e+00> : vector<32x50xf32>
    %806 = tpu.matmul %21, %805, %cst_136 {dimension_numbers = #tpu.dot_dimension_numbers<[1], [0], [0], [1], [0, 0, 1, 1], [], []>} : vector<32x16xbf16>, vector<16x50xbf16>, vector<32x50xf32> -> vector<32x50xf32>
    %807 = arith.addf %804, %806 : vector<32x50xf32>
    %808 = vector.extract_strided_slice %545 {offsets = [0, 2], sizes = [16, 50], strides = [1, 1]} : vector<16x52xbf16> to vector<16x50xbf16>
    %cst_137 = arith.constant dense<0.000000e+00> : vector<32x50xf32>
    %809 = tpu.matmul %23, %808, %cst_137 {dimension_numbers = #tpu.dot_dimension_numbers<[1], [0], [0], [1], [0, 0, 1, 1], [], []>} : vector<32x16xbf16>, vector<16x50xbf16>, vector<32x50xf32> -> vector<32x50xf32>
    %810 = arith.addf %807, %809 : vector<32x50xf32>
    %811 = vector.extract_strided_slice %635 {offsets = [0, 0], sizes = [16, 50], strides = [1, 1]} : vector<16x52xbf16> to vector<16x50xbf16>
    %cst_138 = arith.constant dense<0.000000e+00> : vector<32x50xf32>
    %812 = tpu.matmul %25, %811, %cst_138 {dimension_numbers = #tpu.dot_dimension_numbers<[1], [0], [0], [1], [0, 0, 1, 1], [], []>} : vector<32x16xbf16>, vector<16x50xbf16>, vector<32x50xf32> -> vector<32x50xf32>
    %813 = arith.addf %810, %812 : vector<32x50xf32>
    %814 = vector.extract_strided_slice %635 {offsets = [0, 1], sizes = [16, 50], strides = [1, 1]} : vector<16x52xbf16> to vector<16x50xbf16>
    %cst_139 = arith.constant dense<0.000000e+00> : vector<32x50xf32>
    %815 = tpu.matmul %27, %814, %cst_139 {dimension_numbers = #tpu.dot_dimension_numbers<[1], [0], [0], [1], [0, 0, 1, 1], [], []>} : vector<32x16xbf16>, vector<16x50xbf16>, vector<32x50xf32> -> vector<32x50xf32>
    %816 = arith.addf %813, %815 : vector<32x50xf32>
    %817 = vector.extract_strided_slice %635 {offsets = [0, 2], sizes = [16, 50], strides = [1, 1]} : vector<16x52xbf16> to vector<16x50xbf16>
    %cst_140 = arith.constant dense<0.000000e+00> : vector<32x50xf32>
    %818 = tpu.matmul %29, %817, %cst_140 {dimension_numbers = #tpu.dot_dimension_numbers<[1], [0], [0], [1], [0, 0, 1, 1], [], []>} : vector<32x16xbf16>, vector<16x50xbf16>, vector<32x50xf32> -> vector<32x50xf32>
    %819 = arith.addf %816, %818 : vector<32x50xf32>
    %820 = vector.broadcast %4 : vector<32x1xf32> to vector<32x50xf32>
    %821 = arith.addf %819, %820 : vector<32x50xf32>
    %cst_141 = arith.constant 0.000000e+00 : f32
    %822 = vector.broadcast %cst_141 : f32 to vector<32x50xf32>
    %823 = arith.maximumf %821, %822 : vector<32x50xf32>
    %824 = arith.maximumf %800, %823 : vector<32x50xf32>
    %cst_142 = arith.constant dense<0.000000e+00> : vector<32x25xf32>
    %825 = tpu.matmul %824, %7, %cst_142 {dimension_numbers = #tpu.dot_dimension_numbers<[1], [0], [0], [1], [0, 0, 1, 1], [], []>} : vector<32x50xf32>, vector<50x25xf32>, vector<32x25xf32> -> vector<32x25xf32>
    %cst_143 = arith.constant dense<0.000000e+00> : vector<32x25xf32>
    %826 = tpu.matmul %824, %8, %cst_143 {dimension_numbers = #tpu.dot_dimension_numbers<[1], [0], [0], [1], [0, 0, 1, 1], [], []>} : vector<32x50xf32>, vector<50x25xf32>, vector<32x25xf32> -> vector<32x25xf32>
    %827 = arith.maximumf %825, %826 : vector<32x25xf32>
    %c0_144 = arith.constant 0 : index
    %c2_145 = arith.constant 2 : index
    %c0_146 = arith.constant 0 : index
    %c0_147 = arith.constant 0 : index
    %828 = vector.load %arg10[%c0_144, %c2_145, %c0_146, %c0_147] : memref<1x3x32x25xf32, #tpu.memory_space<vmem>>, vector<1x1x32x25xf32>
    %829 = vector.shape_cast %828 : vector<1x1x32x25xf32> to vector<32x25xf32>
    %830 = vector.shape_cast %827 : vector<32x25xf32> to vector<1x1x32x25xf32>
    tpu.vector_store %arg10[%c0_144, %c2_145, %c0_146, %c0_147], %830 {strides = array<i32>} : memref<1x3x32x25xf32, #tpu.memory_space<vmem>>, vector<1x1x32x25xf32>,
    return
  }
  func.func @transform_0(%arg0: i32) -> (i32, i32, i32) {
    %c0_i32 = arith.constant 0 : i32
    %c0_i32_0 = arith.constant 0 : i32
    %c0_i32_1 = arith.constant 0 : i32
    return %arg0, %c0_i32, %c0_i32_0 : i32, i32, i32
  }
  func.func @transform_1(%arg0: i32) -> (i32, i32) {
    %c0_i32 = arith.constant 0 : i32
    %c0_i32_0 = arith.constant 0 : i32
    %c0_i32_1 = arith.constant 0 : i32
    return %c0_i32, %c0_i32_0 : i32, i32
  }
  func.func @transform_2(%arg0: i32) -> (i32, i32) {
    %c0_i32 = arith.constant 0 : i32
    %c0_i32_0 = arith.constant 0 : i32
    %c0_i32_1 = arith.constant 0 : i32
    return %c0_i32, %c0_i32_0 : i32, i32
  }
  func.func @transform_3(%arg0: i32) -> (i32, i32, i32) {
    %c0_i32 = arith.constant 0 : i32
    %c0_i32_0 = arith.constant 0 : i32
    %c0_i32_1 = arith.constant 0 : i32
    %c0_i32_2 = arith.constant 0 : i32
    return %c0_i32, %c0_i32_0, %c0_i32_1 : i32, i32, i32
  }
  func.func @transform_4(%arg0: i32) -> (i32, i32) {
    %c0_i32 = arith.constant 0 : i32
    %c0_i32_0 = arith.constant 0 : i32
    %c0_i32_1 = arith.constant 0 : i32
    return %c0_i32, %c0_i32_0 : i32, i32
  }
  func.func @transform_5(%arg0: i32) -> (i32, i32) {
    %c0_i32 = arith.constant 0 : i32
    %c0_i32_0 = arith.constant 0 : i32
    %c0_i32_1 = arith.constant 0 : i32
    return %c0_i32, %c0_i32_0 : i32, i32
  }
  func.func @transform_6(%arg0: i32) -> (i32, i32) {
    %c0_i32 = arith.constant 0 : i32
    %c0_i32_0 = arith.constant 0 : i32
    %c0_i32_1 = arith.constant 0 : i32
    return %c0_i32, %c0_i32_0 : i32, i32
  }
  func.func @transform_7(%arg0: i32) -> (i32, i32) {
    %c0_i32 = arith.constant 0 : i32
    %c0_i32_0 = arith.constant 0 : i32
    %c0_i32_1 = arith.constant 0 : i32
    return %c0_i32, %c0_i32_0 : i32, i32
  }
  func.func @transform_8(%arg0: i32) -> (i32, i32) {
    %c0_i32 = arith.constant 0 : i32
    %c0_i32_0 = arith.constant 0 : i32
    %c0_i32_1 = arith.constant 0 : i32
    return %c0_i32, %c0_i32_0 : i32, i32
  }
  func.func @transform_9(%arg0: i32) -> (i32, i32, i32, i32) {
    %c0_i32 = arith.constant 0 : i32
    %c0_i32_0 = arith.constant 0 : i32
    %c0_i32_1 = arith.constant 0 : i32
    %c0_i32_2 = arith.constant 0 : i32
    return %arg0, %c0_i32, %c0_i32_0, %c0_i32_1 : i32, i32, i32, i32
  }
}

</mosaic_0001>

<bundles_post_ra>
// kernel: chord_classifier_forward.3
= control target key start
LH: loop header
LB: loop body
LE: loop exit
PB: predicated region body
PF: predicated region fallthrough
CT: control target
= control target key end

     0   :  { %v36_v27 = vlaneseq  ;;  %v2495_v35 = vmov 1983009808   ;;  %vm2497_vm0 = vmmov 0   ;;  %s3066_s0 = inlined_call_operand.vmem [shape: f32[2,2400], index: 0, kind: input, shape index: {}]   ;;  %s3067_s1 = inlined_call_operand.vmem [shape: bf16[2400,128], index: 1, kind: input, shape index: {}]   ;;  %s3068_s2 = inlined_call_operand.vmem [shape: f32[1,128], index: 2, kind: input, shape index: {}]   ;;  %s3069_s3 = inlined_call_operand.vmem [shape: bf16[128,128], index: 3, kind: input, shape index: {}]   ;;  %s3070_s4 = inlined_call_operand.vmem [shape: f32[1,128], index: 4, kind: input, shape index: {}]   ;;  %s3071_s5 = inlined_call_operand.hbm [shape: f32[2,128], index: 5, kind: output, shape index: {}]  }
   0x1   :  { %v2308_v0 = vld [vmem:[%s3067_s1 + $0x40] sm:$0xff]   ;;  %v2312_v4 = vld [vmem:[%s3067_s1 + $0x48] sm:$0xff]   ;;  %v2316_v8 = vld [vmem:[%s3067_s1 + $0x50] sm:$0xff]   ;;  %v34_v36 = vunpack.c.l.s4 %v2495_v35 }
   0x2   :  { %v2309_v1 = vld [vmem:[%s3067_s1] sm:$0xff]   ;;  %2054 = vmatprep.subr.bf16.mxu0 %v2308_v0  ;;  %v2313_v5 = vld [vmem:[%s3067_s1 + $0x8] sm:$0xff]   ;;  %v2317_v9 = vld [vmem:[%s3067_s1 + $0x10] sm:$0xff]   ;;  %v37_v32 = vshrl.u32 %v36_v27, 7 }
   0x3   :  { %v2310_v2 = vld [vmem:[%s3067_s1 + $0xc0] sm:$0xff]   ;;  %2055 = vmatpush3.bf16.msra.mxu0 %v2309_v1  ;;  %v2314_v6 = vld [vmem:[%s3067_s1 + $0xc8] sm:$0xff]   ;;  %v2318_v10 = vld [vmem:[%s3067_s1 + $0xd0] sm:$0xff]   ;;  %v35_v38 = vunpack.c.0.s8 %v34_v36 }
   0x4   :  { %v2311_v3 = vld [vmem:[%s3067_s1 + $0x80] sm:$0xff]   ;;  %2076 = vmatprep.subr.bf16.mxu1 %v2310_v2  ;;  %2056 = vmatprep.subr.bf16.mxu0 %v2312_v4  ;;  %v2315_v7 = vld [vmem:[%s3067_s1 + $0x88] sm:$0xff]   ;;  %v2319_v11 = vld [vmem:[%s3067_s1 + $0x90] sm:$0xff]  }
   0x5   :  { %2077 = vmatpush3.bf16.msra.mxu1 %v2311_v3  ;;  %v2320_v12 = vld [vmem:[%s3067_s1 + $0x58] sm:$0xff]   ;;  %v2324_v16 = vld [vmem:[%s3067_s1 + $0x60] sm:$0xff]   ;;  %v2328_v20 = vld [vmem:[%s3067_s1 + $0x68] sm:$0xff]   ;;  %v2634_v41 = vsub.s32 %v35_v38, %v37_v32 }
   0x6   :  { %2078 = vmatprep.subr.bf16.mxu1 %v2314_v6  ;;  %v2321_v13 = vld [vmem:[%s3067_s1 + $0x18] sm:$0xff]   ;;  %v2325_v17 = vld [vmem:[%s3067_s1 + $0x20] sm:$0xff]   ;;  %v2329_v21 = vld [vmem:[%s3067_s1 + $0x28] sm:$0xff]  }
   0x7   :  { %2057 = vmatpush3.bf16.msra.mxu0 %v2313_v5  ;;  %v2322_v14 = vld [vmem:[%s3067_s1 + $0xd8] sm:$0xff]   ;;  %v2326_v18 = vld [vmem:[%s3067_s1 + $0xe0] sm:$0xff]   ;;  %v2330_v22 = vld [vmem:[%s3067_s1 + $0xe8] sm:$0xff]  }
   0x8   :  { %2058 = vmatprep.subr.bf16.mxu0 %v2316_v8  ;;  %v2323_v15 = vld [vmem:[%s3067_s1 + $0x98] sm:$0xff]   ;;  %v2327_v19 = vld [vmem:[%s3067_s1 + $0xa0] sm:$0xff]   ;;  %v2331_v23 = vld [vmem:[%s3067_s1 + $0xa8] sm:$0xff]  }
   0x9   :  { %2079 = vmatpush3.bf16.msra.mxu1 %v2315_v7  ;;  %v2332_v24 = vld [vmem:[%s3067_s1 + $0x70] sm:$0xff]   ;;  %v2336_v29 = vld [vmem:[%s3067_s1 + $0x78] sm:$0xff]   ;;  %v22_v33 = vld [vmem:[%s3066_s0] sm:$0xff] }
   0xa   :  { %2080 = vmatprep.subr.bf16.mxu1 %v2318_v10  ;;  %v2333_v25 = vld [vmem:[%s3067_s1 + $0x30] sm:$0xff]   ;;  %v2337_v30 = vld [vmem:[%s3067_s1 + $0x38] sm:$0xff]   ;;  %v2340_v37 = vld [vmem:[%s3067_s1 + $0x140] sm:$0xff]   ;;  %v32_v39 = vcombine.high %v22_v33, %v22_v33  ;;  %v39_v42 = vrot.slane %v22_v33, %v2634_v41 }
   0xb   :  { %2059 = vmatpush3.bf16.msra.mxu0 %v2317_v9  ;;  %v2334_v26 = vld [vmem:[%s3067_s1 + $0xf0] sm:$0xff]   ;;  %v2338_v31 = vld [vmem:[%s3067_s1 + $0xf8] sm:$0xff]   ;;  %v2343_v40 = vld [vmem:[%s3067_s1 + $0x1c0] sm:$0xff]  }
   0xc   :  { %2060 = vmatprep.subr.bf16.mxu0 %v2320_v12  ;;  %v2335_v28 = vld [vmem:[%s3067_s1 + $0xb0] sm:$0xff]   ;;  %v2339_v34 = vld [vmem:[%s3067_s1 + $0xb8] sm:$0xff]   ;;  %v46_v43 = vrot.slane %v32_v39, %v2634_v41  ;;  %v47_v44 = vcombine.high %v39_v42, %v39_v42  ;;  %v2342_v46 = vld [vmem:[%s3067_s1 + $0x100] sm:$0xff]   ;;  %v135_v47 = vpack.c.bf16 %v39_v42, %v39_v42 }
   0xd   :  { %2081 = vmatpush3.bf16.msra.mxu1 %v2319_v11  ;;  %v2344_v49 = vld [vmem:[%s3067_s1 + $0x180] sm:$0xff]   ;;  %v2345_v52 = vld [vmem:[%s3067_s1 + $0x148] sm:$0xff]   ;;  %v2349_v56 = vld [vmem:[%s3067_s1 + $0x150] sm:$0xff]  }
   0xe   :  { %2082 = vmatprep.subr.bf16.mxu1 %v2322_v14  ;;  %v48_v45 = vcombine.high %v46_v43, %v46_v43  ;;  %v137_v48 = vpack.c.bf16 %v46_v43, %v46_v43  ;;  %v136_v50 = vpack.c.bf16 %v47_v44, %v47_v44  ;;  %v2347_v53 = vld [vmem:[%s3067_s1 + $0x1c8] sm:$0xff]   ;;  %v2351_v57 = vld [vmem:[%s3067_s1 + $0x1d0] sm:$0xff]   ;;  %v2353_v60 = vld [vmem:[%s3067_s1 + $0x158] sm:$0xff]  }
   0xf   :  { %2061 = vmatpush3.bf16.msra.mxu0 %v2321_v13  ;;  %v2346_v54 = vld [vmem:[%s3067_s1 + $0x108] sm:$0xff]   ;;  %v2350_v58 = vld [vmem:[%s3067_s1 + $0x110] sm:$0xff]   ;;  %v2355_v61 = vld [vmem:[%s3067_s1 + $0x1d8] sm:$0xff]  }
  0x10   :  { %2062 = vmatprep.subr.bf16.mxu0 %v2324_v16  ;;  %v138_v51 = vpack.c.bf16 %v48_v45, %v48_v45  ;;  %1397 = vmatprep.mubr.bf16.mxu0 %v136_v50  ;;  %v2348_v55 = vld [vmem:[%s3067_s1 + $0x188] sm:$0xff]   ;;  %v2352_v59 = vld [vmem:[%s3067_s1 + $0x190] sm:$0xff]   ;;  %v2354_v62 = vld [vmem:[%s3067_s1 + $0x118] sm:$0xff]  }
  0x11   :  { %2083 = vmatpush3.bf16.msra.mxu1 %v2323_v15  ;;  %v2356_v63 = vld [vmem:[%s3067_s1 + $0x198] sm:$0xff]   ;;  %v2357_v0 = vld [vmem:[%s3067_s1 + $0x160] sm:$0xff]   ;;  %v2361_v4 = vld [vmem:[%s3067_s1 + $0x168] sm:$0xff]  }
  0x12   :  { %2084 = vmatprep.subr.bf16.mxu1 %v2326_v18  ;;  %1437 = vmatprep.mubr.bf16.mxu1 %v138_v51  ;;  %v2359_v1 = vld [vmem:[%s3067_s1 + $0x1e0] sm:$0xff]   ;;  %v2363_v5 = vld [vmem:[%s3067_s1 + $0x1e8] sm:$0xff]   ;;  %v2365_v8 = vld [vmem:[%s3067_s1 + $0x170] sm:$0xff]  }
  0x13   :  { %2063 = vmatpush3.bf16.msra.mxu0 %v2325_v17  ;;  %v2358_v2 = vld [vmem:[%s3067_s1 + $0x120] sm:$0xff]   ;;  %v2362_v6 = vld [vmem:[%s3067_s1 + $0x128] sm:$0xff]   ;;  %v2367_v9 = vld [vmem:[%s3067_s1 + $0x1f0] sm:$0xff]  }
  0x14   :  { %2064 = vmatprep.subr.bf16.mxu0 %v2328_v20  ;;  %v2360_v3 = vld [vmem:[%s3067_s1 + $0x1a0] sm:$0xff]   ;;  %v2364_v7 = vld [vmem:[%s3067_s1 + $0x1a8] sm:$0xff]   ;;  %v2366_v11 = vld [vmem:[%s3067_s1 + $0x130] sm:$0xff]  }
  0x15   :  { %2085 = vmatpush3.bf16.msra.mxu1 %v2327_v19  ;;  %v23_v10 = vld [vmem:[%s3066_s0 + $0x8] sm:$0xff]  ;;  %v2368_v14 = vld [vmem:[%s3067_s1 + $0x1b0] sm:$0xff]   ;;  %v2369_v15 = vld [vmem:[%s3067_s1 + $0x178] sm:$0xff]  }
  0x16   :  { %2086 = vmatprep.subr.bf16.mxu1 %v2330_v22  ;;  %v56_v12 = vrot.slane %v23_v10, %v2634_v41  ;;  %v49_v13 = vcombine.high %v23_v10, %v23_v10  ;;  %v2371_v18 = vld [vmem:[%s3067_s1 + $0x1f8] sm:$0xff]   ;;  %v2379_v32 = vld [vmem:[%s3067_s1 + $0x208] sm:$0xff]   ;;  %v2384_v35 = vld [vmem:[%s3067_s1 + $0x2d0] sm:$0xff]  }
  0x17   :  { %2065 = vmatpush3.bf16.msra.mxu0 %v2329_v21  ;;  %v2370_v19 = vld [vmem:[%s3067_s1 + $0x138] sm:$0xff]   ;;  %v2381_v33 = vld [vmem:[%s3067_s1 + $0x288] sm:$0xff]   ;;  %v2383_v36 = vld [vmem:[%s3067_s1 + $0x210] sm:$0xff]  }
  0x18   :  { %2066 = vmatprep.subr.bf16.mxu0 %v2332_v24  ;;  %v64_v16 = vcombine.high %v56_v12, %v56_v12  ;;  %v63_v17 = vrot.slane %v49_v13, %v2634_v41  ;;  %v2372_v22 = vld [vmem:[%s3067_s1 + $0x1b8] sm:$0xff]   ;;  %v139_v27 = vpack.c.bf16 %v56_v12, %v56_v12  ;;  %v2390_v43 = vld [vmem:[%s3067_s1 + $0x260] sm:$0xff]   ;;  %v2397_v50 = vld [vmem:[%s3067_s1 + $0x2a8] sm:$0xff]  }
  0x19   :  { %2087 = vmatpush3.bf16.msra.mxu1 %v2331_v23  ;;  %v2373_v23 = vld [vmem:[%s3067_s1 + $0x240] sm:$0xff]   ;;  %v2386_v38 = vld [vmem:[%s3067_s1 + $0x258] sm:$0xff]   ;;  %v2398_v51 = vld [vmem:[%s3067_s1 + $0x270] sm:$0xff]  }
  0x1a   :  { %2088 = vmatprep.subr.bf16.mxu1 %v2334_v26  ;;  %v140_v20 = vpack.c.bf16 %v64_v16, %v64_v16  ;;  %v65_v21 = vcombine.high %v63_v17, %v63_v17  ;;  %v2375_v26 = vld [vmem:[%s3067_s1 + $0x200] sm:$0xff]   ;;  %v2388_v39 = vld [vmem:[%s3067_s1 + $0x2d8] sm:$0xff]   ;;  %v2413_v10 = vld [vmem:[%s3067_s1 + $0x3c8] sm:$0xff]  }
  0x1b   :  { %2067 = vmatpush3.bf16.msra.mxu0 %v2333_v25  ;;  %v2376_v25 = vld [vmem:[%s3067_s1 + $0x2c0] sm:$0xff]   ;;  %v2389_v42 = vld [vmem:[%s3067_s1 + $0x298] sm:$0xff]   ;;  %v2414_v12 = vld [vmem:[%s3067_s1 + $0x388] sm:$0xff]  }
  0x1c   :  { %2068 = vmatprep.subr.bf16.mxu0 %v2336_v29  ;;  %v142_v24 = vpack.c.bf16 %v65_v21, %v65_v21  ;;  %v2377_v29 = vld [vmem:[%s3067_s1 + $0x280] sm:$0xff]   ;;  %v2415_v13 = vld [vmem:[%s3067_s1 + $0x350] sm:$0xff]  }
  0x1d   :  { %2089 = vmatpush3.bf16.msra.mxu1 %v2335_v28  ;;  %v141_v28 = vpack.c.bf16 %v63_v17, %v63_v17  ;;  %v2392_v44 = vld [vmem:[%s3067_s1 + $0x2e0] sm:$0xff]   ;;  %v2418_v16 = vld [vmem:[%s3067_s1 + $0x390] sm:$0xff]   ;;  %v2419_v17 = vld [vmem:[%s3067_s1 + $0x358] sm:$0xff]  }
  0x1e   :  { %2090 = vmatprep.subr.bf16.mxu1 %v2338_v31  ;;  %v2380_v31 = vld [vmem:[%s3067_s1 + $0x2c8] sm:$0xff]   ;;  %v2391_v45 = vld [vmem:[%s3067_s1 + $0x220] sm:$0xff]  }
  0x1f   :  { %2069 = vmatpush3.bf16.msra.mxu0 %v2337_v30  ;;  %v2378_v30 = vld [vmem:[%s3067_s1 + $0x248] sm:$0xff]   ;;  %v2423_v21 = vld [vmem:[%s3067_s1 + $0x360] sm:$0xff]  }
  0x20   :  { %2098 = vmatprep.subr.bf16.mxu0 %v2340_v37  ;;  %v2385_v37 = vld [vmem:[%s3067_s1 + $0x290] sm:$0xff]  }
  0x21   :  { %2091 = vmatpush3.bf16.msra.mxu1 %v2339_v34  ;;  %v2382_v34 = vld [vmem:[%s3067_s1 + $0x250] sm:$0xff]  }
  0x22   :  { %2120 = vmatprep.subr.bf16.mxu1 %v2343_v40  ;;  %1398 = vmatmul.mubr.bf16.vlgmr.msra.gmra.mrb[0].mxu0 %v135_v47  ;;  %v2387_v40 = vld [vmem:[%s3067_s1 + $0x218] sm:$0xff]   ;;  %v2394_v47 = vld [vmem:[%s3067_s1 + $0x268] sm:$0xff]  }
  0x23   :  { %2099 = vmatpush3.bf16.msra.mxu0 %v2342_v46  ;;  %1477 = vmatprep.mubr.bf16.mxu0 %v140_v20  ;;  %v2393_v46 = vld [vmem:[%s3067_s1 + $0x2a0] sm:$0xff]   ;;  %v2422_v20 = vld [vmem:[%s3067_s1 + $0x398] sm:$0xff]  }
  0x24   :  { %1438 = vmatmul.mubr.bf16.vlgmr.msra.gmra.mrb[0].mxu1 %v137_v48  ;;  %2100 = vmatprep.subr.bf16.mxu0 %v2345_v52  ;;  %v2396_v48 = vld [vmem:[%s3067_s1 + $0x2e8] sm:$0xff]   ;;  %v2400_v52 = vld [vmem:[%s3067_s1 + $0x2f0] sm:$0xff]  }
  0x25   :  { %2121 = vmatpush3.bf16.msra.mxu1 %v2344_v49  ;;  %1517 = vmatprep.mubr.bf16.mxu1 %v142_v24  ;;  %v2395_v49 = vld [vmem:[%s3067_s1 + $0x228] sm:$0xff]   ;;  %v2426_v24 = vld [vmem:[%s3067_s1 + $0x3a0] sm:$0xff]  }
  0x26   :  { %2122 = vmatprep.subr.bf16.mxu1 %v2347_v53  ;;  %v24_v53 = vld [vmem:[%s3066_s0 + $0x10] sm:$0xff] }
  0x27   :  { %2101 = vmatpush3.bf16.msra.mxu0 %v2346_v54  ;;  %v2399_v54 = vld [vmem:[%s3067_s1 + $0x230] sm:$0xff]  }
  0x28   :  { %2102 = vmatprep.subr.bf16.mxu0 %v2349_v56  ;;  %v66_v56 = vcombine.high %v24_v53, %v24_v53 }
  0x29   :  { %2123 = vmatpush3.bf16.msra.mxu1 %v2348_v55  ;;  %v73_v55 = vrot.slane %v24_v53, %v2634_v41  ;;  %v2443_v53 = vld [vmem:[%s3067_s1 + $0x408] sm:$0xff]  }
  0x2a   :  { %2124 = vmatprep.subr.bf16.mxu1 %v2351_v57  ;;  %v2401_v57 = vld [vmem:[%s3067_s1 + $0x2b0] sm:$0xff]  }
  0x2b   :  { %2103 = vmatpush3.bf16.msra.mxu0 %v2350_v58  ;;  %v2402_v58 = vld [vmem:[%s3067_s1 + $0x278] sm:$0xff]  }
  0x2c   :  { %2104 = vmatprep.subr.bf16.mxu0 %v2353_v60  ;;  %v80_v60 = vrot.slane %v66_v56, %v2634_v41  ;;  %v2445_v56 = vld [vmem:[%s3067_s1 + $0x410] sm:$0xff]  }
  0x2d   :  { %2125 = vmatpush3.bf16.msra.mxu1 %v2352_v59  ;;  %v81_v59 = vcombine.high %v73_v55, %v73_v55 }
  0x2e   :  { %2126 = vmatprep.subr.bf16.mxu1 %v2355_v61  ;;  %v2404_v61 = vld [vmem:[%s3067_s1 + $0x2f8] sm:$0xff]  }
  0x2f   :  { %2105 = vmatpush3.bf16.msra.mxu0 %v2354_v62  ;;  %v2403_v62 = vld [vmem:[%s3067_s1 + $0x238] sm:$0xff]  }
  0x30   :  { %2106 = vmatprep.subr.bf16.mxu0 %v2357_v0  ;;  %v82_v0 = vcombine.high %v80_v60, %v80_v60 }
  0x31   :  { %2127 = vmatpush3.bf16.msra.mxu1 %v2356_v63  ;;  %v144_v63 = vpack.c.bf16 %v81_v59, %v81_v59  ;;  %v2448_v59 = vld [vmem:[%s3067_s1 + $0x418] sm:$0xff]  }
  0x32   :  { %2128 = vmatprep.subr.bf16.mxu1 %v2359_v1  ;;  %v2405_v1 = vld [vmem:[%s3067_s1 + $0x2b8] sm:$0xff]  }
  0x33   :  { %2107 = vmatpush3.bf16.msra.mxu0 %v2358_v2  ;;  %v2406_v2 = vld [vmem:[%s3067_s1 + $0x340] sm:$0xff]  }
  0x34   :  { %2108 = vmatprep.subr.bf16.mxu0 %v2361_v4  ;;  %v2409_v4 = vld [vmem:[%s3067_s1 + $0x3c0] sm:$0xff]  }
  0x35   :  { %2129 = vmatpush3.bf16.msra.mxu1 %v2360_v3  ;;  %v146_v3 = vpack.c.bf16 %v82_v0, %v82_v0  ;;  %v2451_v0 = vld [vmem:[%s3067_s1 + $0x420] sm:$0xff]  }
  0x36   :  { %2130 = vmatprep.subr.bf16.mxu1 %v2363_v5  ;;  %v2408_v5 = vld [vmem:[%s3067_s1 + $0x300] sm:$0xff]  }
  0x37   :  { %2109 = vmatpush3.bf16.msra.mxu0 %v2362_v6  ;;  %v143_v6 = vpack.c.bf16 %v73_v55, %v73_v55  ;;  %v2444_v55 = vld [vmem:[%s3067_s1 + $0x450] sm:$0xff]  }
  0x38   :  { %2110 = vmatprep.subr.bf16.mxu0 %v2365_v8  ;;  %v2410_v8 = vld [vmem:[%s3067_s1 + $0x380] sm:$0xff]  }
  0x39   :  { %2131 = vmatpush3.bf16.msra.mxu1 %v2364_v7  ;;  %v145_v7 = vpack.c.bf16 %v80_v60, %v80_v60  ;;  %v2455_v60 = vld [vmem:[%s3067_s1 + $0x498] sm:$0xff]  }
  0x3a   :  { %2132 = vmatprep.subr.bf16.mxu1 %v2367_v9  ;;  %v2411_v9 = vld [vmem:[%s3067_s1 + $0x348] sm:$0xff]  }
  0x3b   :  { %2111 = vmatpush3.bf16.msra.mxu0 %v2366_v11  ;;  %v2412_v11 = vld [vmem:[%s3067_s1 + $0x308] sm:$0xff]  }
  0x3c   :  { %2112 = vmatprep.subr.bf16.mxu0 %v2369_v15  ;;  %v2416_v15 = vld [vmem:[%s3067_s1 + $0x310] sm:$0xff]  }
  0x3d   :  { %2133 = vmatpush3.bf16.msra.mxu1 %v2368_v14  ;;  %v2417_v14 = vld [vmem:[%s3067_s1 + $0x3d0] sm:$0xff]  }
  0x3e   :  { %2134 = vmatprep.subr.bf16.mxu1 %v2371_v18  ;;  %v2421_v18 = vld [vmem:[%s3067_s1 + $0x3d8] sm:$0xff]  }
  0x3f   :  { %2113 = vmatpush3.bf16.msra.mxu0 %v2370_v19  ;;  %v2420_v19 = vld [vmem:[%s3067_s1 + $0x318] sm:$0xff]  }
  0x40   :  { %2142 = vmatprep.subr.bf16.mxu0 %v2373_v23  ;;  %v2424_v23 = vld [vmem:[%s3067_s1 + $0x320] sm:$0xff]  }
  0x41   :  { %2135 = vmatpush3.bf16.msra.mxu1 %v2372_v22  ;;  %v2425_v22 = vld [vmem:[%s3067_s1 + $0x3e0] sm:$0xff]  }
  0x42   :  { %2164 = vmatprep.subr.bf16.mxu1 %v2376_v25  ;;  %1478 = vmatmul.mubr.bf16.vlgmr.msra.gmra.mrb[4].mxu0 %v139_v27  ;;  %v2427_v25 = vld [vmem:[%s3067_s1 + $0x368] sm:$0xff]  }
  0x43   :  { %2143 = vmatpush3.bf16.msra.mxu0 %v2375_v26  ;;  %1557 = vmatprep.mubr.bf16.mxu0 %v144_v63  ;;  %v2429_v26 = vld [vmem:[%s3067_s1 + $0x3e8] sm:$0xff]  }
  0x44   :  { %1518 = vmatmul.mubr.bf16.vlgmr.msra.gmra.mrb[4].mxu1 %v141_v28  ;;  %2144 = vmatprep.subr.bf16.mxu0 %v2378_v30  ;;  %v2428_v27 = vld [vmem:[%s3067_s1 + $0x328] sm:$0xff]   ;;  %v2433_v30 = vld [vmem:[%s3067_s1 + $0x3f0] sm:$0xff]  }
  0x45   :  { %2165 = vmatpush3.bf16.msra.mxu1 %v2377_v29  ;;  %1597 = vmatprep.mubr.bf16.mxu1 %v146_v3  ;;  %v2430_v28 = vld [vmem:[%s3067_s1 + $0x3a8] sm:$0xff]   ;;  %v2431_v29 = vld [vmem:[%s3067_s1 + $0x370] sm:$0xff]  }
  0x46   :  { %2166 = vmatprep.subr.bf16.mxu1 %v2380_v31  ;;  %v2432_v31 = vld [vmem:[%s3067_s1 + $0x330] sm:$0xff]  }
  0x47   :  { %2145 = vmatpush3.bf16.msra.mxu0 %v2379_v32  ;;  %v25_v32 = vld [vmem:[%s3066_s0 + $0x18] sm:$0xff] }
  0x48   :  { %2146 = vmatprep.subr.bf16.mxu0 %v2382_v34  ;;  %v90_v34 = vrot.slane %v25_v32, %v2634_v41 }
  0x49   :  { %2167 = vmatpush3.bf16.msra.mxu1 %v2381_v33  ;;  %v2434_v33 = vld [vmem:[%s3067_s1 + $0x3b0] sm:$0xff]  }
  0x4a   :  { %2168 = vmatprep.subr.bf16.mxu1 %v2384_v35  ;;  %v83_v35 = vcombine.high %v25_v32, %v25_v32 }
  0x4b   :  { %2147 = vmatpush3.bf16.msra.mxu0 %v2383_v36  ;;  %v2435_v36 = vld [vmem:[%s3067_s1 + $0x378] sm:$0xff]  }
  0x4c   :  { %2148 = vmatprep.subr.bf16.mxu0 %v2386_v38  ;;  %v98_v38 = vcombine.high %v90_v34, %v90_v34 }
  0x4d   :  { %2169 = vmatpush3.bf16.msra.mxu1 %v2385_v37  ;;  %v2437_v37 = vld [vmem:[%s3067_s1 + $0x3f8] sm:$0xff]  }
  0x4e   :  { %2170 = vmatprep.subr.bf16.mxu1 %v2388_v39  ;;  %v97_v39 = vrot.slane %v83_v35, %v2634_v41 }
  0x4f   :  { %2149 = vmatpush3.bf16.msra.mxu0 %v2387_v40  ;;  %v2436_v40 = vld [vmem:[%s3067_s1 + $0x338] sm:$0xff]  }
  0x50   :  { %2150 = vmatprep.subr.bf16.mxu0 %v2390_v43  ;;  %v99_v43 = vcombine.high %v97_v39, %v97_v39 }
  0x51   :  { %2171 = vmatpush3.bf16.msra.mxu1 %v2389_v42  ;;  %v148_v42 = vpack.c.bf16 %v98_v38, %v98_v38 }
  0x52   :  { %2172 = vmatprep.subr.bf16.mxu1 %v2392_v44  ;;  %v2438_v44 = vld [vmem:[%s3067_s1 + $0x3b8] sm:$0xff]  }
  0x53   :  { %2151 = vmatpush3.bf16.msra.mxu0 %v2391_v45  ;;  %v2439_v45 = vld [vmem:[%s3067_s1 + $0x440] sm:$0xff]  }
  0x54   :  { %2152 = vmatprep.subr.bf16.mxu0 %v2394_v47  ;;  %v147_v47 = vpack.c.bf16 %v90_v34, %v90_v34 }
  0x55   :  { %2173 = vmatpush3.bf16.msra.mxu1 %v2393_v46  ;;  %v150_v46 = vpack.c.bf16 %v99_v43, %v99_v43 }
  0x56   :  { %2174 = vmatprep.subr.bf16.mxu1 %v2396_v48  ;;  %v2441_v48 = vld [vmem:[%s3067_s1 + $0x400] sm:$0xff]  }
  0x57   :  { %2153 = vmatpush3.bf16.msra.mxu0 %v2395_v49  ;;  %v149_v49 = vpack.c.bf16 %v97_v39, %v97_v39 }
  0x58   :  { %2154 = vmatprep.subr.bf16.mxu0 %v2398_v51  ;;  %v2442_v51 = vld [vmem:[%s3067_s1 + $0x448] sm:$0xff]  }
  0x59   :  { %2175 = vmatpush3.bf16.msra.mxu1 %v2397_v50  ;;  %v2446_v50 = vld [vmem:[%s3067_s1 + $0x480] sm:$0xff]  }
  0x5a   :  { %2176 = vmatprep.subr.bf16.mxu1 %v2400_v52  ;;  %v2496_v52 = vmov 0.0  }
  0x5b   :  { %2155 = vmatpush3.bf16.msra.mxu0 %v2399_v54  ;;  %v2449_v54 = vld [vmem:[%s3067_s1 + $0x488] sm:$0xff]  }
  0x5c   :  { %2156 = vmatprep.subr.bf16.mxu0 %v2402_v58  ;;  %v2447_v58 = vld [vmem:[%s3067_s1 + $0x458] sm:$0xff]  }
  0x5d   :  { %2177 = vmatpush3.bf16.msra.mxu1 %v2401_v57  ;;  %v2452_v57 = vld [vmem:[%s3067_s1 + $0x490] sm:$0xff]  }
  0x5e   :  { %2178 = vmatprep.subr.bf16.mxu1 %v2404_v61  ;;  %v26_v61 = vld [vmem:[%s3066_s0 + $0x20] sm:$0x3f] }
  0x5f   :  { %2157 = vmatpush3.bf16.msra.mxu0 %v2403_v62  ;;  %v2450_v62 = vld [vmem:[%s3067_s1 + $0x460] sm:$0xff]   ;;  %v107_v63 = vrot.slane %v26_v61, %v2634_v41  ;;  %v100_v3 = vcombine.high %v26_v61, %v26_v61 }
  0x60   :  { %2186 = vmatprep.subr.bf16.mxu0 %v2406_v2  ;;  %v2453_v2 = vld [vmem:[%s3067_s1 + $0x468] sm:$0xff]  }
  0x61   :  { %2179 = vmatpush3.bf16.msra.mxu1 %v2405_v1  ;;  %v2458_v1 = vld [vmem:[%s3067_s1 + $0x4a0] sm:$0xff]  }
  0x62   :  { %2208 = vmatprep.subr.bf16.mxu1 %v2409_v4  ;;  %1558 = vmatmul.mubr.bf16.vlgmr.msra.gmra.mrb[8].mxu0 %v143_v6  ;;  %v115_v4 = vcombine.high %v107_v63, %v107_v63  ;;  %v114_v6 = vrot.slane %v100_v3, %v2634_v41 }
  0x63   :  { %2187 = vmatpush3.bf16.msra.mxu0 %v2408_v5  ;;  %1637 = vmatprep.mubr.bf16.mxu0 %v148_v42 }
  0x64   :  { %1598 = vmatmul.mubr.bf16.vlgmr.msra.gmra.mrb[8].mxu1 %v145_v7  ;;  %2188 = vmatprep.subr.bf16.mxu0 %v2411_v9  ;;  %v152_v5 = vpack.c.bf16 %v115_v4, %v115_v4 }
  0x65   :  { %2209 = vmatpush3.bf16.msra.mxu1 %v2410_v8  ;;  %1677 = vmatprep.mubr.bf16.mxu1 %v150_v46 }
  0x66   :  { %2210 = vmatprep.subr.bf16.mxu1 %v2413_v10 }
  0x67   :  { %2189 = vmatpush3.bf16.msra.mxu0 %v2412_v11 }
  0x68   :  { %2190 = vmatprep.subr.bf16.mxu0 %v2415_v13 }
  0x69   :  { %2211 = vmatpush3.bf16.msra.mxu1 %v2414_v12 }
  0x6a   :  { %2212 = vmatprep.subr.bf16.mxu1 %v2417_v14 }
  0x6b   :  { %2191 = vmatpush3.bf16.msra.mxu0 %v2416_v15 }
  0x6c   :  { %2192 = vmatprep.subr.bf16.mxu0 %v2419_v17 }
  0x6d   :  { %2213 = vmatpush3.bf16.msra.mxu1 %v2418_v16 }
  0x6e   :  { %2214 = vmatprep.subr.bf16.mxu1 %v2421_v18 }
  0x6f   :  { %2193 = vmatpush3.bf16.msra.mxu0 %v2420_v19 }
  0x70   :  { %2194 = vmatprep.subr.bf16.mxu0 %v2423_v21 }
  0x71   :  { %2215 = vmatpush3.bf16.msra.mxu1 %v2422_v20 }
  0x72   :  { %2216 = vmatprep.subr.bf16.mxu1 %v2425_v22 }
  0x73   :  { %2195 = vmatpush3.bf16.msra.mxu0 %v2424_v23 }
  0x74   :  { %2196 = vmatprep.subr.bf16.mxu0 %v2427_v25 }
  0x75   :  { %2217 = vmatpush3.bf16.msra.mxu1 %v2426_v24 }
  0x76   :  { %2218 = vmatprep.subr.bf16.mxu1 %v2429_v26 }
  0x77   :  { %2197 = vmatpush3.bf16.msra.mxu0 %v2428_v27 }
  0x78   :  { %2198 = vmatprep.subr.bf16.mxu0 %v2431_v29 }
  0x79   :  { %2219 = vmatpush3.bf16.msra.mxu1 %v2430_v28 }
  0x7a   :  { %2220 = vmatprep.subr.bf16.mxu1 %v2433_v30 }
  0x7b   :  { %2199 = vmatpush3.bf16.msra.mxu0 %v2432_v31 }
  0x7c   :  { %2200 = vmatprep.subr.bf16.mxu0 %v2435_v36 }
  0x7d   :  { %2221 = vmatpush3.bf16.msra.mxu1 %v2434_v33 }
  0x7e   :  { %2222 = vmatprep.subr.bf16.mxu1 %v2437_v37 }
  0x7f   :  { %2201 = vmatpush3.bf16.msra.mxu0 %v2436_v40 }
  0x80   :  { %2230 = vmatprep.subr.bf16.mxu0 %v2439_v45 }
  0x81   :  { %2223 = vmatpush3.bf16.msra.mxu1 %v2438_v44 }
  0x82   :  { %2268 = vmatprep.subr.bf16.mxu1 %v2496_v52  ;;  %1638 = vmatmul.mubr.bf16.vlgmr.msra.gmra.mrb[12].mxu0 %v147_v47 }
  0x83   :  { %2231 = vmatpush3.bf16.msra.mxu0 %v2441_v48  ;;  %1717 = vmatprep.mubr.bf16.mxu0 %v152_v5 }
  0x84   :  { %1678 = vmatmul.mubr.bf16.vlgmr.msra.gmra.mrb[12].mxu1 %v149_v49  ;;  %2232 = vmatprep.subr.bf16.mxu0 %v2442_v51 }
  0x85   :  { %2269 = vmatpush3.bf16.msra.mxu1 %v2446_v50  ;;  %2280 = vmatprep.mubr.msk.bf16.mxu1 %vm2497_vm0, %v2496_v52 }
  0x86   :  { %2270 = vmatprep.subr.bf16.mxu1 %v2496_v52 }
  0x87   :  { %2233 = vmatpush3.bf16.msra.mxu0 %v2443_v53 }
  0x88   :  { %2234 = vmatprep.subr.bf16.mxu0 %v2444_v55 }
  0x89   :  { %2271 = vmatpush3.bf16.msra.mxu1 %v2449_v54 }
  0x8a   :  { %2272 = vmatprep.subr.bf16.mxu1 %v2496_v52 }
  0x8b   :  { %2235 = vmatpush3.bf16.msra.mxu0 %v2445_v56 }
  0x8c   :  { %2236 = vmatprep.subr.bf16.mxu0 %v2447_v58 }
  0x8d   :  { %2273 = vmatpush3.bf16.msra.mxu1 %v2452_v57 }
  0x8e   :  { %2274 = vmatprep.subr.bf16.mxu1 %v2496_v52 }
  0x8f   :  { %2237 = vmatpush3.bf16.msra.mxu0 %v2448_v59 }
  0x90   :  { %2238 = vmatprep.subr.bf16.mxu0 %v2450_v62 }
  0x91   :  { %2275 = vmatpush3.bf16.msra.mxu1 %v2455_v60 }
  0x92   :  { %2276 = vmatprep.subr.bf16.mxu1 %v2496_v52 }
  0x93   :  { %10 = vsyncpa [#allocation3], 0  ;;  %2239 = vmatpush3.bf16.msra.mxu0 %v2451_v0  ;;  %v2454_v7 = vld [vmem:[%s3067_s1 + $0x428] sm:$0xff]   ;;  %v2456_v9 = vld [vmem:[%s3067_s1 + $0x470] sm:$0xff]   ;;  %v153_v41 = vpack.c.bf16 %v114_v6, %v114_v6  ;;  %vm1361_vm1 = vcmask 785408   ;;  %v151_v13 = vpack.c.bf16 %v107_v63, %v107_v63  ;;  %s2498_s18 = smov [#allocation2]  }
  0x94   :  { %v2462_v8 = vld [vmem:[%s3067_s1 + $0x4a8] sm:$0xff]   ;;  %2240 = vmatprep.subr.bf16.mxu0 %v2453_v2  ;;  %v2457_v10 = vld [vmem:[%s3067_s1 + $0x430] sm:$0xff]   ;;  %v2459_v11 = vld [vmem:[%s3067_s1 + $0x478] sm:$0xff]   ;;  %s1885_s19 = sshll.u32 %s2498_s18, 4  ;;  %s1886_s19 = int_to_ptr.vmem [resolvable:$true] %s1885_s19 }
  0x95   :  { %2277 = vmatpush3.bf16.msra.mxu1 %v2458_v1  ;;  %v2460_v12 = vld [vmem:[%s3067_s1 + $0x438] sm:$0xff]   ;;  %v2463_v14 = vld [vmem:[%s3069_s3] sm:$0xff]   ;;  %v2464_v15 = vld [vmem:[%s3069_s3 + $0x8] sm:$0xff]   ;;  %s2471_s20 = scalar_lea.vmem %s1886_s19, 32  ;;  %p2476_p1 = scmp.lt.s32.totalorder %s1886_s19, %s1886_s19 }
  0x96   :  { %2278 = vmatprep.subr.bf16.mxu1 %v2496_v52  ;;  %v2465_v16 = vld [vmem:[%s3069_s3 + $0x10] sm:$0xff]   ;;  %v2466_v17 = vld [vmem:[%s3069_s3 + $0x18] sm:$0xff]   ;;  %v2467_v18 = vld [vmem:[%s3069_s3 + $0x20] sm:$0xff]   ;;  %p2472_p0 = scmp.ne.s32.totalorder %s1886_s19, %s2471_s20  ;;  %p2477_p2 = scmp.lt.s32.totalorder %s2471_s20, %s2471_s20 }
  0x97   :  { %2241 = vmatpush3.bf16.msra.mxu0 %v2454_v7  ;;  %v2468_v19 = vld [vmem:[%s3069_s3 + $0x28] sm:$0xff]   ;;  %v1893_v22 = vld [vmem:[%s3068_s2] ss:$0 sm:$0xff]  ;;  %v2469_v31 = vld [vmem:[%s3069_s3 + $0x30] sm:$0xff]  }
  0x98   :  { %2242 = vmatprep.subr.bf16.mxu0 %v2456_v9  ;;  %v2470_v34 = vld [vmem:[%s3069_s3 + $0x38] sm:$0xff]   ;;  %p2478_p3 = por %p2477_p2, %p2476_p1 }
  0x99   :  { %2279 = vmatpush3.bf16.msra.mxu1 %v2462_v8 }
  0x9a   :  { %2284 = vmatprep.subr.bf16.mxu1 %v2496_v52  ;;  %p2479_p4 = pnand %p2478_p3, %p2472_p0 }
  0x9b   :  { %2243 = vmatpush3.bf16.msra.mxu0 %v2457_v10 }
  0x9c   :  { %2281 = vmatmul.mubr.msk.bf16.vlgmr.msra.gmra.mrb[16].mxu1 %vm1361_vm1, %v153_v41  ;;  %2244 = vmatprep.subr.bf16.mxu0 %v2459_v11 }
  0x9d   :  { %2300 = vmatprep.mubr.msk.bf16.mxu1 %vm2497_vm0, %v2496_v52  ;;  %2285 = vmatpush3.bf16.msra.mxu1 %v2463_v14 }
  0x9e   :  { %2286 = vmatprep.subr.bf16.mxu1 %v2496_v52 }
  0x9f   :  { %2245 = vmatpush3.bf16.msra.mxu0 %v2460_v12 }
  0xa1   :  { %2287 = vmatpush3.bf16.msra.mxu1 %v2464_v15 }
  0xa2   :  { %1718 = vmatmul.mubr.bf16.vlgmr.msra.gmra.mrb[16].mxu0 %v151_v13  ;;  %2288 = vmatprep.subr.bf16.mxu1 %v2496_v52 }
  0xa5   :  { %2289 = vmatpush3.bf16.msra.mxu1 %v2465_v16 }
  0xa6   :  { %2290 = vmatprep.subr.bf16.mxu1 %v2496_v52 }
  0xa9   :  { %2291 = vmatpush3.bf16.msra.mxu1 %v2466_v17 }
  0xaa   :  { %2292 = vmatprep.subr.bf16.mxu1 %v2496_v52 }
  0xad   :  { %2293 = vmatpush3.bf16.msra.mxu1 %v2467_v18 }
  0xae   :  { %2294 = vmatprep.subr.bf16.mxu1 %v2496_v52 }
  0xb1   :  { %2295 = vmatpush3.bf16.msra.mxu1 %v2468_v19 }
  0xb2   :  { %2296 = vmatprep.subr.bf16.mxu1 %v2496_v52 }
  0xb5   :  { %2297 = vmatpush3.bf16.msra.mxu1 %v2469_v31 }
  0xb6   :  { %2298 = vmatprep.subr.bf16.mxu1 %v2496_v52 }
  0xb9   :  { %2299 = vmatpush3.bf16.msra.mxu1 %v2470_v34 }
  0xf5   :  { %v2070_v20 = vpop.f32.mrb[0].mxu0 }
  0xf6   :  { %v2071_v23 = vpop.f32.mrb[1].mxu0 }
  0xf7   :  { %v2092_v21 = vpop.f32.mrb[0].mxu1  ;;  %v2072_v25 = vadd.f32 %v2071_v23, %v2070_v20  ;;  %v2073_v26 = vpop.f32.mrb[2].mxu0  ;;  %v2045_v20 = vld [vmem:[%s3070_s4] ss:$0 sm:$0xff] }
  0xf8   :  { %v2093_v24 = vpop.f32.mrb[1].mxu1  ;;  %v2074_v29 = vpop.f32.mrb[3].mxu0 }
  0xf9   :  { %v2094_v27 = vadd.f32 %v2093_v24, %v2092_v21  ;;  %v2095_v28 = vpop.f32.mrb[2].mxu1  ;;  %v1400_v32 = vadd.f32 %v2072_v25, %v1893_v22 }
  0xfa   :  { %v2096_v30 = vpop.f32.mrb[3].mxu1 }
  0xfb   :  { %v1440_v33 = vadd.f32 %v2094_v27, %v1400_v32 }
 0x115   :  { %v2114_v35 = vpop.f32.mrb[4].mxu0 }
 0x116   :  { %v2115_v37 = vpop.f32.mrb[5].mxu0 }
 0x117   :  { %v2136_v36 = vpop.f32.mrb[4].mxu1  ;;  %v2116_v39 = vadd.f32 %v2115_v37, %v2114_v35  ;;  %v2117_v40 = vpop.f32.mrb[6].mxu0 }
 0x118   :  { %v2137_v38 = vpop.f32.mrb[5].mxu1  ;;  %v2118_v44 = vpop.f32.mrb[7].mxu0 }
 0x119   :  { %v2138_v42 = vadd.f32 %v2137_v38, %v2136_v36  ;;  %v2139_v43 = vpop.f32.mrb[6].mxu1  ;;  %v1480_v46 = vadd.f32 %v2116_v39, %v1440_v33 }
 0x11a   :  { %v2140_v45 = vpop.f32.mrb[7].mxu1 }
 0x11b   :  { %v1520_v47 = vadd.f32 %v2138_v42, %v1480_v46 }
 0x135   :  { %v2158_v48 = vpop.f32.mrb[8].mxu0 }
 0x136   :  { %v2159_v50 = vpop.f32.mrb[9].mxu0 }
 0x137   :  { %v2180_v49 = vpop.f32.mrb[8].mxu1  ;;  %v2160_v52 = vadd.f32 %v2159_v50, %v2158_v48  ;;  %v2161_v53 = vpop.f32.mrb[10].mxu0 }
 0x138   :  { %v2181_v51 = vpop.f32.mrb[9].mxu1  ;;  %v2162_v56 = vpop.f32.mrb[11].mxu0 }
 0x139   :  { %v2182_v54 = vadd.f32 %v2181_v51, %v2180_v49  ;;  %v2183_v55 = vpop.f32.mrb[10].mxu1  ;;  %v1560_v58 = vadd.f32 %v2160_v52, %v1520_v47 }
 0x13a   :  { %v2184_v57 = vpop.f32.mrb[11].mxu1 }
 0x13b   :  { %v1600_v59 = vadd.f32 %v2182_v54, %v1560_v58 }
 0x155   :  { %v2202_v60 = vpop.f32.mrb[12].mxu0 }
 0x156   :  { %v2203_v62 = vpop.f32.mrb[13].mxu0 }
 0x157   :  { %v2224_v61 = vpop.f32.mrb[12].mxu1  ;;  %v2204_v0 = vadd.f32 %v2203_v62, %v2202_v60  ;;  %v2205_v1 = vpop.f32.mrb[14].mxu0 }
 0x158   :  { %v2225_v63 = vpop.f32.mrb[13].mxu1  ;;  %v2206_v4 = vpop.f32.mrb[15].mxu0 }
 0x159   :  { %v2226_v2 = vadd.f32 %v2225_v63, %v2224_v61  ;;  %v2227_v3 = vpop.f32.mrb[14].mxu1  ;;  %v1640_v6 = vadd.f32 %v2204_v0, %v1600_v59 }
 0x15a   :  { %v2228_v5 = vpop.f32.mrb[15].mxu1 }
 0x15b   :  { %v1680_v7 = vadd.f32 %v2226_v2, %v1640_v6 }
 0x16f   :  { %v1759_v8 = vpop.f32.mrb[16].mxu1 }
 0x170   :  { %v2282_v9 = vpop.f32.mrb[17].mxu1 }
 0x171   :  { %v1762_v41 = vpop.f32.mrb[18].mxu1 }
 0x172   :  { %v2283_v10 = vpop.f32.mrb[19].mxu1 }
 0x175   :  { %v2246_v11 = vpop.f32.mrb[16].mxu0 }
 0x176   :  { %v2247_v12 = vpop.f32.mrb[17].mxu0 }
 0x177   :  { %v2248_v13 = vadd.f32 %v2247_v12, %v2246_v11  ;;  %v2249_v14 = vpop.f32.mrb[18].mxu0 }
 0x178   :  { %v2250_v15 = vpop.f32.mrb[19].mxu0 }
 0x179   :  { %v1720_v16 = vadd.f32 %v2248_v13, %v1680_v7 }
 0x17b   :  { %v1760_v17 = vadd.f32 %v1759_v8, %v1720_v16 }
 0x17d   :  { %v1765_v18 = vmax.f32 %v1760_v17, 0.0 }
 0x17f   :  { %v1766_v19 = vpack.c.bf16 %v1765_v18, %v1765_v18 }
 0x181   :  { %2301 = vmatmul.mubr.bf16.vlgmr.msra.gmra.mrb[20].mxu1 %v1766_v19 }
 0x254   :  { %v1872_v21 = vpop.f32.mrb[20].mxu1 }
 0x255   :  { %v1873_v22 = vadd.f32 %v2045_v20, %v1872_v21  ;;  %v2302_v23 = vpop.f32.mrb[21].mxu1 }
 0x256   :  { %v1875_v24 = vpop.f32.mrb[22].mxu1 }
 0x257   :  { %1878 = vst [vmem:[#allocation2] sm:$0x3] %v1873_v22  ;;  %v2303_v25 = vpop.f32.mrb[23].mxu1 }
 0x258   :  { %2482 = shalt.err (!%p2479_p4)
}
 0x259   :  { %s2483_s4 = scalar_lea.hbm %s3071_s5, 32 }
 0x25a   :  { %p2484_p5 = scmp.ne.s32.totalorder %s3071_s5, %s2483_s4  ;;  %p2487_p6 = scmp.lt.u32.totalorder %s2483_s4, %s3071_s5 }
 0x25c   :  { %p2489_p7 = pnand %p2487_p6, %p2484_p5 }
 0x25e   :  { %2492 = shalt.err (!%p2489_p7)
}
 0x25f   :  { %1888 = dma.vmem_to_hbm [thread:$0]  %s1886_s19, 32, %s3071_s5, [#allocation3]  }
 0x260   :  { %2493 = dma.done.wait [#allocation3], 32  }
 0x261   :  { %2494 = vsyncadd [#allocation3], 4294967264 }
 0x262   :  { %1892 = vsyncpa [#allocation3], 1 }

// kernel: chord_classifier_forward.2
= control target key start
LH: loop header
LB: loop body
LE: loop exit
PB: predicated region body
PF: predicated region fallthrough
CT: control target
= control target key end

     0   :  { %14 = vsyncpa [#allocation3], 0  ;;  %s8038_s30 = smov 0   ;;  %s9726_s0 = inlined_call_operand.vmem [shape: f32[2,12,102], index: 0, kind: input, shape index: {}]   ;;  %s9727_s1 = inlined_call_operand.hbm [shape: f32[16,9], index: 1, kind: input, shape index: {}]   ;;  %s9728_s2 = inlined_call_operand.vmem [shape: f32[16,1], index: 2, kind: input, shape index: {}]   ;;  %s9729_s3 = inlined_call_operand.vmem [shape: bf16[9,32,16], index: 3, kind: input, shape index: {}]   ;;  %s9730_s4 = inlined_call_operand.vmem [shape: f32[32,1], index: 4, kind: input, shape index: {}]   ;;  %s9731_s5 = inlined_call_operand.vmem [shape: f32[100,52], index: 5, kind: input, shape index: {}]   ;;  %s9732_s6 = inlined_call_operand.vmem [shape: f32[100,52], index: 6, kind: input, shape index: {}]   ;;  %s9733_s7 = inlined_call_operand.vmem [shape: f32[50,25], index: 7, kind: input, shape index: {}]   ;;  %s9734_s8 = inlined_call_operand.vmem [shape: f32[50,25], index: 8, kind: input, shape index: {}]   ;;  %s9735_s9 = inlined_call_operand.vmem [shape: f32[2,3,32,25], index: 9, kind: output, shape index: {}]  }
   0x1 LB: > { %s8044_s10 = sadd.s32 4294967295, %s7972_s30   ;;  %p5962_p0 = scmp.ge.s32.totalorder %s7972_s30, 1  ;;  %s7972_s30 = sphi %s8038_s30, %s20_s30  }
   0x2   : > { %p245_p1 = scmp.lt.s32.totalorder %s7972_s30, 3  ;;  %s7974_s11 = smov [#allocation2]  }
   0x3   : > { %s257_s12 = sshll.u32 %s7974_s11, 4  ;;  %p9736_p3 = scmp.eq.s32.totalorder %s8044_s10, 0  ;;  %s258_s12 = int_to_ptr.vmem [resolvable:$true] %s257_s12 }
   0x4   : > { %p8048_p2 = pnand %p5962_p0, %p245_p1  ;;  %s7934_s17 = scalar_lea.hbm %s9727_s1, 256 }
   0x5   : > { %p7935_p6 = scmp.ne.s32.totalorder %s9727_s1, %s7934_s17  ;;  %p7941_p10 = scmp.lt.u32.totalorder %s7934_s17, %s9727_s1 }
   0x6   : > { %s9740_s13 = scalar_select %p8048_p2, 1, 0 }
   0x7   : > { %p7872_p4 = pneg %p8048_p2 }
   0x9   : > { %p8057_p5 = pnand %p9736_p3, %p7872_p4 }
   0xb   : > { %p7936_p7 = pneg %p8057_p5 }
   0xd   : > { %p7937_p8 = pnand %p7936_p7, %p7935_p6 }
   0xf   : > { %p7938_p9 = pneg %p7937_p8 }
  0x11   : > { %p7943_p11 = pnand %p7941_p10, %p7938_p9 }
  0x13   : > { %7946 = shalt.err (!%p7943_p11)
}
  0x14   : > { %s7947_s22 = scalar_lea.vmem %s258_s12, 256  ;;  %p7955_p1 = scmp.lt.s32.totalorder %s258_s12, %s258_s12 }
  0x15   : > { %p7948_p12 = scmp.ne.s32.totalorder %s258_s12, %s7947_s22  ;;  %p7956_p4 = scmp.lt.s32.totalorder %s7947_s22, %s7947_s22 }
  0x17   : > { %p7950_p13 = pnand %p7948_p12, %p7936_p7  ;;  %p7957_p3 = por %p7956_p4, %p7955_p1 }
  0x19   : > { %p7951_p0 = pneg %p7950_p13 }
  0x1b   : > { %p7958_p2 = pnand %p7957_p3, %p7951_p0 }
  0x1d   : > { %7961 = shalt.err (!%p7958_p2)
}
  0x1e   : > { %s7975_s23 = smov 128   ;;  %s7976_s24 = smov 8  }
  0x1f   : > { %7875 = dma.hbm_to_vmem [thread:$0]  (!%p8057_p5), %s9727_s1, 256, %s258_s12, [#allocation3], %s7975_s23, %s7975_s23, %s7976_s24  }
  0x20   : > { %p9742_p6 = scmp.ne.s32.totalorder %s9740_s13, 0 }
  0x22   : > { %302 = sbr.rel (%p9742_p6) target bundleno = 1906 (0x772), region = 56 }
  0x29   : > { %p9743_p8 = scmp.eq.s32.totalorder %s8044_s10, 0 }
  0x2b   : > { %7967 = dma.done.wait (%p9743_p8), [#allocation3], 256   ;;  %p9744_p7 = pmov %p9743_p8 }
  0x2c   : > { %v7977_v0 = vmov 1   ;;  %v7978_v1 = vmov 2   ;;  %p338_p2 = scmp.lt.s32.totalorder %s8044_s10, 1  ;;  %v453_v2 = vlaneseq  ;;  %v351_v5 = vld [vmem:[#allocation2] sm:$0xff]  ;;  %v352_v10 = vld [vmem:[#allocation2 + $0x8] sm:$0xff]  ;;  %v7979_v22 = vmov 4  }
  0x2d   : > { %7969 = vsyncadd (%p9744_p7), [#allocation3], 4294967040  ;;  %7900 = vset.pattern.permute.xlu0 %v7977_v0  ;;  %7901 = vset.pattern.permute.xlu1 %v7978_v1  ;;  %v7980_v23 = vmov 5   ;;  %v7981_v24 = vmov 7   ;;  %v7982_v25 = vmov 8   ;;  %v7983_v26 = vmov 0  }
  0x2e   : > { %s9750_s10 = smov (!%p338_p2, %s8044_s10), 1  ;;  %v8087_v3 = vshrl.u32 %v453_v2, 7  ;;  %584 = vperm.xlu0 %7900, %v351_v5   ;;  %604 = vperm.xlu1 %7901, %v351_v5   ;;  %v7984_v27 = vmov 3   ;;  %v7985_v29 = vmov 6   ;;  %v353_v31 = vld [vmem:[%s9728_s2] sm:$0xff]  ;;  %v354_v32 = vld [vmem:[%s9728_s2 + $0x8] sm:$0xff] }
  0x2f   : > { %s6192_s27 = sshll.u32 %s9750_s10, 4  ;;  %s7986_s16 = smov 127   ;;  %v359_v50 = vld [vmem:[%s9731_s5] sm:$0xff]  ;;  %v360_v51 = vld [vmem:[%s9731_s5 + $0x8] sm:$0xff]  ;;  %v361_v62 = vld [vmem:[%s9731_s5 + $0x10] sm:$0xff]  ;;  %vm696_vm0 = vcmask 1043456  }
  0x30   : > { %s342_s11 = scalar_lea.vmem %s9726_s0, %s6192_s27  ;;  %v455_v4 = vsub.s32 0, %v8087_v3  ;;  %v511_v6 = vsub.s32 1, %v8087_v3  ;;  %v653_v7 = vsub.s32 2, %v8087_v3  ;;  %v1006_v8 = vsub.s32 4, %v8087_v3  ;;  %s7987_s17 = smov 126   ;;  %v372_v52 = vld [vmem:[%s9732_s6] sm:$0xff] }
  0x31   : > { %v1259_v9 = vsub.s32 5, %v8087_v3  ;;  %v8098_v11 = vld [vmem:[%s342_s11] sm:$0xff]  ;;  %v350_v12 = vld [vmem:[%s342_s11 + $0x8] sm:$0xf]  ;;  %v1351_v13 = vsub.s32 6, %v8087_v3  ;;  %v1604_v14 = vsub.s32 7, %v8087_v3  ;;  %v8199_v56 = vpack.c.bf16 %v360_v51, %v359_v50 }
  0x32   : > { %v8103_v15 = vrot.slane %v8098_v11, %v1006_v8  ;;  %v8114_v19 = vrot.slane %v350_v12, %v455_v4  ;;  %v8118_v20 = vrot.slane %v350_v12, %v511_v6  ;;  %v8122_v21 = vrot.slane %v350_v12, %v653_v7  ;;  %588 = vperm.xlu0 %7900, %v352_v10   ;;  %v373_v54 = vld [vmem:[%s9732_s6 + $0x8] sm:$0xff]  ;;  %v362_v63 = vld [vmem:[%s9731_s5 + $0x18] sm:$0xff]  ;;  %v374_v0 = vld [vmem:[%s9732_s6 + $0x10] sm:$0xff]  ;;  %s7867_s25 = smul.u32 96, %s9750_s10 }
  0x33   : > { %v8106_v16 = vrot.slane %v8098_v11, %v1259_v9  ;;  %v8109_v17 = vrot.slane %v8098_v11, %v1351_v13  ;;  %v8112_v18 = vrot.slane %v8098_v11, %v1604_v14  ;;  %608 = vperm.xlu1 %7901, %v352_v10   ;;  %v914_v28 = vsub.s32 3, %v8087_v3  ;;  %7340 = vmatprep.subr.bf16.mxu0 %v8199_v56  ;;  %v375_v1 = vld [vmem:[%s9732_s6 + $0x18] sm:$0xff]  ;;  %v363_v8 = vld [vmem:[%s9731_s5 + $0x20] sm:$0xff]  ;;  %v364_v9 = vld [vmem:[%s9731_s5 + $0x28] sm:$0xff] }
  0x34   : > { %9745 = vst [vmem:[#allocation5_spill] sm:$0xff] %v8122_v21  ;;  %v8136_v33 = vrot.slane %v8098_v11, %v455_v4  ;;  %v8158_v41 = vrot.slane %v8098_v11, %v511_v6  ;;  %v8197_v55 = vrot.slane %v8098_v11, %v653_v7  ;;  %v8201_v57 = vpack.c.bf16 %v373_v54, %v372_v52  ;;  %v377_v13 = vld [vmem:[%s9732_s6 + $0x28] sm:$0xff]  ;;  %v369_v51 = vld [vmem:[%s9731_s5 + $0x50] sm:$0xff]  ;;  %v370_v52 = vld [vmem:[%s9731_s5 + $0x58] sm:$0xff]  ;;  %s9565_s28 = scalar_lea.vmem %s9735_s9, %s7867_s25 }
  0x35   : > { %v8127_v30 = vrot.slane %v350_v12, %v914_v28  ;;  %7342 = vmatpush3.bf16.msra.mxu0 %v8199_v56  ;;  %v8235_v6 = vpack.c.bf16 %v375_v1, %v374_v0  ;;  %v8257_v14 = vpack.c.bf16 %v364_v9, %v363_v8  ;;  %v8351_v1 = vld [vmem:[%s9731_s5 + $0x60] sm:$0xf]  ;;  %vm689_vm1 = vcmask 818176  }
  0x36   : > { %7902 = vset.pattern.permute.xlu0 %v7979_v22  ;;  %7364 = vmatprep.subr.bf16.mxu1 %v8201_v57  ;;  %v8363_v8 = vld [vmem:[%s9732_s6 + $0x60] sm:$0xf]  ;;  %vm2563_vm2 = vcmask 130048   ;;  %vm3547_vm3 = vcmask 1041408   ;;  %vm3534_vm4 = vcmask 408576   ;;  %vm3728_vm5 = vcmask 203776  }
  0x37   : > { %7903 = vset.pattern.permute.xlu1 %v7979_v22  ;;  %462 = vperm.xlu0 %7902, %v351_v5   ;;  %9746 = vst [vmem:[#allocation6_spill] sm:$0xff] %v8127_v30 }
  0x38   : > { %466 = vperm.xlu1 %7903, %v352_v10   ;;  %7366 = vmatpush3.bf16.msra.mxu1 %v8201_v57 }
  0x39   : > { %7368 = vmatprep.subr.bf16.mxu1 %v8235_v6 }
  0x3b   : > { %7905 = vset.pattern.permute.xlu0 %v7980_v23 }
  0x3c   : > { %7904 = vset.pattern.permute.xlu1 %v7980_v23  ;;  %486 = vperm.xlu0 %7905, %v352_v10  }
  0x3d   : > { %482 = vperm.xlu1 %7904, %v351_v5   ;;  %7370 = vmatpush3.bf16.msra.mxu1 %v8235_v6 }
  0x40   : > { %7907 = vset.pattern.permute.xlu0 %v7982_v25 }
  0x41   : > { %7906 = vset.pattern.permute.xlu1 %v7981_v24  ;;  %538 = vperm.xlu0 %7907, %v351_v5   ;;  %v365_v24 = vld [vmem:[%s9731_s5 + $0x30] sm:$0xff] }
  0x42   : > { %518 = vperm.xlu1 %7906, %v351_v5  }
  0x45   : > { %7910 = vset.pattern.permute.xlu0 %v7983_v26 }
  0x46   : > { %522 = vperm.xlu1 %7906, %v352_v10   ;;  %576 = vperm.xlu0 %7910, %v352_v10  }
  0x4a   : > { %7908 = vset.pattern.permute.xlu1 %v7982_v25  ;;  %v366_v25 = vld [vmem:[%s9731_s5 + $0x38] sm:$0xff] }
  0x4b   : > { %542 = vperm.xlu1 %7908, %v352_v10  }
  0x4f   : > { %7909 = vset.pattern.permute.xlu1 %v7983_v26 }
  0x50   : > { %572 = vperm.xlu1 %7909, %v351_v5  }
  0x54   : > { %7911 = vset.pattern.permute.xlu1 %v7984_v27 }
  0x55   : > { %445 = vperm.xlu1 %7911, %v351_v5  }
  0x59   : > { %450 = vperm.xlu1 %7911, %v352_v10  }
  0x5d   : > { %7912 = vset.pattern.permute.xlu1 %v7985_v29 }
  0x5e   : > { %502 = vperm.xlu1 %7912, %v351_v5   ;;  %v8233_v5 = vpack.c.bf16 %v362_v63, %v361_v62 }
  0x60   : > { %7344 = vmatprep.subr.bf16.mxu0 %v8233_v5 }
  0x61   : > { %7346 = vmatpush3.bf16.msra.mxu0 %v8233_v5 }
  0x62   : > { %506 = vperm.xlu1 %7912, %v352_v10   ;;  %v376_v10 = vld [vmem:[%s9732_s6 + $0x20] sm:$0xff]  ;;  %7348 = vmatprep.subr.bf16.mxu0 %v8257_v14 }
  0x63   : > { %v8259_v22 = vpack.c.bf16 %v377_v13, %v376_v10 }
  0x65   : > { %7372 = vmatprep.subr.bf16.mxu1 %v8259_v22  ;;  %7350 = vmatpush3.bf16.msra.mxu0 %v8257_v14 }
  0x66   : > { %7913 = vset.pattern.permute.xlu1 %v7983_v26  ;;  %v378_v26 = vld [vmem:[%s9732_s6 + $0x30] sm:$0xff]  ;;  %7374 = vmatpush3.bf16.msra.mxu1 %v8259_v22 }
  0x67   : > { %559 = vperm.xlu1 %7913, %v353_v31   ;;  %v379_v31 = vld [vmem:[%s9732_s6 + $0x38] sm:$0xff] }
  0x6b   : > { %564 = vperm.xlu1 %7913, %v354_v32   ;;  %v8285_v32 = vpack.c.bf16 %v366_v25, %v365_v24 }
  0x6d   : > { %7352 = vmatprep.subr.bf16.mxu0 %v8285_v32 }
  0x6e   : > { %7354 = vmatpush3.bf16.msra.mxu0 %v8285_v32 }
  0xad   : > { %v8138_v34 = vpop.permute.xlu0 %584  ;;  %v8140_v35 = vpop.permute.xlu1 %604 }
  0xae   : > { %v591_v36 = vmul.f32 %v8138_v34, %v8136_v33  ;;  %v611_v43 = vmul.f32 %v8140_v35, %v8136_v33  ;;  %v952_v62 = vmul.f32 %v8197_v55, %v8138_v34  ;;  %v964_v9 = vmul.f32 %v8197_v55, %v8140_v35 }
  0xaf   : > { %v860_v10 = vmul.f32 %v8138_v34, %v8158_v41 }
  0xb0   : > { %595 = vrot.lane.b32.xlu0 %v591_v36, %s7986_s16  ;;  %v8287_v36 = vpack.c.bf16 %v379_v31, %v378_v26  ;;  %v872_v26 = vmul.f32 %v8140_v35, %v8158_v41 }
  0xb1   : > { %v8145_v37 = vpop.permute.xlu0 %588 }
  0xb2   : > { %v8147_v38 = vpop.permute.xlu1 %608  ;;  %v592_v39 = vmul.f32 %v8145_v37, %v8136_v33  ;;  %7376 = vmatprep.subr.bf16.mxu1 %v8287_v36  ;;  %v861_v24 = vmul.f32 %v8145_v37, %v8158_v41 }
  0xb3   : > { %v612_v40 = vmul.f32 %v8147_v38, %v8136_v33  ;;  %7378 = vmatpush3.bf16.msra.mxu1 %v8287_v36  ;;  %v965_v13 = vmul.f32 %v8197_v55, %v8147_v38 }
  0xb4   : > { %597 = vrot.lane.b32.xlu0 %v592_v39, %s7986_s16 }
  0xb5   : > { %617 = vrot.lane.b32.xlu1 %v612_v40, %s7987_s17 }
  0xb6   : > { %v8160_v42 = vpop.permute.xlu0 %462 }
  0xb7   : > { %v8164_v44 = vpop.permute.xlu1 %466  ;;  %v627_v45 = vmul.f32 %v8158_v41, %v8160_v42  ;;  %v469_v46 = vmul.f32 %v8160_v42, %v8136_v33 }
  0xb8   : > { %615 = vrot.lane.b32.xlu0 %v611_v43, %s7987_s17  ;;  %v628_v47 = vmul.f32 %v8158_v41, %v8164_v44  ;;  %v470_v49 = vmul.f32 %v8164_v44, %v8136_v33  ;;  %v367_v43 = vld [vmem:[%s9731_s5 + $0x40] sm:$0xff] }
  0xb9   : > { %631 = vrot.lane.b32.xlu1 %v627_v45, %s7986_s16  ;;  %v368_v45 = vld [vmem:[%s9731_s5 + $0x48] sm:$0xff] }
  0xbb   : > { %v8208_v60 = vpop.permute.xlu0 %486 }
  0xbc   : > { %v8174_v48 = vpop.permute.xlu1 %482  ;;  %473 = vrot.lane.b32.xlu0 %v469_v46, %s7986_s16  ;;  %v490_v4 = vmul.f32 %v8208_v60, %v8136_v33  ;;  %v640_v27 = vmul.f32 %v8158_v41, %v8208_v60  ;;  %v380_v46 = vld [vmem:[%s9732_s6 + $0x40] sm:$0xff] }
  0xbd   : > { %633 = vrot.lane.b32.xlu1 %v628_v47, %s7986_s16  ;;  %v639_v53 = vmul.f32 %v8158_v41, %v8174_v48  ;;  %v489_v59 = vmul.f32 %v8174_v48, %v8136_v33  ;;  %v8307_v47 = vpack.c.bf16 %v368_v45, %v367_v43  ;;  %v900_v43 = vmul.f32 %v8197_v55, %v8174_v48 }
  0xbf   : > { %7356 = vmatprep.subr.bf16.mxu0 %v8307_v47 }
  0xc0   : > { %475 = vrot.lane.b32.xlu0 %v470_v49, %s7986_s16  ;;  %v8249_v12 = vpop.permute.xlu0 %538  ;;  %v381_v49 = vld [vmem:[%s9732_s6 + $0x48] sm:$0xff]  ;;  %7358 = vmatpush3.bf16.msra.mxu0 %v8307_v47 }
  0xc1   : > { %v8204_v58 = vpop.permute.xlu1 %518  ;;  %643 = vrot.lane.b32.xlu1 %v639_v53, %s7987_s17  ;;  %v671_v23 = vmul.f32 %v8197_v55, %v8249_v12  ;;  %v8313_v50 = vpack.c.bf16 %v381_v49, %v380_v46  ;;  %v382_v53 = vld [vmem:[%s9732_s6 + $0x50] sm:$0xff]  ;;  %v545_v0 = vmul.f32 %v8249_v12, %v8158_v41  ;;  %v901_v46 = vmul.f32 %v8197_v55, %v8208_v60 }
  0xc2   : > { %v659_v61 = vmul.f32 %v8197_v55, %v8204_v58  ;;  %v525_v39 = vmul.f32 %v8204_v58, %v8158_v41  ;;  %v1024_v49 = vmul.f32 %v8103_v15, %v8249_v12 }
  0xc3   : > { %7380 = vmatprep.subr.bf16.mxu1 %v8313_v50 }
  0xc4   : > { %493 = vrot.lane.b32.xlu0 %v489_v59, %s7987_s17  ;;  %v8331_v59 = vpack.c.bf16 %v370_v52, %v369_v51  ;;  %7382 = vmatpush3.bf16.msra.mxu1 %v8313_v50 }
  0xc5   : > { %v8228_v2 = vpop.permute.xlu1 %522  ;;  %663 = vrot.lane.b32.xlu1 %v659_v61, %s7986_s16  ;;  %v383_v61 = vld [vmem:[%s9732_s6 + $0x58] sm:$0xff] }
  0xc6   : > { %v660_v7 = vmul.f32 %v8197_v55, %v8228_v2  ;;  %v526_v54 = vmul.f32 %v8228_v2, %v8158_v41  ;;  %v8339_v63 = vpack.c.bf16 %v383_v61, %v382_v53  ;;  %7360 = vmatprep.subr.bf16.mxu0 %v8331_v59  ;;  %v1013_v45 = vmul.f32 %v8103_v15, %v8228_v2 }
  0xc7   : > { %7362 = vmatpush3.bf16.msra.mxu0 %v8331_v59 }
  0xc8   : > { %495 = vrot.lane.b32.xlu0 %v490_v4, %s7987_s17  ;;  %v953_v4 = vmul.f32 %v8197_v55, %v8145_v37  ;;  %7384 = vmatprep.subr.bf16.mxu1 %v8339_v63 }
  0xc9   : > { %665 = vrot.lane.b32.xlu1 %v660_v7, %s7986_s16  ;;  %6607 = vmatprep.subr.msk.mxu0 %vm696_vm0, %v8351_v1 }
  0xca   : > { %v8278_v29 = vpop.permute.xlu1 %542  ;;  %7386 = vmatpush3.bf16.msra.mxu1 %v8339_v63 }
  0xcb   : > { %v672_v40 = vmul.f32 %v8197_v55, %v8278_v29  ;;  %v546_v7 = vmul.f32 %v8278_v29, %v8158_v41  ;;  %6636 = vmatprep.subr.msk.mxu1 %vm696_vm0, %v8363_v8  ;;  %6608 = vmatpush3.msk.msra.mxu0 %vm696_vm0, %v8351_v1  ;;  %v1025_v53 = vmul.f32 %v8103_v15, %v8278_v29 }
  0xcc   : > { %645 = vrot.lane.b32.xlu0 %v640_v27, %s7987_s17  ;;  %7388 = vmatprep.subr.bf16.mxu0 %v8199_v56  ;;  %v888_v27 = vmul.f32 %v8197_v55, %v8160_v42 }
  0xcd   : > { %675 = vrot.lane.b32.xlu1 %v671_v23, %s7987_s17  ;;  %v8389_v23 = vrot.slane %v8098_v11, %v914_v28  ;;  %v873_v11 = vmul.f32 %v8147_v38, %v8158_v41 }
  0xce   : > { %6637 = vmatpush3.msk.msra.mxu1 %vm696_vm0, %v8363_v8 }
  0xcf   : > { %7412 = vmatprep.subr.bf16.mxu1 %v8201_v57  ;;  %v980_v25 = vmul.f32 %v8389_v23, %v8160_v42  ;;  %v981_v3 = vmul.f32 %v8389_v23, %v8164_v44  ;;  %v992_v28 = vmul.f32 %v8389_v23, %v8174_v48  ;;  %v993_v31 = vmul.f32 %v8389_v23, %v8208_v60  ;;  %v8433_v51 = vpop.permute.xlu1 %572 }
  0xd0   : > { %529 = vrot.lane.b32.xlu0 %v525_v39, %s7986_s16  ;;  %v889_v39 = vmul.f32 %v8197_v55, %v8164_v44  ;;  %v920_v52 = vmul.f32 %v8389_v23, %v8204_v58 }
  0xd1   : > { %677 = vrot.lane.b32.xlu1 %v672_v40, %s7987_s17  ;;  %v1012_v40 = vmul.f32 %v8103_v15, %v8204_v58 }
  0xd4   : > { %531 = vrot.lane.b32.xlu0 %v526_v54, %s7986_s16  ;;  %v921_v54 = vmul.f32 %v8389_v23, %v8228_v2  ;;  %v8444_v61 = vpop.permute.xlu1 %445 }
  0xd5   : > { %956 = vrot.lane.b32.xlu1 %v952_v62, %s7986_s16  ;;  %v1297_v62 = vmul.f32 %v8103_v15, %v8138_v34 }
  0xd8   : > { %549 = vrot.lane.b32.xlu0 %v545_v0, %s7987_s17  ;;  %v932_v0 = vmul.f32 %v8389_v23, %v8249_v12 }
  0xd9   : > { %958 = vrot.lane.b32.xlu1 %v953_v4, %s7986_s16  ;;  %v1298_v4 = vmul.f32 %v8103_v15, %v8145_v37 }
  0xdc   : > { %551 = vrot.lane.b32.xlu0 %v546_v7, %s7987_s17  ;;  %v8455_v7 = vpop.permute.xlu1 %450 }
  0xdd   : > { %968 = vrot.lane.b32.xlu1 %v964_v9, %s7987_s17  ;;  %v933_v9 = vmul.f32 %v8389_v23, %v8278_v29 }
  0xe0   : > { %864 = vrot.lane.b32.xlu0 %v860_v10, %s7986_s16  ;;  %v1309_v10 = vmul.f32 %v8103_v15, %v8140_v35 }
  0xe1   : > { %970 = vrot.lane.b32.xlu1 %v965_v13, %s7987_s17  ;;  %v1205_v13 = vmul.f32 %v8389_v23, %v8138_v34 }
  0xe4   : > { %866 = vrot.lane.b32.xlu0 %v861_v24, %s7986_s16  ;;  %v8466_v24 = vpop.permute.xlu1 %502 }
  0xe5   : > { %984 = vrot.lane.b32.xlu1 %v980_v25, %s7986_s16  ;;  %v1310_v25 = vmul.f32 %v8103_v15, %v8147_v38 }
  0xe8   : > { %876 = vrot.lane.b32.xlu0 %v872_v26, %s7987_s17  ;;  %v1206_v26 = vmul.f32 %v8389_v23, %v8145_v37 }
  0xe9   : > { %986 = vrot.lane.b32.xlu1 %v981_v3, %s7986_s16  ;;  %v1325_v3 = vmul.f32 %v8106_v16, %v8160_v42 }
  0xec   : > { %878 = vrot.lane.b32.xlu0 %v873_v11, %s7987_s17  ;;  %v8477_v11 = vpop.permute.xlu1 %506 }
  0xed   : > { %996 = vrot.lane.b32.xlu1 %v992_v28, %s7987_s17  ;;  %v1217_v28 = vmul.f32 %v8389_v23, %v8140_v35 }
  0xf0   : > { %892 = vrot.lane.b32.xlu0 %v888_v27, %s7986_s16  ;;  %v1326_v27 = vmul.f32 %v8106_v16, %v8164_v44 }
  0xf1   : > { %998 = vrot.lane.b32.xlu1 %v993_v31, %s7987_s17  ;;  %v1218_v31 = vmul.f32 %v8389_v23, %v8147_v38 }
  0xf4   : > { %894 = vrot.lane.b32.xlu0 %v889_v39, %s7986_s16  ;;  %v8488_v39 = vpop.permute.xlu1 %559 }
  0xf5   : > { %1016 = vrot.lane.b32.xlu1 %v1012_v40, %s7986_s16  ;;  %v1337_v40 = vmul.f32 %v8106_v16, %v8174_v48 }
  0xf8   : > { %904 = vrot.lane.b32.xlu0 %v900_v43, %s7987_s17  ;;  %v8493_v43 = vpop.permute.xlu0 %576 }
  0xf9   : > { %1018 = vrot.lane.b32.xlu1 %v1013_v45, %s7986_s16  ;;  %v1233_v45 = vmul.f32 %v8103_v15, %v8160_v42 }
  0xfc   : > { %906 = vrot.lane.b32.xlu0 %v901_v46, %s7987_s17  ;;  %v1338_v46 = vmul.f32 %v8106_v16, %v8208_v60 }
  0xfd   : > { %1028 = vrot.lane.b32.xlu1 %v1024_v49, %s7987_s17  ;;  %v8501_v49 = vpop.permute.xlu1 %564 }
 0x100   : > { %924 = vrot.lane.b32.xlu0 %v920_v52, %s7986_s16 }
 0x101   : > { %1030 = vrot.lane.b32.xlu1 %v1025_v53, %s7987_s17  ;;  %v1234_v53 = vmul.f32 %v8103_v15, %v8164_v44 }
 0x104   : > { %926 = vrot.lane.b32.xlu0 %v921_v54, %s7986_s16  ;;  %v1357_v54 = vmul.f32 %v8109_v17, %v8204_v58 }
 0x105   : > { %1301 = vrot.lane.b32.xlu1 %v1297_v62, %s7986_s16  ;;  %v580_v62 = vmul.f32 %v8493_v43, %v8136_v33 }
 0x108   : > { %936 = vrot.lane.b32.xlu0 %v932_v0, %s7987_s17 }
 0x109   : > { %1303 = vrot.lane.b32.xlu1 %v1298_v4, %s7986_s16 }
 0x10c   : > { %938 = vrot.lane.b32.xlu0 %v933_v9, %s7987_s17  ;;  %v1245_v9 = vmul.f32 %v8103_v15, %v8174_v48 }
 0x10d   : > { %1313 = vrot.lane.b32.xlu1 %v1309_v10, %s7987_s17  ;;  %v579_v10 = vmul.f32 %v8433_v51, %v8136_v33 }
 0x110   : > { %1209 = vrot.lane.b32.xlu0 %v1205_v13, %s7986_s16 }
 0x111   : > { %1315 = vrot.lane.b32.xlu1 %v1310_v25, %s7987_s17  ;;  %v1358_v25 = vmul.f32 %v8109_v17, %v8228_v2 }
 0x114   : > { %1211 = vrot.lane.b32.xlu0 %v1206_v26, %s7986_s16 }
 0x115   : > { %1329 = vrot.lane.b32.xlu1 %v1325_v3, %s7986_s16 }
 0x118   : > { %1221 = vrot.lane.b32.xlu0 %v1217_v28, %s7987_s17  ;;  %v624_v28 = vmul.f32 %v8158_v41, %v8455_v7 }
 0x119   : > { %1331 = vrot.lane.b32.xlu1 %v1326_v27, %s7986_s16 }
 0x11c   : > { %1223 = vrot.lane.b32.xlu0 %v1218_v31, %s7987_s17  ;;  %v1246_v31 = vmul.f32 %v8103_v15, %v8208_v60 }
 0x11d   : > { %1341 = vrot.lane.b32.xlu1 %v1337_v40, %s7987_s17 }
 0x120   : > { %1237 = vrot.lane.b32.xlu0 %v1233_v45, %s7986_s16  ;;  %v623_v45 = vmul.f32 %v8158_v41, %v8444_v61 }
 0x121   : > { %1343 = vrot.lane.b32.xlu1 %v1338_v46, %s7987_s17 }
 0x122   : > { %v596_v52 = vpop.permute.xlu0 %595 }
 0x123   : > { %v601_v26 = vadd.f32 %v596_v52, %v579_v10 }
 0x124   : > { %1239 = vrot.lane.b32.xlu0 %v1234_v53, %s7986_s16  ;;  %v1369_v53 = vmul.f32 %v8109_v17, %v8249_v12 }
 0x125   : > { %1361 = vrot.lane.b32.xlu1 %v1357_v54, %s7986_s16 }
 0x126   : > { %v598_v0 = vpop.permute.xlu0 %597 }
 0x127   : > { %v618_v4 = vpop.permute.xlu1 %617  ;;  %v602_v13 = vadd.f32 %v598_v0, %v580_v62  ;;  %v1265_v0 = vmul.f32 %v8106_v16, %v8204_v58 }
 0x128   : > { %1249 = vrot.lane.b32.xlu0 %v1245_v9, %s7987_s17  ;;  %v1370_v9 = vmul.f32 %v8109_v17, %v8278_v29 }
 0x129   : > { %v622_v3 = vadd.f32 %v618_v4, %v602_v13  ;;  %1363 = vrot.lane.b32.xlu1 %v1358_v25, %s7986_s16  ;;  %v1266_v25 = vmul.f32 %v8106_v16, %v8228_v2 }
 0x12a   : > { %v616_v27 = vpop.permute.xlu0 %615 }
 0x12b   : > { %v621_v40 = vadd.f32 %v616_v27, %v601_v26  ;;  %v632_v46 = vpop.permute.xlu1 %631  ;;  %v626_v54 = vadd.f32 %v624_v28, %v622_v3  ;;  %v457_v26 = vmul.f32 %v8136_v33, %v8444_v61  ;;  %v1642_v28 = vmul.f32 %v8109_v17, %v8138_v34 }
 0x12c   : > { %1251 = vrot.lane.b32.xlu0 %v1246_v31, %s7987_s17  ;;  %v655_v31 = vmul.f32 %v8197_v55, %v8466_v24 }
 0x12d   : > { %v625_v52 = vadd.f32 %v623_v45, %v621_v40  ;;  %1373 = vrot.lane.b32.xlu1 %v1369_v53, %s7987_s17  ;;  %v1277_v53 = vmul.f32 %v8106_v16, %v8249_v12 }
 0x12e   : > { %v474_v62 = vpop.permute.xlu0 %473 }
 0x12f   : > { %v634_v4 = vpop.permute.xlu1 %633  ;;  %v637_v10 = vadd.f32 %v632_v46, %v625_v52  ;;  %v479_v40 = vadd.f32 %v474_v62, %v457_v26  ;;  %v458_v52 = vmul.f32 %v8136_v33, %v8455_v7 }
 0x130   : > { %1269 = vrot.lane.b32.xlu0 %v1265_v0, %s7986_s16 }
 0x131   : > { %1375 = vrot.lane.b32.xlu1 %v1370_v9, %s7987_s17 }
 0x132   : > { %v476_v13 = vpop.permute.xlu0 %475 }
 0x133   : > { %v644_v3 = vpop.permute.xlu1 %643  ;;  %v480_v62 = vadd.f32 %v476_v13, %v458_v52  ;;  %v1550_v52 = vmul.f32 %v8106_v16, %v8138_v34 }
 0x134   : > { %v649_v27 = vadd.f32 %v644_v3, %v637_v10  ;;  %1271 = vrot.lane.b32.xlu0 %v1266_v25, %s7986_s16  ;;  %v1643_v10 = vmul.f32 %v8109_v17, %v8145_v37  ;;  %v513_v25 = vmul.f32 %v8158_v41, %v8466_v24 }
 0x135   : > { %1646 = vrot.lane.b32.xlu1 %v1642_v28, %s7986_s16  ;;  %v1278_v28 = vmul.f32 %v8106_v16, %v8278_v29 }
 0x136   : > { %v494_v45 = vpop.permute.xlu0 %493  ;;  %v657_v46 = vadd.f32 %v655_v31, %v649_v27  ;;  %v1654_v31 = vmul.f32 %v8109_v17, %v8140_v35 }
 0x137   : > { %v499_v0 = vadd.f32 %v494_v45, %v479_v40  ;;  %v664_v9 = vpop.permute.xlu1 %663  ;;  %v514_v40 = vmul.f32 %v8158_v41, %v8477_v11  ;;  %v638_v45 = vadd.f32 %v634_v4, %v626_v54  ;;  %v1551_v4 = vmul.f32 %v8106_v16, %v8145_v37 }
 0x138   : > { %1281 = vrot.lane.b32.xlu0 %v1277_v53, %s7987_s17 }
 0x139   : > { %1648 = vrot.lane.b32.xlu1 %v1643_v10, %s7986_s16  ;;  %v515_v26 = vadd.f32 %v513_v25, %v499_v0  ;;  %v656_v0 = vmul.f32 %v8197_v55, %v8477_v11 }
 0x13a   : > { %v496_v3 = vpop.permute.xlu0 %495 }
 0x13b   : > { %v500_v27 = vadd.f32 %v496_v3, %v480_v62  ;;  %v666_v33 = vpop.permute.xlu1 %665  ;;  %v1655_v62 = vmul.f32 %v8109_v17, %v8147_v38 }
 0x13c   : > { %1283 = vrot.lane.b32.xlu0 %v1278_v28, %s7987_s17 }
 0x13d   : > { %1658 = vrot.lane.b32.xlu1 %v1654_v31, %s7987_s17  ;;  %v516_v13 = vadd.f32 %v514_v40, %v500_v27  ;;  %v1670_v27 = vmul.f32 %v8112_v18, %v8160_v42  ;;  %v669_v31 = vadd.f32 %v664_v9, %v657_v46  ;;  %v1563_v46 = vmul.f32 %v8106_v16, %v8147_v38 }
 0x13e   : > { %v646_v53 = vpop.permute.xlu0 %645 }
 0x13f   : > { %v650_v10 = vadd.f32 %v646_v53, %v638_v45  ;;  %v676_v25 = vpop.permute.xlu1 %675  ;;  %v1562_v45 = vmul.f32 %v8106_v16, %v8140_v35 }
 0x140   : > { %1554 = vrot.lane.b32.xlu0 %v1550_v52, %s7986_s16  ;;  %v681_v53 = vadd.f32 %v676_v25, %v669_v31  ;;  %v948_v25 = vmul.f32 %v8197_v55, %v8433_v51 }
 0x141   : > { %v658_v3 = vadd.f32 %v656_v0, %v650_v10  ;;  %1660 = vrot.lane.b32.xlu1 %v1655_v62, %s7987_s17  ;;  %v1671_v10 = vmul.f32 %v8112_v18, %v8164_v44 }
 0x142   : > { %v530_v54 = vpop.permute.xlu0 %529  ;;  %v683_v9 = vadd.f32 %v681_v53, %v8488_v39 }
 0x143   : > { %v678_v28 = vpop.permute.xlu1 %677  ;;  %v670_v52 = vadd.f32 %v666_v33, %v658_v3  ;;  %v535_v62 = vadd.f32 %v530_v54, %v515_v26  ;;  %v1682_v33 = vmul.f32 %v8112_v18, %v8174_v48 }
 0x144   : > { %1556 = vrot.lane.b32.xlu0 %v1551_v4, %s7986_s16 }
 0x145   : > { %1674 = vrot.lane.b32.xlu1 %v1670_v27, %s7986_s16  ;;  %v682_v4 = vadd.f32 %v678_v28, %v670_v52  ;;  %v1578_v28 = vmul.f32 %v8109_v17, %v8160_v42 }
 0x146   : > { %v532_v40 = vpop.permute.xlu0 %531 }
 0x147   : > { %v957_v0 = vpop.permute.xlu1 %956  ;;  %v536_v26 = vadd.f32 %v532_v40, %v516_v13  ;;  %v949_v13 = vmul.f32 %v8197_v55, %v8493_v43 }
 0x148   : > { %1566 = vrot.lane.b32.xlu0 %v1562_v45, %s7987_s17  ;;  %v962_v54 = vadd.f32 %v957_v0, %v948_v25  ;;  %v684_v45 = vadd.f32 %v682_v4, %v8501_v49  ;;  %v976_v0 = vmul.f32 %v8389_v23, %v8444_v61 }
 0x149   : > { %1676 = vrot.lane.b32.xlu1 %v1671_v10, %s7986_s16 }
 0x14a   : > { %v550_v30 = vpop.permute.xlu0 %549 }
 0x14b   : > { %v555_v27 = vadd.f32 %v550_v30, %v535_v62  ;;  %v959_v21 = vpop.permute.xlu1 %958  ;;  %v1683_v30 = vmul.f32 %v8112_v18, %v8208_v60  ;;  %v685_v62 = vmax.f32 %v683_v9, 0.0  ;;  %v1579_v9 = vmul.f32 %v8109_v17, %v8164_v44 }
 0x14c   : > { %1568 = vrot.lane.b32.xlu0 %v1563_v46, %s7987_s17  ;;  %v963_v4 = vadd.f32 %v959_v21, %v949_v13  ;;  %v977_v21 = vmul.f32 %v8389_v23, %v8455_v7  ;;  %v1703_v13 = vmul.f32 %v8114_v19, %v8228_v2 }
 0x14d   : > { %v567_v3 = vadd.f32 %v8488_v39, %v555_v27  ;;  %1686 = vrot.lane.b32.xlu1 %v1682_v33, %s7987_s17 }
 0x14e   : > { %v552_v31 = vpop.permute.xlu0 %551 }
 0x14f   : > { %v556_v53 = vadd.f32 %v552_v31, %v536_v26  ;;  %v969_v52 = vpop.permute.xlu1 %968  ;;  %v569_v10 = vmax.f32 %v567_v3, 0.0  ;;  %v686_v26 = vmax.f32 %v684_v45, 0.0  ;;  %v1702_v31 = vmul.f32 %v8114_v19, %v8204_v58 }
 0x150   : > { %v974_v40 = vadd.f32 %v969_v52, %v962_v54  ;;  %1582 = vrot.lane.b32.xlu0 %v1578_v28, %s7986_s16  ;;  %v1590_v45 = vmul.f32 %v8109_v17, %v8174_v48 }
 0x151   : > { %v568_v46 = vadd.f32 %v8501_v49, %v556_v53  ;;  %1688 = vrot.lane.b32.xlu1 %v1683_v30, %s7987_s17  ;;  %v687_v27 = vmax.f32 %v569_v10, %v685_v62  ;;  %v856_v10 = vmul.f32 %v8433_v51, %v8158_v41 }
 0x152   : > { %v865_v33 = vpop.permute.xlu0 %864  ;;  %v978_v25 = vadd.f32 %v976_v0, %v974_v40 }
 0x153   : > { %v570_v3 = vmax.f32 %v568_v46, 0.0  ;;  %v971_v54 = vpop.permute.xlu1 %970  ;;  %6609 = vmatprep.mubr.msk.f32.mxu0 %vm689_vm1, %v687_v27  ;;  %6638 = vmatprep.mubr.msk.f32.mxu1 %vm689_vm1, %v687_v27  ;;  %v870_v40 = vadd.f32 %v865_v33, %v856_v10  ;;  %v1591_v46 = vmul.f32 %v8109_v17, %v8208_v60  ;;  %v857_v27 = vmul.f32 %v8493_v43, %v8158_v41 }
 0x154   : > { %v975_v28 = vadd.f32 %v971_v54, %v963_v4  ;;  %1584 = vrot.lane.b32.xlu0 %v1579_v9, %s7986_s16  ;;  %v1714_v33 = vmul.f32 %v8114_v19, %v8249_v12 }
 0x155   : > { %v688_v30 = vmax.f32 %v570_v3, %v686_v26  ;;  %1706 = vrot.lane.b32.xlu1 %v1702_v31, %s7986_s16  ;;  %v884_v26 = vmul.f32 %v8197_v55, %v8444_v61 }
 0x156   : > { %v867_v53 = vpop.permute.xlu0 %866  ;;  %v979_v52 = vadd.f32 %v977_v21, %v975_v28  ;;  %v1610_v28 = vmul.f32 %v8112_v18, %v8204_v58 }
 0x157   : > { %v985_v62 = vpop.permute.xlu1 %984  ;;  %6610 = vmatmul.mubr.msk.f32.vlgmr.msra.gmra.mrb[0].mxu0 %vm689_vm1, %v688_v30  ;;  %6639 = vmatmul.mubr.msk.f32.vlgmr.msra.gmra.mrb[0].mxu1 %vm689_vm1, %v688_v30  ;;  %v871_v3 = vadd.f32 %v867_v53, %v857_v27  ;;  %v885_v53 = vmul.f32 %v8197_v55, %v8455_v7  ;;  %v1987_v27 = vmul.f32 %v8114_v19, %v8138_v34 }
 0x158   : > { %1594 = vrot.lane.b32.xlu0 %v1590_v45, %s7987_s17  ;;  %7390 = vmatpush3.bf16.msra.mxu0 %v8199_v56  ;;  %v990_v31 = vadd.f32 %v985_v62, %v978_v25  ;;  %v1715_v45 = vmul.f32 %v8114_v19, %v8278_v29  ;;  %v1008_v25 = vmul.f32 %v8103_v15, %v8466_v24 }
 0x159   : > { %1708 = vrot.lane.b32.xlu1 %v1703_v13, %s7986_s16  ;;  %7414 = vmatpush3.bf16.msra.mxu1 %v8201_v57 }
 0x15a   : > { %v877_v0 = vpop.permute.xlu0 %876  ;;  %7392 = vmatprep.subr.bf16.mxu0 %v8233_v5  ;;  %7416 = vmatprep.subr.bf16.mxu1 %v8235_v6 }
 0x15b   : > { %v882_v4 = vadd.f32 %v877_v0, %v870_v40  ;;  %v987_v9 = vpop.permute.xlu1 %986  ;;  %v1611_v0 = vmul.f32 %v8112_v18, %v8228_v2 }
 0x15c   : > { %1596 = vrot.lane.b32.xlu0 %v1591_v46, %s7987_s17  ;;  %7394 = vmatpush3.bf16.msra.mxu0 %v8233_v5  ;;  %v991_v13 = vadd.f32 %v987_v9, %v979_v52  ;;  %v1622_v9 = vmul.f32 %v8112_v18, %v8249_v12 }
 0x15d   : > { %1718 = vrot.lane.b32.xlu1 %v1714_v33, %s7987_s17  ;;  %v886_v54 = vadd.f32 %v884_v26, %v882_v4  ;;  %7418 = vmatpush3.bf16.msra.mxu1 %v8235_v6  ;;  %v1009_v33 = vmul.f32 %v8103_v15, %v8477_v11 }
 0x15e   : > { %v879_v41 = vpop.permute.xlu0 %878  ;;  %7396 = vmatprep.subr.bf16.mxu0 %v8257_v14  ;;  %7420 = vmatprep.subr.bf16.mxu1 %v8259_v22 }
 0x15f   : > { %v883_v21 = vadd.f32 %v879_v41, %v871_v3  ;;  %v997_v30 = vpop.permute.xlu1 %996 }
 0x160   : > { %v1002_v10 = vadd.f32 %v997_v30, %v990_v31  ;;  %1614 = vrot.lane.b32.xlu0 %v1610_v28, %s7986_s16  ;;  %7398 = vmatpush3.bf16.msra.mxu0 %v8257_v14  ;;  %v1988_v31 = vmul.f32 %v8114_v19, %v8145_v37 }
 0x161   : > { %1720 = vrot.lane.b32.xlu1 %v1715_v45, %s7987_s17  ;;  %v887_v62 = vadd.f32 %v885_v53, %v883_v21  ;;  %7422 = vmatpush3.bf16.msra.mxu1 %v8259_v22  ;;  %v1623_v21 = vmul.f32 %v8112_v18, %v8278_v29  ;;  %v1999_v53 = vmul.f32 %v8114_v19, %v8140_v35 }
 0x162   : > { %v893_v40 = vpop.permute.xlu0 %892  ;;  %v1010_v46 = vadd.f32 %v1008_v25, %v1002_v10  ;;  %7400 = vmatprep.subr.bf16.mxu0 %v8285_v32  ;;  %7424 = vmatprep.subr.bf16.mxu1 %v8287_v36 }
 0x163   : > { %v999_v55 = vpop.permute.xlu1 %998  ;;  %v898_v41 = vadd.f32 %v893_v40, %v886_v54  ;;  %v916_v54 = vmul.f32 %v8389_v23, %v8466_v24  ;;  %v1895_v40 = vmul.f32 %v8112_v18, %v8138_v34 }
 0x164   : > { %v1003_v4 = vadd.f32 %v999_v55, %v991_v13  ;;  %1616 = vrot.lane.b32.xlu0 %v1611_v0, %s7986_s16  ;;  %7402 = vmatpush3.bf16.msra.mxu0 %v8285_v32 }
 0x165   : > { %1991 = vrot.lane.b32.xlu1 %v1987_v27, %s7986_s16  ;;  %7426 = vmatpush3.bf16.msra.mxu1 %v8287_v36  ;;  %v917_v27 = vmul.f32 %v8389_v23, %v8477_v11 }
 0x166   : > { %v895_v52 = vpop.permute.xlu0 %894  ;;  %v1011_v26 = vadd.f32 %v1009_v33, %v1003_v4  ;;  %7404 = vmatprep.subr.bf16.mxu0 %v8307_v47  ;;  %7428 = vmatprep.subr.bf16.mxu1 %v8313_v50 }
 0x167   : > { %v1017_v3 = vpop.permute.xlu1 %1016  ;;  %v899_v10 = vadd.f32 %v895_v52, %v887_v62  ;;  %v2000_v62 = vmul.f32 %v8114_v19, %v8147_v38  ;;  %v1896_v52 = vmul.f32 %v8112_v18, %v8145_v37 }
 0x168   : > { %1626 = vrot.lane.b32.xlu0 %v1622_v9, %s7987_s17  ;;  %7406 = vmatpush3.bf16.msra.mxu0 %v8307_v47 }
 0x169   : > { %1993 = vrot.lane.b32.xlu1 %v1988_v31, %s7986_s16  ;;  %7430 = vmatpush3.bf16.msra.mxu1 %v8313_v50  ;;  %v2015_v31 = vmul.f32 %v8118_v20, %v8160_v42 }
 0x16a   : > { %v905_v28 = vpop.permute.xlu0 %904  ;;  %7408 = vmatprep.subr.bf16.mxu0 %v8331_v59  ;;  %7432 = vmatprep.subr.bf16.mxu1 %v8339_v63 }
 0x16b   : > { %v910_v30 = vadd.f32 %v905_v28, %v898_v41  ;;  %v1019_v45 = vpop.permute.xlu1 %1018  ;;  %v1022_v41 = vadd.f32 %v1017_v3, %v1010_v46  ;;  %v1908_v46 = vmul.f32 %v8112_v18, %v8147_v38 }
 0x16c   : > { %1628 = vrot.lane.b32.xlu0 %v1623_v21, %s7987_s17  ;;  %7410 = vmatpush3.bf16.msra.mxu0 %v8331_v59  ;;  %v1907_v21 = vmul.f32 %v8112_v18, %v8140_v35 }
 0x16d   : > { %2003 = vrot.lane.b32.xlu1 %v1999_v53, %s7987_s17  ;;  %v918_v25 = vadd.f32 %v916_v54, %v910_v30  ;;  %7434 = vmatpush3.bf16.msra.mxu1 %v8339_v63  ;;  %v2016_v54 = vmul.f32 %v8118_v20, %v8164_v44 }
 0x16e   : > { %v907_v13 = vpop.permute.xlu0 %906  ;;  %6665 = vmatprep.subr.msk.mxu0 %vm696_vm0, %v8351_v1  ;;  %6694 = vmatprep.subr.msk.mxu1 %vm696_vm0, %v8363_v8 }
 0x16f   : > { %v911_v0 = vadd.f32 %v907_v13, %v899_v10  ;;  %v1029_v55 = vpop.permute.xlu1 %1028  ;;  %v1023_v10 = vadd.f32 %v1019_v45, %v1011_v26 }
 0x170   : > { %1899 = vrot.lane.b32.xlu0 %v1895_v40, %s7986_s16  ;;  %6666 = vmatpush3.msk.msra.mxu0 %vm696_vm0, %v8351_v1  ;;  %v1034_v30 = vadd.f32 %v1029_v55, %v1022_v41  ;;  %v2027_v55 = vmul.f32 %v8118_v20, %v8174_v48 }
 0x171   : > { %2005 = vrot.lane.b32.xlu1 %v2000_v62, %s7987_s17  ;;  %v919_v4 = vadd.f32 %v917_v27, %v911_v0  ;;  %6695 = vmatpush3.msk.msra.mxu1 %vm696_vm0, %v8363_v8 }
 0x172   : > { %v925_v33 = vpop.permute.xlu0 %924  ;;  %7436 = vmatprep.subr.bf16.mxu0 %v8199_v56  ;;  %7460 = vmatprep.subr.bf16.mxu1 %v8201_v57  ;;  %v1036_v3 = vadd.f32 %v1034_v30, %v8488_v39 }
 0x173   : > { %v1031_v9 = vpop.permute.xlu1 %1030  ;;  %v930_v13 = vadd.f32 %v925_v33, %v918_v25 }
 0x174   : > { %1901 = vrot.lane.b32.xlu0 %v1896_v52, %s7986_s16  ;;  %v1035_v0 = vadd.f32 %v1031_v9, %v1023_v10  ;;  %v1293_v52 = vmul.f32 %v8103_v15, %v8433_v51  ;;  %v1923_v9 = vmul.f32 %v8114_v19, %v8160_v42  ;;  %v1038_v41 = vmax.f32 %v1036_v3, 0.0 }
 0x175   : > { %2019 = vrot.lane.b32.xlu1 %v2015_v31, %s7986_s16  ;;  %v2028_v31 = vmul.f32 %v8118_v20, %v8208_v60 }
 0x176   : > { %v927_v28 = vpop.permute.xlu0 %926 }
 0x177   : > { %v1302_v53 = vpop.permute.xlu1 %1301  ;;  %v931_v26 = vadd.f32 %v927_v28, %v919_v4  ;;  %v1294_v4 = vmul.f32 %v8103_v15, %v8493_v43 }
 0x178   : > { %1911 = vrot.lane.b32.xlu0 %v1907_v21, %s7987_s17  ;;  %v1307_v25 = vadd.f32 %v1302_v53, %v1293_v52  ;;  %v1037_v21 = vadd.f32 %v1035_v0, %v8501_v49  ;;  %v1321_v53 = vmul.f32 %v8106_v16, %v8444_v61  ;;  %v1924_v0 = vmul.f32 %v8114_v19, %v8164_v44 }
 0x179   : > { %2021 = vrot.lane.b32.xlu1 %v2016_v54, %s7986_s16 }
 0x17a   : > { %v937_v40 = vpop.permute.xlu0 %936 }
 0x17b   : > { %v942_v62 = vadd.f32 %v937_v40, %v930_v13  ;;  %v1304_v27 = vpop.permute.xlu1 %1303 }
 0x17c   : > { %1913 = vrot.lane.b32.xlu0 %v1908_v46, %s7987_s17  ;;  %v1308_v46 = vadd.f32 %v1304_v27, %v1294_v4  ;;  %v1322_v27 = vmul.f32 %v8106_v16, %v8455_v7 }
 0x17d   : > { %v944_v45 = vadd.f32 %v942_v62, %v8488_v39  ;;  %2031 = vrot.lane.b32.xlu1 %v2027_v55, %s7987_s17  ;;  %v1039_v55 = vmax.f32 %v1037_v21, 0.0 }
 0x17e   : > { %v939_v33 = vpop.permute.xlu0 %938 }
 0x17f   : > { %v946_v30 = vmax.f32 %v944_v45, 0.0  ;;  %v943_v54 = vadd.f32 %v939_v33, %v931_v26  ;;  %v1314_v10 = vpop.permute.xlu1 %1313  ;;  %v9747_v45 = vld [vmem:[#allocation5_spill] sm:$0xff] }
 0x180   : > { %v1319_v28 = vadd.f32 %v1314_v10, %v1307_v25  ;;  %1927 = vrot.lane.b32.xlu0 %v1923_v9, %s7986_s16  ;;  %v2047_v25 = vmul.f32 %v9747_v45, %v8204_v58  ;;  %v2048_v10 = vmul.f32 %v9747_v45, %v8228_v2 }
 0x181   : > { %v1040_v13 = vmax.f32 %v946_v30, %v1038_v41  ;;  %v945_v40 = vadd.f32 %v943_v54, %v8501_v49  ;;  %2033 = vrot.lane.b32.xlu1 %v2028_v31, %s7987_s17  ;;  %v1935_v41 = vmul.f32 %v8114_v19, %v8174_v48  ;;  %v1201_v30 = vmul.f32 %v8389_v23, %v8433_v51 }
 0x182   : > { %v1210_v3 = vpop.permute.xlu0 %1209  ;;  %v1323_v62 = vadd.f32 %v1321_v53, %v1319_v28  ;;  %v1936_v53 = vmul.f32 %v8114_v19, %v8208_v60 }
 0x183   : > { %v947_v52 = vmax.f32 %v945_v40, 0.0  ;;  %v1316_v26 = vpop.permute.xlu1 %1315  ;;  %6667 = vmatprep.mubr.msk.f32.mxu0 %vm689_vm1, %v1040_v13  ;;  %6696 = vmatprep.mubr.msk.f32.mxu1 %vm689_vm1, %v1040_v13  ;;  %v1215_v4 = vadd.f32 %v1210_v3, %v1201_v30  ;;  %v1202_v13 = vmul.f32 %v8389_v23, %v8493_v43  ;;  %v2059_v3 = vmul.f32 %v9747_v45, %v8249_v12 }
 0x184   : > { %v1320_v33 = vadd.f32 %v1316_v26, %v1308_v46  ;;  %1929 = vrot.lane.b32.xlu0 %v1924_v0, %s7986_s16  ;;  %v1229_v0 = vmul.f32 %v8103_v15, %v8444_v61 }
 0x185   : > { %v1041_v9 = vmax.f32 %v947_v52, %v1039_v55  ;;  %2051 = vrot.lane.b32.xlu1 %v2047_v25, %s7986_s16  ;;  %v1955_v25 = vmul.f32 %v8118_v20, %v8204_v58 }
 0x186   : > { %v1212_v31 = vpop.permute.xlu0 %1211  ;;  %v1324_v21 = vadd.f32 %v1322_v27, %v1320_v33 }
 0x187   : > { %v1330_v54 = vpop.permute.xlu1 %1329  ;;  %6668 = vmatmul.mubr.msk.f32.vlgmr.msra.gmra.mrb[2].mxu0 %vm689_vm1, %v1041_v9  ;;  %6697 = vmatmul.mubr.msk.f32.vlgmr.msra.gmra.mrb[2].mxu1 %vm689_vm1, %v1041_v9  ;;  %v1216_v55 = vadd.f32 %v1212_v31, %v1202_v13  ;;  %v2060_v9 = vmul.f32 %v9747_v45, %v8278_v29  ;;  %v1230_v31 = vmul.f32 %v8103_v15, %v8455_v7 }
 0x188   : > { %1939 = vrot.lane.b32.xlu0 %v1935_v41, %s7987_s17  ;;  %7438 = vmatpush3.bf16.msra.mxu0 %v8199_v56  ;;  %v1335_v26 = vadd.f32 %v1330_v54, %v1323_v62  ;;  %v1353_v62 = vmul.f32 %v8109_v17, %v8466_v24 }
 0x189   : > { %2053 = vrot.lane.b32.xlu1 %v2048_v10, %s7986_s16  ;;  %7462 = vmatpush3.bf16.msra.mxu1 %v8201_v57 }
 0x18a   : > { %v1222_v28 = vpop.permute.xlu0 %1221  ;;  %7440 = vmatprep.subr.bf16.mxu0 %v8233_v5  ;;  %7464 = vmatprep.subr.bf16.mxu1 %v8235_v6 }
 0x18b   : > { %v1227_v40 = vadd.f32 %v1222_v28, %v1215_v4  ;;  %v1332_v46 = vpop.permute.xlu1 %1331  ;;  %v1956_v4 = vmul.f32 %v8118_v20, %v8228_v2 }
 0x18c   : > { %1941 = vrot.lane.b32.xlu0 %v1936_v53, %s7987_s17  ;;  %7442 = vmatpush3.bf16.msra.mxu0 %v8233_v5  ;;  %v1336_v54 = vadd.f32 %v1332_v46, %v1324_v21  ;;  %v2241_v53 = vmul.f32 %v8118_v20, %v8145_v37  ;;  %v1967_v46 = vmul.f32 %v8118_v20, %v8249_v12 }
 0x18d   : > { %2063 = vrot.lane.b32.xlu1 %v2059_v3, %s7987_s17  ;;  %v1231_v52 = vadd.f32 %v1229_v0, %v1227_v40  ;;  %7466 = vmatpush3.bf16.msra.mxu1 %v8235_v6  ;;  %v1354_v40 = vmul.f32 %v8109_v17, %v8477_v11 }
 0x18e   : > { %v1224_v23 = vpop.permute.xlu0 %1223  ;;  %7444 = vmatprep.subr.bf16.mxu0 %v8257_v14  ;;  %7468 = vmatprep.subr.bf16.mxu1 %v8259_v22 }
 0x18f   : > { %v1228_v33 = vadd.f32 %v1224_v23, %v1216_v55  ;;  %v1342_v27 = vpop.permute.xlu1 %1341  ;;  %v2253_v55 = vmul.f32 %v8118_v20, %v8147_v38 }
 0x190   : > { %v1347_v41 = vadd.f32 %v1342_v27, %v1335_v26  ;;  %1959 = vrot.lane.b32.xlu0 %v1955_v25, %s7986_s16  ;;  %7446 = vmatpush3.bf16.msra.mxu0 %v8257_v14  ;;  %v1968_v25 = vmul.f32 %v8118_v20, %v8278_v29 }
 0x191   : > { %2065 = vrot.lane.b32.xlu1 %v2060_v9, %s7987_s17  ;;  %v1232_v30 = vadd.f32 %v1230_v31, %v1228_v33  ;;  %7470 = vmatpush3.bf16.msra.mxu1 %v8259_v22  ;;  %v2332_v9 = vmul.f32 %v9747_v45, %v8138_v34 }
 0x192   : > { %v1238_v10 = vpop.permute.xlu0 %1237  ;;  %v1355_v28 = vadd.f32 %v1353_v62, %v1347_v41  ;;  %7448 = vmatprep.subr.bf16.mxu0 %v8285_v32  ;;  %7472 = vmatprep.subr.bf16.mxu1 %v8287_v36 }
 0x193   : > { %v1344_v15 = vpop.permute.xlu1 %1343  ;;  %v1243_v26 = vadd.f32 %v1238_v10, %v1231_v52  ;;  %v1261_v52 = vmul.f32 %v8106_v16, %v8466_v24 }
 0x194   : > { %v1348_v13 = vadd.f32 %v1344_v15, %v1336_v54  ;;  %1961 = vrot.lane.b32.xlu0 %v1956_v4, %s7986_s16  ;;  %7450 = vmatpush3.bf16.msra.mxu0 %v8285_v32  ;;  %v2240_v54 = vmul.f32 %v8118_v20, %v8138_v34  ;;  %v1262_v15 = vmul.f32 %v8106_v16, %v8477_v11 }
 0x195   : > { %2246 = vrot.lane.b32.xlu1 %v2241_v53, %s7986_s16  ;;  %7474 = vmatpush3.bf16.msra.mxu1 %v8287_v36 }
 0x196   : > { %v1240_v21 = vpop.permute.xlu0 %1239  ;;  %v1356_v3 = vadd.f32 %v1354_v40, %v1348_v13  ;;  %7452 = vmatprep.subr.bf16.mxu0 %v8307_v47  ;;  %7476 = vmatprep.subr.bf16.mxu1 %v8313_v50  ;;  %v2252_v13 = vmul.f32 %v8118_v20, %v8140_v35  ;;  %v2344_v40 = vmul.f32 %v9747_v45, %v8140_v35 }
 0x197   : > { %v1362_v0 = vpop.permute.xlu1 %1361  ;;  %v1244_v31 = vadd.f32 %v1240_v21, %v1232_v30  ;;  %v2333_v30 = vmul.f32 %v9747_v45, %v8145_v37 }
 0x198   : > { %1971 = vrot.lane.b32.xlu0 %v1967_v46, %s7987_s17  ;;  %7454 = vmatpush3.bf16.msra.mxu0 %v8307_v47 }
 0x199   : > { %2258 = vrot.lane.b32.xlu1 %v2253_v55, %s7987_s17  ;;  %7478 = vmatpush3.bf16.msra.mxu1 %v8313_v50 }
 0x19a   : > { %v1250_v23 = vpop.permute.xlu0 %1249  ;;  %7456 = vmatprep.subr.bf16.mxu0 %v8331_v59  ;;  %7480 = vmatprep.subr.bf16.mxu1 %v8339_v63 }
 0x19b   : > { %v1255_v33 = vadd.f32 %v1250_v23, %v1243_v26  ;;  %v1364_v27 = vpop.permute.xlu1 %1363  ;;  %v2345_v26 = vmul.f32 %v9747_v45, %v8147_v38  ;;  %v1638_v38 = vmul.f32 %v8109_v17, %v8433_v51 }
 0x19c   : > { %1973 = vrot.lane.b32.xlu0 %v1968_v25, %s7987_s17  ;;  %7458 = vmatpush3.bf16.msra.mxu0 %v8331_v59  ;;  %v1368_v23 = vadd.f32 %v1364_v27, %v1356_v3 }
 0x19d   : > { %2336 = vrot.lane.b32.xlu1 %v2332_v9, %s7986_s16  ;;  %v1263_v41 = vadd.f32 %v1261_v52, %v1255_v33  ;;  %7482 = vmatpush3.bf16.msra.mxu1 %v8339_v63 }
 0x19e   : > { %v1252_v62 = vpop.permute.xlu0 %1251  ;;  %6723 = vmatprep.subr.msk.mxu0 %vm696_vm0, %v8351_v1  ;;  %6752 = vmatprep.subr.msk.mxu1 %vm696_vm0, %v8363_v8 }
 0x19f   : > { %v1256_v10 = vadd.f32 %v1252_v62, %v1244_v31  ;;  %v1374_v4 = vpop.permute.xlu1 %1373  ;;  %v9748_v31 = vld [vmem:[#allocation6_spill] sm:$0xff] }
 0x1a0   : > { %2244 = vrot.lane.b32.xlu0 %v2240_v54, %s7986_s16  ;;  %6724 = vmatpush3.msk.msra.mxu0 %vm696_vm0, %v8351_v1  ;;  %v1367_v1 = vadd.f32 %v1362_v0, %v1355_v28  ;;  %v2269_v28 = vmul.f32 %v9747_v45, %v8164_v44  ;;  %v2360_v62 = vmul.f32 %v9748_v31, %v8160_v42 }
 0x1a1   : > { %2338 = vrot.lane.b32.xlu1 %v2333_v30, %s7986_s16  ;;  %v1264_v34 = vadd.f32 %v1262_v15, %v1256_v10  ;;  %6753 = vmatpush3.msk.msra.mxu1 %vm696_vm0, %v8363_v8  ;;  %v2268_v8 = vmul.f32 %v9747_v45, %v8160_v42  ;;  %v2280_v10 = vmul.f32 %v9747_v45, %v8174_v48 }
 0x1a2   : > { %v1270_v53 = vpop.permute.xlu0 %1269  ;;  %7484 = vmatprep.subr.bf16.mxu0 %v8199_v56  ;;  %7508 = vmatprep.subr.bf16.mxu1 %v8201_v57  ;;  %v1379_v46 = vadd.f32 %v1374_v4, %v1367_v1  ;;  %v2361_v4 = vmul.f32 %v9748_v31, %v8164_v44 }
 0x1a3   : > { %v1376_v37 = vpop.permute.xlu1 %1375  ;;  %v1275_v25 = vadd.f32 %v1270_v53, %v1263_v41 }
 0x1a4   : > { %2256 = vrot.lane.b32.xlu0 %v2252_v13, %s7987_s17  ;;  %v1381_v0 = vadd.f32 %v1379_v46, %v8488_v39  ;;  %v1380_v33 = vadd.f32 %v1376_v37, %v1368_v23  ;;  %v2281_v46 = vmul.f32 %v9747_v45, %v8208_v60 }
 0x1a5   : > { %2348 = vrot.lane.b32.xlu1 %v2344_v40, %s7987_s17  ;;  %v1666_v40 = vmul.f32 %v8112_v18, %v8444_v61 }
 0x1a6   : > { %v1272_v21 = vpop.permute.xlu0 %1271  ;;  %v1383_v30 = vmax.f32 %v1381_v0, 0.0  ;;  %v1382_v42 = vadd.f32 %v1380_v33, %v8501_v49  ;;  %v1667_v0 = vmul.f32 %v8112_v18, %v8455_v7 }
 0x1a7   : > { %v1647_v55 = vpop.permute.xlu1 %1646  ;;  %v1276_v3 = vadd.f32 %v1272_v21, %v1264_v34  ;;  %v1639_v34 = vmul.f32 %v8109_v17, %v8493_v43 }
 0x1a8   : > { %2272 = vrot.lane.b32.xlu0 %v2268_v8, %s7986_s16  ;;  %v1652_v41 = vadd.f32 %v1647_v55, %v1638_v38  ;;  %v1546_v38 = vmul.f32 %v8106_v16, %v8433_v51 }
 0x1a9   : > { %2350 = vrot.lane.b32.xlu1 %v2345_v26, %s7987_s17  ;;  %v1384_v26 = vmax.f32 %v1382_v42, 0.0 }
 0x1aa   : > { %v1282_v35 = vpop.permute.xlu0 %1281 }
 0x1ab   : > { %v1287_v9 = vadd.f32 %v1282_v35, %v1275_v25  ;;  %v1649_v52 = vpop.permute.xlu1 %1648  ;;  %v2372_v35 = vmul.f32 %v9748_v31, %v8174_v48  ;;  %v2373_v48 = vmul.f32 %v9748_v31, %v8208_v60  ;;  %v1547_v60 = vmul.f32 %v8106_v16, %v8493_v43 }
 0x1ac   : > { %2274 = vrot.lane.b32.xlu0 %v2269_v28, %s7986_s16  ;;  %v1653_v44 = vadd.f32 %v1649_v52, %v1639_v34  ;;  %v2300_v52 = vmul.f32 %v9748_v31, %v8204_v58  ;;  %v2312_v16 = vmul.f32 %v9748_v31, %v8249_v12  ;;  %v1575_v34 = vmul.f32 %v8109_v17, %v8455_v7 }
 0x1ad   : > { %v1289_v27 = vadd.f32 %v1287_v9, %v8488_v39  ;;  %2364 = vrot.lane.b32.xlu1 %v2360_v62, %s7986_s16 }
 0x1ae   : > { %v1284_v54 = vpop.permute.xlu0 %1283 }
 0x1af   : > { %v1291_v15 = vmax.f32 %v1289_v27, 0.0  ;;  %v1288_v53 = vadd.f32 %v1284_v54, %v1276_v3  ;;  %v1659_v13 = vpop.permute.xlu1 %1658 }
 0x1b0   : > { %v1664_v37 = vadd.f32 %v1659_v13, %v1652_v41  ;;  %2284 = vrot.lane.b32.xlu0 %v2280_v10, %s7987_s17  ;;  %v2301_v41 = vmul.f32 %v9748_v31, %v8228_v2 }
 0x1b1   : > { %v1385_v1 = vmax.f32 %v1291_v15, %v1383_v30  ;;  %v1290_v21 = vadd.f32 %v1288_v53, %v8501_v49  ;;  %2366 = vrot.lane.b32.xlu1 %v2361_v4, %s7986_s16  ;;  %v1574_v4 = vmul.f32 %v8109_v17, %v8444_v61 }
 0x1b2   : > { %v1555_v8 = vpop.permute.xlu0 %1554  ;;  %v1668_v55 = vadd.f32 %v1666_v40, %v1664_v37  ;;  %v1698_v40 = vmul.f32 %v8114_v19, %v8466_v24 }
 0x1b3   : > { %v1292_v23 = vmax.f32 %v1290_v21, 0.0  ;;  %v1661_v25 = vpop.permute.xlu1 %1660  ;;  %6725 = vmatprep.mubr.msk.f32.mxu0 %vm689_vm1, %v1385_v1  ;;  %6754 = vmatprep.mubr.msk.f32.mxu1 %vm689_vm1, %v1385_v1  ;;  %v1560_v27 = vadd.f32 %v1555_v8, %v1546_v38 }
 0x1b4   : > { %v1665_v28 = vadd.f32 %v1661_v25, %v1653_v44  ;;  %2286 = vrot.lane.b32.xlu0 %v2281_v46, %s7987_s17  ;;  %v2313_v44 = vmul.f32 %v9748_v31, %v8278_v29 }
 0x1b5   : > { %v1386_v33 = vmax.f32 %v1292_v23, %v1384_v26  ;;  %2376 = vrot.lane.b32.xlu1 %v2372_v35, %s7987_s17 }
 0x1b6   : > { %v1557_v9 = vpop.permute.xlu0 %1556  ;;  %v1669_v62 = vadd.f32 %v1667_v0, %v1665_v28 }
 0x1b7   : > { %v1675_v3 = vpop.permute.xlu1 %1674  ;;  %6726 = vmatmul.mubr.msk.f32.vlgmr.msra.gmra.mrb[4].mxu0 %vm689_vm1, %v1386_v33  ;;  %6755 = vmatmul.mubr.msk.f32.vlgmr.msra.gmra.mrb[4].mxu1 %vm689_vm1, %v1386_v33  ;;  %v1561_v30 = vadd.f32 %v1557_v9, %v1547_v60  ;;  %v1606_v33 = vmul.f32 %v8112_v18, %v8466_v24 }
 0x1b8   : > { %2304 = vrot.lane.b32.xlu0 %v2300_v52, %s7986_s16  ;;  %7486 = vmatpush3.bf16.msra.mxu0 %v8199_v56  ;;  %v1680_v2 = vadd.f32 %v1675_v3, %v1668_v55  ;;  %v1699_v55 = vmul.f32 %v8114_v19, %v8477_v11  ;;  %v8951_v3 = vld [vmem:[%s9732_s6 + $0x60] sm:$0xf] }
 0x1b9   : > { %2378 = vrot.lane.b32.xlu1 %v2373_v48, %s7987_s17  ;;  %7510 = vmatpush3.bf16.msra.mxu1 %v8201_v57 }
 0x1ba   : > { %v1567_v58 = vpop.permute.xlu0 %1566  ;;  %7488 = vmatprep.subr.bf16.mxu0 %v8233_v5  ;;  %7512 = vmatprep.subr.bf16.mxu1 %v8235_v6 }
 0x1bb   : > { %v1572_v54 = vadd.f32 %v1567_v58, %v1560_v27  ;;  %v1677_v10 = vpop.permute.xlu1 %1676  ;;  %v1607_v58 = vmul.f32 %v8112_v18, %v8477_v11 }
 0x1bc   : > { %2306 = vrot.lane.b32.xlu0 %v2301_v41, %s7986_s16  ;;  %7490 = vmatpush3.bf16.msra.mxu0 %v8233_v5  ;;  %v1681_v12 = vadd.f32 %v1677_v10, %v1669_v62  ;;  %v8944_v62 = vld [vmem:[%s9731_s5 + $0x60] sm:$0xf] }
 0x1bd   : > { %v1576_v42 = vadd.f32 %v1574_v4, %v1572_v54  ;;  %7514 = vmatpush3.bf16.msra.mxu1 %v8235_v6  ;;  %7492 = vmatprep.subr.bf16.mxu0 %v8257_v14 }
 0x1be   : > { %v1569_v15 = vpop.permute.xlu0 %1568  ;;  %7516 = vmatprep.subr.bf16.mxu1 %v8259_v22 }
 0x1bf   : > { %v1573_v53 = vadd.f32 %v1569_v15, %v1561_v30  ;;  %v1687_v13 = vpop.permute.xlu1 %1686 }
 0x1c0   : > { %v1692_v37 = vadd.f32 %v1687_v13, %v1680_v2  ;;  %2316 = vrot.lane.b32.xlu0 %v2312_v16, %s7987_s17  ;;  %7494 = vmatpush3.bf16.msra.mxu0 %v8257_v14 }
 0x1c1   : > { %v1577_v1 = vadd.f32 %v1575_v34, %v1573_v53  ;;  %7518 = vmatpush3.bf16.msra.mxu1 %v8259_v22  ;;  %7496 = vmatprep.subr.bf16.mxu0 %v8285_v32 }
 0x1c2   : > { %v1583_v21 = vpop.permute.xlu0 %1582  ;;  %v1700_v8 = vadd.f32 %v1698_v40, %v1692_v37  ;;  %7520 = vmatprep.subr.bf16.mxu1 %v8287_v36  ;;  %v1983_v40 = vmul.f32 %v8114_v19, %v8433_v51 }
 0x1c3   : > { %v1689_v17 = vpop.permute.xlu1 %1688  ;;  %v1588_v25 = vadd.f32 %v1583_v21, %v1576_v42 }
 0x1c4   : > { %v1693_v46 = vadd.f32 %v1689_v17, %v1681_v12  ;;  %2318 = vrot.lane.b32.xlu0 %v2313_v44, %s7987_s17  ;;  %7498 = vmatpush3.bf16.msra.mxu0 %v8285_v32 }
 0x1c5   : > { %7522 = vmatpush3.bf16.msra.mxu1 %v8287_v36  ;;  %7500 = vmatprep.subr.bf16.mxu0 %v8307_v47 }
 0x1c6   : > { %v1585_v26 = vpop.permute.xlu0 %1584  ;;  %v1701_v23 = vadd.f32 %v1699_v55, %v1693_v46  ;;  %7524 = vmatprep.subr.bf16.mxu1 %v8313_v50 }
 0x1c7   : > { %v1707_v29 = vpop.permute.xlu1 %1706  ;;  %v1589_v9 = vadd.f32 %v1585_v26, %v1577_v1 }
 0x1c8   : > { %7502 = vmatpush3.bf16.msra.mxu0 %v8307_v47  ;;  %v1712_v10 = vadd.f32 %v1707_v29, %v1700_v8 }
 0x1c9   : > { %7526 = vmatpush3.bf16.msra.mxu1 %v8313_v50  ;;  %7504 = vmatprep.subr.bf16.mxu0 %v8331_v59 }
 0x1ca   : > { %v1595_v35 = vpop.permute.xlu0 %1594  ;;  %7528 = vmatprep.subr.bf16.mxu1 %v8339_v63 }
 0x1cb   : > { %v1600_v28 = vadd.f32 %v1595_v35, %v1588_v25  ;;  %v1709_v0 = vpop.permute.xlu1 %1708  ;;  %v2011_v25 = vmul.f32 %v8118_v20, %v8444_v61 }
 0x1cc   : > { %7506 = vmatpush3.bf16.msra.mxu0 %v8331_v59  ;;  %v1713_v2 = vadd.f32 %v1709_v0, %v1701_v23  ;;  %v1984_v23 = vmul.f32 %v8114_v19, %v8493_v43 }
 0x1cd   : > { %v1608_v52 = vadd.f32 %v1606_v33, %v1600_v28  ;;  %7530 = vmatpush3.bf16.msra.mxu1 %v8339_v63  ;;  %6781 = vmatprep.subr.msk.mxu0 %vm696_vm0, %v8944_v62 }
 0x1ce   : > { %v1597_v38 = vpop.permute.xlu0 %1596  ;;  %6810 = vmatprep.subr.msk.mxu1 %vm696_vm0, %v8951_v3 }
 0x1cf   : > { %v1601_v48 = vadd.f32 %v1597_v38, %v1589_v9  ;;  %v1719_v27 = vpop.permute.xlu1 %1718 }
 0x1d0   : > { %6782 = vmatpush3.msk.msra.mxu0 %vm696_vm0, %v8944_v62  ;;  %v1724_v30 = vadd.f32 %v1719_v27, %v1712_v10  ;;  %v1891_v10 = vmul.f32 %v8112_v18, %v8433_v51 }
 0x1d1   : > { %v1609_v41 = vadd.f32 %v1607_v58, %v1601_v48  ;;  %6811 = vmatpush3.msk.msra.mxu1 %vm696_vm0, %v8951_v3  ;;  %7532 = vmatprep.subr.bf16.mxu0 %v8199_v56  ;;  %v2012_v58 = vmul.f32 %v8118_v20, %v8455_v7 }
 0x1d2   : > { %v1615_v60 = vpop.permute.xlu0 %1614  ;;  %7556 = vmatprep.subr.bf16.mxu1 %v8201_v57  ;;  %v1726_v53 = vadd.f32 %v1724_v30, %v8488_v39 }
 0x1d3   : > { %v1721_v54 = vpop.permute.xlu1 %1720  ;;  %v1620_v15 = vadd.f32 %v1615_v60, %v1608_v52 }
 0x1d4   : > { %v1725_v13 = vadd.f32 %v1721_v54, %v1713_v2  ;;  %v1728_v8 = vmax.f32 %v1726_v53, 0.0  ;;  %v1892_v2 = vmul.f32 %v8112_v18, %v8493_v43  ;;  %v1919_v53 = vmul.f32 %v8114_v19, %v8444_v61 }
 0x1d5   : > { %v1920_v18 = vmul.f32 %v8114_v19, %v8455_v7  ;;  %v2044_v19 = vmul.f32 %v9747_v45, %v8477_v11 }
 0x1d6   : > { %v1617_v4 = vpop.permute.xlu0 %1616  ;;  %v1727_v17 = vadd.f32 %v1725_v13, %v8501_v49 }
 0x1d7   : > { %v1992_v42 = vpop.permute.xlu1 %1991  ;;  %v1621_v1 = vadd.f32 %v1617_v4, %v1609_v41 }
 0x1d8   : > { %v1997_v21 = vadd.f32 %v1992_v42, %v1983_v40  ;;  %v1729_v52 = vmax.f32 %v1727_v17, 0.0 }
 0x1da   : > { %v1627_v16 = vpop.permute.xlu0 %1626 }
 0x1db   : > { %v1632_v34 = vadd.f32 %v1627_v16, %v1620_v15  ;;  %v1994_v37 = vpop.permute.xlu1 %1993 }
 0x1dc   : > { %v1998_v0 = vadd.f32 %v1994_v37, %v1984_v23 }
 0x1dd   : > { %v1634_v12 = vadd.f32 %v1632_v34, %v8488_v39 }
 0x1de   : > { %v1629_v44 = vpop.permute.xlu0 %1628 }
 0x1df   : > { %v1636_v46 = vmax.f32 %v1634_v12, 0.0  ;;  %v1633_v55 = vadd.f32 %v1629_v44, %v1621_v1  ;;  %v2004_v26 = vpop.permute.xlu1 %2003  ;;  %v2043_v44 = vmul.f32 %v9747_v45, %v8466_v24 }
 0x1e0   : > { %v2009_v29 = vadd.f32 %v2004_v26, %v1997_v21 }
 0x1e1   : > { %v1730_v35 = vmax.f32 %v1636_v46, %v1728_v8  ;;  %v1635_v28 = vadd.f32 %v1633_v55, %v8501_v49 }
 0x1e2   : > { %v1900_v33 = vpop.permute.xlu0 %1899  ;;  %v2013_v9 = vadd.f32 %v2011_v25, %v2009_v29 }
 0x1e3   : > { %v1637_v38 = vmax.f32 %v1635_v28, 0.0  ;;  %v2006_v48 = vpop.permute.xlu1 %2005  ;;  %6783 = vmatprep.mubr.msk.f32.mxu0 %vm689_vm1, %v1730_v35  ;;  %6812 = vmatprep.mubr.msk.f32.mxu1 %vm689_vm1, %v1730_v35  ;;  %v1905_v30 = vadd.f32 %v1900_v33, %v1891_v10 }
 0x1e4   : > { %v2010_v27 = vadd.f32 %v2006_v48, %v1998_v0 }
 0x1e5   : > { %v1731_v41 = vmax.f32 %v1637_v38, %v1729_v52  ;;  %v1951_v52 = vmul.f32 %v8118_v20, %v8466_v24 }
 0x1e6   : > { %v1902_v60 = vpop.permute.xlu0 %1901  ;;  %v2014_v54 = vadd.f32 %v2012_v58, %v2010_v27 }
 0x1e7   : > { %v2020_v4 = vpop.permute.xlu1 %2019  ;;  %6784 = vmatmul.mubr.msk.f32.vlgmr.msra.gmra.mrb[6].mxu0 %vm689_vm1, %v1731_v41  ;;  %6813 = vmatmul.mubr.msk.f32.vlgmr.msra.gmra.mrb[6].mxu1 %vm689_vm1, %v1731_v41  ;;  %v1906_v13 = vadd.f32 %v1902_v60, %v1892_v2  ;;  %v1952_v60 = vmul.f32 %v8118_v20, %v8477_v11 }
 0x1e8   : > { %7534 = vmatpush3.bf16.msra.mxu0 %v8199_v56  ;;  %7558 = vmatpush3.bf16.msra.mxu1 %v8201_v57  ;;  %v2025_v37 = vadd.f32 %v2020_v4, %v2013_v9 }
 0x1e9   : > { %7536 = vmatprep.subr.bf16.mxu0 %v8233_v5  ;;  %7560 = vmatprep.subr.bf16.mxu1 %v8235_v6 }
 0x1ea   : > { %v1912_v42 = vpop.permute.xlu0 %1911 }
 0x1eb   : > { %v1917_v15 = vadd.f32 %v1912_v42, %v1905_v30  ;;  %v2022_v16 = vpop.permute.xlu1 %2021 }
 0x1ec   : > { %7538 = vmatpush3.bf16.msra.mxu0 %v8233_v5  ;;  %7562 = vmatpush3.bf16.msra.mxu1 %v8235_v6  ;;  %v2026_v17 = vadd.f32 %v2022_v16, %v2014_v54  ;;  %v2237_v16 = vmul.f32 %v8118_v20, %v8493_v43 }
 0x1ed   : > { %v1921_v34 = vadd.f32 %v1919_v53, %v1917_v15  ;;  %7540 = vmatprep.subr.bf16.mxu0 %v8257_v14  ;;  %7564 = vmatprep.subr.bf16.mxu1 %v8259_v22 }
 0x1ee   : > { %v1914_v40 = vpop.permute.xlu0 %1913 }
 0x1ef   : > { %v1918_v1 = vadd.f32 %v1914_v40, %v1906_v13  ;;  %v2032_v12 = vpop.permute.xlu1 %2031 }
 0x1f0   : > { %v2037_v21 = vadd.f32 %v2032_v12, %v2025_v37  ;;  %7542 = vmatpush3.bf16.msra.mxu0 %v8257_v14  ;;  %7566 = vmatpush3.bf16.msra.mxu1 %v8259_v22 }
 0x1f1   : > { %v1922_v8 = vadd.f32 %v1920_v18, %v1918_v1  ;;  %7544 = vmatprep.subr.bf16.mxu0 %v8285_v32  ;;  %7568 = vmatprep.subr.bf16.mxu1 %v8287_v36 }
 0x1f2   : > { %v1928_v46 = vpop.permute.xlu0 %1927  ;;  %v2045_v55 = vadd.f32 %v2043_v44, %v2037_v21  ;;  %v2265_v44 = vmul.f32 %v9747_v45, %v8455_v7 }
 0x1f3   : > { %v2034_v26 = vpop.permute.xlu1 %2033  ;;  %v1933_v28 = vadd.f32 %v1928_v46, %v1921_v34 }
 0x1f4   : > { %v2038_v23 = vadd.f32 %v2034_v26, %v2026_v17  ;;  %7546 = vmatpush3.bf16.msra.mxu0 %v8285_v32  ;;  %7570 = vmatpush3.bf16.msra.mxu1 %v8287_v36 }
 0x1f5   : > { %7548 = vmatprep.subr.bf16.mxu0 %v8307_v47  ;;  %7572 = vmatprep.subr.bf16.mxu1 %v8313_v50 }
 0x1f6   : > { %v1930_v29 = vpop.permute.xlu0 %1929  ;;  %v2046_v25 = vadd.f32 %v2044_v19, %v2038_v23 }
 0x1f7   : > { %v2052_v35 = vpop.permute.xlu1 %2051  ;;  %v1934_v38 = vadd.f32 %v1930_v29, %v1922_v8 }
 0x1f8   : > { %7550 = vmatpush3.bf16.msra.mxu0 %v8307_v47  ;;  %7574 = vmatpush3.bf16.msra.mxu1 %v8313_v50  ;;  %v2057_v30 = vadd.f32 %v2052_v35, %v2045_v55 }
 0x1f9   : > { %7552 = vmatprep.subr.bf16.mxu0 %v8331_v59  ;;  %7576 = vmatprep.subr.bf16.mxu1 %v8339_v63 }
 0x1fa   : > { %v1940_v0 = vpop.permute.xlu0 %1939 }
 0x1fb   : > { %v1945_v33 = vadd.f32 %v1940_v0, %v1933_v28  ;;  %v2054_v9 = vpop.permute.xlu1 %2053 }
 0x1fc   : > { %7554 = vmatpush3.bf16.msra.mxu0 %v8331_v59  ;;  %7578 = vmatpush3.bf16.msra.mxu1 %v8339_v63  ;;  %v2058_v53 = vadd.f32 %v2054_v9, %v2046_v25 }
 0x1fd   : > { %v1953_v48 = vadd.f32 %v1951_v52, %v1945_v33  ;;  %6839 = vmatprep.subr.msk.mxu0 %vm696_vm0, %v8944_v62  ;;  %6868 = vmatprep.subr.msk.mxu1 %vm696_vm0, %v8951_v3  ;;  %v2236_v52 = vmul.f32 %v8118_v20, %v8433_v51  ;;  %v2264_v20 = vmul.f32 %v9747_v45, %v8444_v61 }
 0x1fe   : > { %v1942_v27 = vpop.permute.xlu0 %1941 }
 0x1ff   : > { %v1946_v58 = vadd.f32 %v1942_v27, %v1934_v38  ;;  %v2064_v41 = vpop.permute.xlu1 %2063 }
 0x200   : > { %6840 = vmatpush3.msk.msra.mxu0 %vm696_vm0, %v8944_v62  ;;  %6869 = vmatpush3.msk.msra.mxu1 %vm696_vm0, %v8951_v3  ;;  %v2069_v2 = vadd.f32 %v2064_v41, %v2057_v30 }
 0x201   : > { %v1954_v54 = vadd.f32 %v1952_v60, %v1946_v58  ;;  %7580 = vmatprep.subr.bf16.mxu0 %v8199_v56  ;;  %7604 = vmatprep.subr.bf16.mxu1 %v8201_v57 }
 0x202   : > { %v1960_v10 = vpop.permute.xlu0 %1959  ;;  %v2071_v40 = vadd.f32 %v2069_v2, %v8488_v39 }
 0x203   : > { %v2066_v4 = vpop.permute.xlu1 %2065  ;;  %v1965_v13 = vadd.f32 %v1960_v10, %v1953_v48  ;;  %v2328_v48 = vmul.f32 %v9747_v45, %v8433_v51  ;;  %v2356_v51 = vmul.f32 %v9748_v31, %v8444_v61 }
 0x204   : > { %v2070_v1 = vadd.f32 %v2066_v4, %v2058_v53  ;;  %v2073_v26 = vmax.f32 %v2071_v40, 0.0  ;;  %v2329_v4 = vmul.f32 %v9747_v45, %v8493_v43  ;;  %v2357_v43 = vmul.f32 %v9748_v31, %v8455_v7 }
 0x206   : > { %v1962_v42 = vpop.permute.xlu0 %1961  ;;  %v2072_v23 = vadd.f32 %v2070_v1, %v8501_v49  ;;  %v2297_v1 = vmul.f32 %v9748_v31, %v8477_v11 }
 0x207   : > { %v2247_v15 = vpop.permute.xlu1 %2246  ;;  %v1966_v8 = vadd.f32 %v1962_v42, %v1954_v54 }
 0x208   : > { %v2251_v34 = vadd.f32 %v2247_v15, %v2237_v16  ;;  %v2074_v33 = vmax.f32 %v2072_v23, 0.0 }
 0x20a   : > { %v1972_v37 = vpop.permute.xlu0 %1971 }
 0x20b   : > { %v1977_v12 = vadd.f32 %v1972_v37, %v1965_v13  ;;  %v2259_v18 = vpop.permute.xlu1 %2258 }
 0x20c   : > { %v2263_v21 = vadd.f32 %v2259_v18, %v2251_v34 }
 0x20d   : > { %v1979_v17 = vadd.f32 %v1977_v12, %v8488_v39 }
 0x20e   : > { %v1974_v46 = vpop.permute.xlu0 %1973  ;;  %v2267_v55 = vadd.f32 %v2265_v44, %v2263_v21 }
 0x20f   : > { %v1981_v19 = vmax.f32 %v1979_v17, 0.0  ;;  %v1978_v29 = vadd.f32 %v1974_v46, %v1966_v8  ;;  %v2337_v25 = vpop.permute.xlu1 %2336 }
 0x210   : > { %v2342_v41 = vadd.f32 %v2337_v25, %v2328_v48  ;;  %v9100_v48 = vld [vmem:[%s9729_s3 + $0x40] sm:$0xff]  }
 0x211   : > { %v2075_v35 = vmax.f32 %v1981_v19, %v2073_v26  ;;  %v1980_v28 = vadd.f32 %v1978_v29, %v8501_v49 }
 0x212   : > { %v2245_v0 = vpop.permute.xlu0 %2244 }
 0x213   : > { %v1982_v9 = vmax.f32 %v1980_v28, 0.0  ;;  %v2339_v38 = vpop.permute.xlu1 %2338  ;;  %6841 = vmatprep.mubr.msk.f32.mxu0 %vm689_vm1, %v2075_v35  ;;  %6870 = vmatprep.mubr.msk.f32.mxu1 %vm689_vm1, %v2075_v35  ;;  %v2250_v58 = vadd.f32 %v2245_v0, %v2236_v52 }
 0x214   : > { %v2343_v2 = vadd.f32 %v2339_v38, %v2329_v4 }
 0x215   : > { %v2076_v27 = vmax.f32 %v1982_v9, %v2074_v33 }
 0x216   : > { %v2257_v60 = vpop.permute.xlu0 %2256 }
 0x217   : > { %v2262_v54 = vadd.f32 %v2257_v60, %v2250_v58  ;;  %v2349_v10 = vpop.permute.xlu1 %2348  ;;  %6842 = vmatmul.mubr.msk.f32.vlgmr.msra.gmra.mrb[8].mxu0 %vm689_vm1, %v2076_v27  ;;  %6871 = vmatmul.mubr.msk.f32.vlgmr.msra.gmra.mrb[8].mxu1 %vm689_vm1, %v2076_v27 }
 0x218   : > { %v2354_v30 = vadd.f32 %v2349_v10, %v2342_v41  ;;  %7582 = vmatpush3.bf16.msra.mxu0 %v8199_v56  ;;  %7606 = vmatpush3.bf16.msra.mxu1 %v8201_v57 }
 0x219   : > { %v2266_v42 = vadd.f32 %v2264_v20, %v2262_v54  ;;  %7584 = vmatprep.subr.bf16.mxu0 %v8233_v5  ;;  %7608 = vmatprep.subr.bf16.mxu1 %v8235_v6 }
 0x21a   : > { %v2273_v15 = vpop.permute.xlu0 %2272  ;;  %v2358_v16 = vadd.f32 %v2356_v51, %v2354_v30 }
 0x21b   : > { %v2351_v53 = vpop.permute.xlu1 %2350  ;;  %v2278_v45 = vadd.f32 %v2273_v15, %v2266_v42 }
 0x21c   : > { %v2355_v13 = vadd.f32 %v2351_v53, %v2343_v2  ;;  %7586 = vmatpush3.bf16.msra.mxu0 %v8233_v5  ;;  %7610 = vmatpush3.bf16.msra.mxu1 %v8235_v6  ;;  %v2296_v6 = vmul.f32 %v9748_v31, %v8466_v24  ;;  %v356_v53 = vld [vmem:[%s9730_s4 + $0x8] sm:$0xff] }
 0x21d   : > { %7588 = vmatprep.subr.bf16.mxu0 %v8257_v14  ;;  %7612 = vmatprep.subr.bf16.mxu1 %v8259_v22 }
 0x21e   : > { %v2275_v56 = vpop.permute.xlu0 %2274  ;;  %v2359_v57 = vadd.f32 %v2357_v43, %v2355_v13  ;;  %v355_v13 = vld [vmem:[%s9730_s4] sm:$0xff]  ;;  %v358_v43 = vld [vmem:[%s9730_s4 + $0x18] sm:$0xff] }
 0x21f   : > { %v2365_v61 = vpop.permute.xlu1 %2364  ;;  %v2279_v37 = vadd.f32 %v2275_v56, %v2267_v55  ;;  %v357_v56 = vld [vmem:[%s9730_s4 + $0x10] sm:$0xff] }
 0x220   : > { %7590 = vmatpush3.bf16.msra.mxu0 %v8257_v14  ;;  %7614 = vmatpush3.bf16.msra.mxu1 %v8259_v22  ;;  %v2370_v11 = vadd.f32 %v2365_v61, %v2358_v16  ;;  %v9140_v61 = vld [vmem:[%s9729_s3 + $0x48] sm:$0xff]  }
 0x221   : > { %7592 = vmatprep.subr.bf16.mxu0 %v8285_v32  ;;  %7616 = vmatprep.subr.bf16.mxu1 %v8287_v36 }
 0x222   : > { %v2285_v7 = vpop.permute.xlu0 %2284 }
 0x223   : > { %v2290_v5 = vadd.f32 %v2285_v7, %v2278_v45  ;;  %v2367_v34 = vpop.permute.xlu1 %2366  ;;  %v9145_v45 = vld [vmem:[%s9729_s3 + $0x18] sm:$0xff]   ;;  %v9152_v7 = vld [vmem:[%s9729_s3 + $0x30] sm:$0xff]  }
 0x224   : > { %7594 = vmatpush3.bf16.msra.mxu0 %v8285_v32  ;;  %7618 = vmatpush3.bf16.msra.mxu1 %v8287_v36 }
 0x225   : > { %v2298_v40 = vadd.f32 %v2296_v6, %v2290_v5  ;;  %7596 = vmatprep.subr.bf16.mxu0 %v8307_v47  ;;  %7620 = vmatprep.subr.bf16.mxu1 %v8313_v50  ;;  %v9157_v5 = vld [vmem:[%s9729_s3] sm:$0xff]   ;;  %v9172_v6 = vld [vmem:[%s9729_s3 + $0x38] sm:$0xff]  }
 0x226   : > { %v2287_v14 = vpop.permute.xlu0 %2286 }
 0x227   : > { %v2291_v22 = vadd.f32 %v2287_v14, %v2279_v37  ;;  %v2377_v24 = vpop.permute.xlu1 %2376  ;;  %v9177_v37 = vld [vmem:[%s9729_s3 + $0x8] sm:$0xff]   ;;  %v9187_v14 = vld [vmem:[%s9729_s3 + $0x20] sm:$0xff]  }
 0x228   : > { %7598 = vmatpush3.bf16.msra.mxu0 %v8307_v47  ;;  %7622 = vmatpush3.bf16.msra.mxu1 %v8313_v50  ;;  %v2382_v31 = vadd.f32 %v2377_v24, %v2370_v11  ;;  %v9233_v11 = vld [vmem:[%s9729_s3 + $0x68] sm:$0xff]  }
 0x229   : > { %v2299_v12 = vadd.f32 %v2297_v1, %v2291_v22  ;;  %7600 = vmatprep.subr.bf16.mxu0 %v8331_v59  ;;  %7624 = vmatprep.subr.bf16.mxu1 %v8339_v63 }
 0x22a   : > { %v2305_v32 = vpop.permute.xlu0 %2304  ;;  %v6611_v36 = vpop.f32.mrb[0].mxu0  ;;  %v2384_v26 = vadd.f32 %v2382_v31, %v8488_v39 }
 0x22b   : > { %v6640_v18 = vpop.f32.mrb[0].mxu1  ;;  %v766_v44 = vpop.f32.mrb[1].mxu0 }
 0x22c   : > { %v854_v21 = vmax.f32 %v6611_v36, %v6640_v18  ;;  %v844_v8 = vpop.f32.mrb[1].mxu1  ;;  %7602 = vmatpush3.bf16.msra.mxu0 %v8331_v59  ;;  %7626 = vmatpush3.bf16.msra.mxu1 %v8339_v63  ;;  %v2379_v46 = vpop.permute.xlu1 %2378  ;;  %v2371_v59 = vadd.f32 %v2367_v34, %v2359_v57  ;;  %v2310_v63 = vadd.f32 %v2305_v32, %v2298_v40  ;;  %v2386_v35 = vmax.f32 %v2384_v26, 0.0  ;;  %v9182_v40 = vld [vmem:[%s9729_s3 + $0x50] sm:$0xff]   ;;  %v9202_v18 = vld [vmem:[%s9729_s3 + $0x58] sm:$0xff]  }
 0x22d   : > { %v853_v47 = vmax.f32 %v766_v44, %v844_v8  ;;  %6897 = vmatprep.subr.msk.mxu0 %vm696_vm0, %v8944_v62  ;;  %6926 = vmatprep.subr.msk.mxu1 %vm696_vm0, %v8951_v3  ;;  %v9214_v8 = vld [vmem:[%s9729_s3 + $0x60] sm:$0xff]  }
 0x22e   : > { %v2307_v50 = vpop.permute.xlu0 %2306  ;;  %v2383_v23 = vadd.f32 %v2379_v46, %v2371_v59  ;;  %v9266_v46 = vld [vmem:[%s9729_s3 + $0x80] sm:$0xff]   ;;  %v9282_v59 = vld [vmem:[%s9729_s3 + $0x88] sm:$0xff]  }
 0x22f   : > { %v9081_v17 = vpack.c.bf16 %v854_v21, %v853_v47  ;;  %v2311_v29 = vadd.f32 %v2307_v50, %v2299_v12  ;;  %v9207_v21 = vld [vmem:[%s9729_s3 + $0x28] sm:$0xff]   ;;  %v9238_v47 = vld [vmem:[%s9729_s3 + $0x70] sm:$0xff]  }
 0x230   : > { %6898 = vmatpush3.msk.msra.mxu0 %vm696_vm0, %v8944_v62  ;;  %6927 = vmatpush3.msk.msra.mxu1 %vm696_vm0, %v8951_v3  ;;  %v2385_v3 = vadd.f32 %v2383_v23, %v8501_v49 }
 0x231   : > { %2694 = vrot.lane.b32.xlu1 %v9081_v17, %s7987_s17  ;;  %2560 = vrot.lane.b32.xlu0 %v9081_v17, %s7986_s16 }
 0x232   : > { %v2317_v55 = vpop.permute.xlu0 %2316  ;;  %v2387_v52 = vmax.f32 %v2385_v3, 0.0 }
 0x233   : > { %v2322_v19 = vadd.f32 %v2317_v55, %v2310_v63 }
 0x235   : > { %v2324_v25 = vadd.f32 %v2322_v19, %v8488_v39  ;;  %v9105_v39 = vld [vmem:[%s9729_s3 + $0x10] sm:$0xff]  }
 0x236   : > { %v2319_v62 = vpop.permute.xlu0 %2318 }
 0x237   : > { %v2326_v28 = vmax.f32 %v2324_v25, 0.0  ;;  %v2323_v0 = vadd.f32 %v2319_v62, %v2311_v29  ;;  %v385_v62 = vld [vmem:[%s9733_s7] sm:$0xff] }
 0x239   : > { %v2388_v33 = vmax.f32 %v2326_v28, %v2386_v35  ;;  %v2325_v9 = vadd.f32 %v2323_v0, %v8501_v49  ;;  %v386_v35 = vld [vmem:[%s9733_s7 + $0x8] sm:$0xff]  ;;  %v387_v28 = vld [vmem:[%s9733_s7 + $0x10] sm:$0xff]  ;;  %v388_v0 = vld [vmem:[%s9733_s7 + $0x18] sm:$0xff] }
 0x23a   : > { %v9305_v3 = vpack.c.bf16 %v386_v35, %v385_v62 }
 0x23b   : > { %v2327_v38 = vmax.f32 %v2325_v9, 0.0  ;;  %6899 = vmatprep.mubr.msk.f32.mxu0 %vm689_vm1, %v2388_v33  ;;  %6928 = vmatprep.mubr.msk.f32.mxu1 %vm689_vm1, %v2388_v33  ;;  %v9317_v33 = vpack.c.bf16 %v388_v0, %v387_v28  ;;  %v389_v9 = vld [vmem:[%s9733_s7 + $0x20] sm:$0xff] }
 0x23d   : > { %v2389_v27 = vmax.f32 %v2327_v38, %v2387_v52  ;;  %v390_v52 = vld [vmem:[%s9733_s7 + $0x28] sm:$0xff] }
 0x23e   : > { %v9327_v38 = vpack.c.bf16 %v390_v52, %v389_v9 }
 0x23f   : > { %6900 = vmatmul.mubr.msk.f32.vlgmr.msra.gmra.mrb[10].mxu0 %vm689_vm1, %v2389_v27  ;;  %6929 = vmatmul.mubr.msk.f32.vlgmr.msra.gmra.mrb[10].mxu1 %vm689_vm1, %v2389_v27 }
 0x240   : > { %6933 = vmatprep.mubr.msk.bf16.mxu0 %vm2563_vm2, %v9100_v48  ;;  %6969 = vmatprep.mubr.msk.bf16.mxu1 %vm2563_vm2, %v9105_v39 }
 0x25a   : > { %v6669_v49 = vpop.f32.mrb[2].mxu0  ;;  %v6698_v58 = vpop.f32.mrb[2].mxu1 }
 0x25b   : > { %v1199_v41 = vmax.f32 %v6669_v49, %v6698_v58  ;;  %v1114_v60 = vpop.f32.mrb[3].mxu0  ;;  %v1189_v54 = vpop.f32.mrb[3].mxu1  ;;  %v9339_v58 = vld [vmem:[%s9733_s7 + $0x30] sm:$0x3] }
 0x25c   : > { %v1198_v10 = vmax.f32 %v1114_v60, %v1189_v54 }
 0x25e   : > { %v9113_v20 = vpack.c.bf16 %v1199_v41, %v1198_v10 }
 0x260   : > { %2908 = vrot.lane.b32.xlu1 %v9113_v20, %s7987_s17  ;;  %2836 = vrot.lane.b32.xlu0 %v9113_v20, %s7986_s16 }
 0x28a   : > { %v6727_v4 = vpop.f32.mrb[4].mxu0  ;;  %v6756_v30 = vpop.f32.mrb[4].mxu1 }
 0x28b   : > { %v1544_v51 = vmax.f32 %v6727_v4, %v6756_v30  ;;  %v1459_v42 = vpop.f32.mrb[5].mxu0  ;;  %v1534_v2 = vpop.f32.mrb[5].mxu1 }
 0x28c   : > { %v1543_v15 = vmax.f32 %v1459_v42, %v1534_v2 }
 0x28e   : > { %v9119_v16 = vpack.c.bf16 %v1544_v51, %v1543_v15 }
 0x290   : > { %3466 = vrot.lane.b32.xlu1 %v9119_v16, %s7987_s17  ;;  %3410 = vrot.lane.b32.xlu0 %v9119_v16, %s7986_s16 }
 0x294   : > { %2977 = vperm.xlu1 %7913, %v356_v53   ;;  %2972 = vperm.xlu0 %7910, %v355_v13  }
 0x298   : > { %2987 = vperm.xlu1 %7913, %v358_v43   ;;  %2982 = vperm.xlu0 %7910, %v357_v56   ;;  %v392_v43 = vld [vmem:[%s9734_s8] sm:$0xff]  ;;  %v393_v56 = vld [vmem:[%s9734_s8 + $0x8] sm:$0xff] }
 0x2a3   : > { %v2561_v57 = vpop.permute.xlu0 %2560  ;;  %v2695_v34 = vpop.permute.xlu1 %2694 }
 0x2a4   : > { %6931 = vmatprep.subr.bf16.mxu0 %v2561_v57  ;;  %6967 = vmatprep.subr.bf16.mxu1 %v2561_v57 }
 0x2a5   : > { %6932 = vmatpush3.bf16.msra.mxu0 %v2561_v57  ;;  %6968 = vmatpush3.bf16.msra.mxu1 %v2561_v57  ;;  %v9427_v57 = vpack.c.bf16 %v393_v56, %v392_v43 }
 0x2a6   : > { %6937 = vmatprep.subr.bf16.mxu0 %v9081_v17  ;;  %6973 = vmatprep.subr.bf16.mxu1 %v9081_v17 }
 0x2a8   : > { %6934 = vmatmul.mubr.msk.bf16.vlgmr.msra.gmra.mrb[12].mxu0 %vm2563_vm2, %v9140_v61  ;;  %6970 = vmatmul.mubr.msk.bf16.vlgmr.msra.gmra.mrb[12].mxu1 %vm2563_vm2, %v9145_v45 }
 0x2a9   : > { %6938 = vmatpush3.bf16.msra.mxu0 %v9081_v17  ;;  %6974 = vmatpush3.bf16.msra.mxu1 %v9081_v17  ;;  %v9259_v17 = vld [vmem:[%s9729_s3 + $0x78] sm:$0xff]  }
 0x2aa   : > { %6943 = vmatprep.subr.bf16.mxu0 %v2695_v34  ;;  %6979 = vmatprep.subr.bf16.mxu1 %v2695_v34 }
 0x2ab   : > { %6939 = vmatprep.mubr.msk.bf16.mxu0 %vm2563_vm2, %v9152_v7  ;;  %6975 = vmatprep.mubr.msk.bf16.mxu1 %vm2563_vm2, %v9157_v5 }
 0x2b4   : > { %6940 = vmatmul.mubr.msk.bf16.vlgmr.msra.gmra.mrb[12].mxu0 %vm2563_vm2, %v9172_v6  ;;  %6976 = vmatmul.mubr.msk.bf16.vlgmr.msra.gmra.mrb[12].mxu1 %vm2563_vm2, %v9177_v37 }
 0x2b5   : > { %6944 = vmatpush3.bf16.msra.mxu0 %v2695_v34  ;;  %6980 = vmatpush3.bf16.msra.mxu1 %v2695_v34 }
 0x2b6   : > { %6949 = vmatprep.subr.bf16.mxu0 %v9113_v20  ;;  %6985 = vmatprep.subr.bf16.mxu1 %v9113_v20 }
 0x2b7   : > { %6945 = vmatprep.mubr.msk.bf16.mxu0 %vm2563_vm2, %v9182_v40  ;;  %6981 = vmatprep.mubr.msk.bf16.mxu1 %vm2563_vm2, %v9187_v14 }
 0x2ba   : > { %v6785_v22 = vpop.f32.mrb[6].mxu0  ;;  %v6814_v1 = vpop.f32.mrb[6].mxu1 }
 0x2bb   : > { %v1889_v24 = vmax.f32 %v6785_v22, %v6814_v1  ;;  %v1804_v12 = vpop.f32.mrb[7].mxu0  ;;  %v1879_v32 = vpop.f32.mrb[7].mxu1 }
 0x2bc   : > { %v1888_v36 = vmax.f32 %v1804_v12, %v1879_v32 }
 0x2be   : > { %v9209_v44 = vpack.c.bf16 %v1889_v24, %v1888_v36 }
 0x2c0   : > { %6946 = vmatmul.mubr.msk.bf16.vlgmr.msra.gmra.mrb[12].mxu0 %vm2563_vm2, %v9202_v18  ;;  %6982 = vmatmul.mubr.msk.bf16.vlgmr.msra.gmra.mrb[12].mxu1 %vm2563_vm2, %v9207_v21 }
 0x2c1   : > { %6950 = vmatpush3.bf16.msra.mxu0 %v9113_v20  ;;  %6986 = vmatpush3.bf16.msra.mxu1 %v9113_v20 }
 0x2c2   : > { %4153 = vrot.lane.b32.xlu1 %v9209_v44, %s7987_s17  ;;  %4097 = vrot.lane.b32.xlu0 %v9209_v44, %s7986_s16 }
 0x2c3   : > { %6951 = vmatprep.mubr.msk.bf16.mxu0 %vm2563_vm2, %v9214_v8  ;;  %6987 = vmatprep.mubr.msk.bf16.mxu1 %vm2563_vm2, %v9152_v7 }
 0x2cc   : > { %6952 = vmatmul.mubr.msk.bf16.vlgmr.msra.gmra.mrb[12].mxu0 %vm2563_vm2, %v9233_v11  ;;  %6988 = vmatmul.mubr.msk.bf16.vlgmr.msra.gmra.mrb[12].mxu1 %vm2563_vm2, %v9172_v6 }
 0x2cd   : > { %6957 = vmatprep.mubr.msk.bf16.mxu0 %vm2563_vm2, %v9238_v47  ;;  %6993 = vmatprep.mubr.msk.bf16.mxu1 %vm2563_vm2, %v9100_v48 }
 0x2d2   : > { %v9248_v50 = vpop.permute.xlu0 %2836  ;;  %v9252_v31 = vpop.permute.xlu1 %2908 }
 0x2d3   : > { %6955 = vmatprep.subr.bf16.mxu0 %v9248_v50  ;;  %6991 = vmatprep.subr.bf16.mxu1 %v9248_v50 }
 0x2d4   : > { %6956 = vmatpush3.bf16.msra.mxu0 %v9248_v50  ;;  %6992 = vmatpush3.bf16.msra.mxu1 %v9248_v50 }
 0x2d5   : > { %6961 = vmatprep.subr.bf16.mxu0 %v9252_v31  ;;  %6997 = vmatprep.subr.bf16.mxu1 %v9252_v31 }
 0x2d8   : > { %6958 = vmatmul.mubr.msk.bf16.vlgmr.msra.gmra.mrb[12].mxu0 %vm2563_vm2, %v9259_v17  ;;  %6994 = vmatmul.mubr.msk.bf16.vlgmr.msra.gmra.mrb[12].mxu1 %vm2563_vm2, %v9140_v61 }
 0x2d9   : > { %6962 = vmatpush3.bf16.msra.mxu0 %v9252_v31  ;;  %6998 = vmatpush3.bf16.msra.mxu1 %v9252_v31 }
 0x2da   : > { %7003 = vmatprep.subr.bf16.mxu1 %v9119_v16  ;;  %6963 = vmatprep.mubr.msk.bf16.mxu0 %vm2563_vm2, %v9266_v46 }
 0x2db   : > { %6999 = vmatprep.mubr.msk.bf16.mxu1 %vm2563_vm2, %v9182_v40  ;;  %7628 = vmatprep.subr.bf16.mxu0 %v9305_v3 }
 0x2e4   : > { %6964 = vmatmul.mubr.msk.bf16.vlgmr.msra.gmra.mrb[12].mxu0 %vm2563_vm2, %v9282_v59  ;;  %7000 = vmatmul.mubr.msk.bf16.vlgmr.msra.gmra.mrb[12].mxu1 %vm2563_vm2, %v9202_v18 }
 0x2e5   : > { %7004 = vmatpush3.bf16.msra.mxu1 %v9119_v16  ;;  %7005 = vmatprep.mubr.msk.bf16.mxu1 %vm2563_vm2, %v9214_v8 }
 0x2e6   : > { %7630 = vmatpush3.bf16.msra.mxu0 %v9305_v3 }
 0x2e7   : > { %7632 = vmatprep.subr.bf16.mxu0 %v9317_v33 }
 0x2ea   : > { %v6843_v63 = vpop.f32.mrb[8].mxu0  ;;  %v6872_v55 = vpop.f32.mrb[8].mxu1  ;;  %7634 = vmatpush3.bf16.msra.mxu0 %v9317_v33 }
 0x2eb   : > { %v2234_v26 = vmax.f32 %v6843_v63, %v6872_v55  ;;  %v2149_v23 = vpop.f32.mrb[9].mxu0  ;;  %v2224_v19 = vpop.f32.mrb[9].mxu1  ;;  %7636 = vmatprep.subr.bf16.mxu0 %v9327_v38 }
 0x2ec   : > { %v2233_v29 = vmax.f32 %v2149_v23, %v2224_v19 }
 0x2ee   : > { %v9291_v25 = vpack.c.bf16 %v2234_v26, %v2233_v29  ;;  %7638 = vmatpush3.bf16.msra.mxu0 %v9327_v38 }
 0x2ef   : > { %7033 = vmatprep.subr.msk.mxu0 %vm3547_vm3, %v9339_v58 }
 0x2f0   : > { %4637 = vrot.lane.b32.xlu1 %v9291_v25, %s7987_s17  ;;  %4581 = vrot.lane.b32.xlu0 %v9291_v25, %s7986_s16 }
 0x2f1   : > { %7006 = vmatmul.mubr.msk.bf16.vlgmr.msra.gmra.mrb[12].mxu1 %vm2563_vm2, %v9233_v11 }
 0x2f2   : > { %7011 = vmatprep.mubr.msk.bf16.mxu1 %vm2563_vm2, %v9238_v47  ;;  %7034 = vmatpush3.msk.msra.mxu0 %vm3547_vm3, %v9339_v58 }
 0x2f3   : > { %7640 = vmatprep.subr.bf16.mxu0 %v9427_v57 }
 0x302   : > { %v9329_v27 = vpop.permute.xlu0 %3410  ;;  %v9333_v49 = vpop.permute.xlu1 %3466 }
 0x303   : > { %7009 = vmatprep.subr.bf16.mxu1 %v9329_v27 }
 0x304   : > { %7010 = vmatpush3.bf16.msra.mxu1 %v9329_v27 }
 0x305   : > { %7015 = vmatprep.subr.bf16.mxu1 %v9333_v49 }
 0x307   : > { %7012 = vmatmul.mubr.msk.bf16.vlgmr.msra.gmra.mrb[12].mxu1 %vm2563_vm2, %v9259_v17 }
 0x308   : > { %7016 = vmatpush3.bf16.msra.mxu1 %v9333_v49  ;;  %7017 = vmatprep.mubr.msk.bf16.mxu1 %vm2563_vm2, %v9266_v46 }
 0x309   : > { %7061 = vmatprep.subr.bf16.mxu1 %v9248_v50 }
 0x312   : > { %v6901_v41 = vpop.f32.mrb[10].mxu0  ;;  %v6930_v60 = vpop.f32.mrb[10].mxu1 }
 0x313   : > { %v2547_v54 = vmax.f32 %v6901_v41, %v6930_v60  ;;  %v2462_v10 = vpop.f32.mrb[11].mxu0  ;;  %v2537_v4 = vpop.f32.mrb[11].mxu1  ;;  %7018 = vmatmul.mubr.msk.bf16.vlgmr.msra.gmra.mrb[12].mxu1 %vm2563_vm2, %v9282_v59 }
 0x314   : > { %v2546_v30 = vmax.f32 %v2462_v10, %v2537_v4  ;;  %7062 = vmatpush3.bf16.msra.mxu1 %v9248_v50  ;;  %7063 = vmatprep.mubr.msk.bf16.mxu1 %vm2563_vm2, %v9105_v39  ;;  %v9407_v15 = vpop.permute.xlu1 %2977  ;;  %v395_v10 = vld [vmem:[%s9734_s8 + $0x18] sm:$0xff] }
 0x315   : > { %7067 = vmatprep.subr.bf16.mxu1 %v9113_v20 }
 0x316   : > { %v9359_v51 = vpack.c.bf16 %v2547_v54, %v2546_v30  ;;  %v394_v54 = vld [vmem:[%s9734_s8 + $0x10] sm:$0xff] }
 0x318   : > { %5316 = vrot.lane.b32.xlu1 %v9359_v51, %s7987_s17  ;;  %5260 = vrot.lane.b32.xlu0 %v9359_v51, %s7986_s16  ;;  %v9409_v53 = vpop.permute.xlu1 %2987 }
 0x31b   : > { %7064 = vmatmul.mubr.msk.bf16.vlgmr.msra.gmra.mrb[16].mxu1 %vm2563_vm2, %v9145_v45 }
 0x31c   : > { %7068 = vmatpush3.bf16.msra.mxu1 %v9113_v20  ;;  %7069 = vmatprep.mubr.msk.bf16.mxu1 %vm2563_vm2, %v9157_v5  ;;  %v9395_v20 = vpop.permute.xlu0 %2972 }
 0x31d   : > { %7073 = vmatprep.subr.bf16.mxu1 %v9252_v31 }
 0x320   : > { %v9397_v42 = vpop.permute.xlu0 %2982 }
 0x327   : > { %7070 = vmatmul.mubr.msk.bf16.vlgmr.msra.gmra.mrb[16].mxu1 %vm2563_vm2, %v9177_v37 }
 0x328   : > { %7074 = vmatpush3.bf16.msra.mxu1 %v9252_v31  ;;  %7075 = vmatprep.mubr.msk.bf16.mxu1 %vm2563_vm2, %v9187_v14 }
 0x329   : > { %7079 = vmatprep.subr.bf16.mxu1 %v9119_v16 }
 0x333   : > { %7076 = vmatmul.mubr.msk.bf16.vlgmr.msra.gmra.mrb[16].mxu1 %vm2563_vm2, %v9207_v21 }
 0x334   : > { %7080 = vmatpush3.bf16.msra.mxu1 %v9119_v16  ;;  %7081 = vmatprep.mubr.msk.bf16.mxu1 %vm2563_vm2, %v9152_v7  ;;  %v9401_v2 = vpop.permute.xlu0 %4097  ;;  %v9413_v13 = vpop.permute.xlu1 %4153 }
 0x335   : > { %7085 = vmatprep.subr.bf16.mxu1 %v9329_v27 }
 0x33f   : > { %7082 = vmatmul.mubr.msk.bf16.vlgmr.msra.gmra.mrb[16].mxu1 %vm2563_vm2, %v9172_v6 }
 0x340   : > { %7086 = vmatpush3.bf16.msra.mxu1 %v9329_v27  ;;  %7087 = vmatprep.mubr.msk.bf16.mxu1 %vm2563_vm2, %v9100_v48 }
 0x341   : > { %7091 = vmatprep.subr.bf16.mxu1 %v9333_v49 }
 0x34b   : > { %7088 = vmatmul.mubr.msk.bf16.vlgmr.msra.gmra.mrb[16].mxu1 %vm2563_vm2, %v9140_v61 }
 0x34c   : > { %7092 = vmatpush3.bf16.msra.mxu1 %v9333_v49  ;;  %7093 = vmatprep.mubr.msk.bf16.mxu1 %vm2563_vm2, %v9182_v40 }
 0x34d   : > { %7097 = vmatprep.subr.bf16.mxu1 %v9209_v44 }
 0x357   : > { %7094 = vmatmul.mubr.msk.bf16.vlgmr.msra.gmra.mrb[16].mxu1 %vm2563_vm2, %v9202_v18 }
 0x358   : > { %7098 = vmatpush3.bf16.msra.mxu1 %v9209_v44  ;;  %7099 = vmatprep.mubr.msk.bf16.mxu1 %vm2563_vm2, %v9214_v8 }
 0x359   : > { %7103 = vmatprep.subr.bf16.mxu1 %v9401_v2 }
 0x363   : > { %7100 = vmatmul.mubr.msk.bf16.vlgmr.msra.gmra.mrb[16].mxu1 %vm2563_vm2, %v9233_v11 }
 0x364   : > { %7104 = vmatpush3.bf16.msra.mxu1 %v9401_v2  ;;  %7105 = vmatprep.mubr.msk.bf16.mxu1 %vm2563_vm2, %v9238_v47 }
 0x365   : > { %7109 = vmatprep.subr.bf16.mxu1 %v9413_v13 }
 0x36f   : > { %7106 = vmatmul.mubr.msk.bf16.vlgmr.msra.gmra.mrb[16].mxu1 %vm2563_vm2, %v9259_v17 }
 0x370   : > { %7110 = vmatpush3.bf16.msra.mxu1 %v9413_v13  ;;  %7111 = vmatprep.mubr.msk.bf16.mxu1 %vm2563_vm2, %v9266_v46 }
 0x371   : > { %7652 = vmatprep.subr.bf16.mxu1 %v9305_v3 }
 0x37b   : > { %7112 = vmatmul.mubr.msk.bf16.vlgmr.msra.gmra.mrb[16].mxu1 %vm2563_vm2, %v9282_v59 }
 0x37c   : > { %7654 = vmatpush3.bf16.msra.mxu1 %v9305_v3 }
 0x37d   : > { %7656 = vmatprep.subr.bf16.mxu1 %v9317_v33 }
 0x380   : > { %7658 = vmatpush3.bf16.msra.mxu1 %v9317_v33 }
 0x381   : > { %7660 = vmatprep.subr.bf16.mxu1 %v9327_v38 }
 0x384   : > { %7662 = vmatpush3.bf16.msra.mxu1 %v9327_v38 }
 0x385   : > { %7181 = vmatprep.subr.msk.mxu1 %vm3547_vm3, %v9339_v58 }
 0x388   : > { %7182 = vmatpush3.msk.msra.mxu1 %vm3547_vm3, %v9339_v58 }
 0x389   : > { %7209 = vmatprep.subr.bf16.mxu1 %v9401_v2 }
 0x3b7   : > { %v6965_v34 = vpop.f32.mrb[12].mxu0 }
 0x3b8   : > { %v2951_v22 = vpop.f32.mrb[13].mxu0  ;;  %v2992_v12 = vadd.f32 %v6965_v34, %v9397_v42 }
 0x3b9   : > { %v6966_v1 = vpop.f32.mrb[14].mxu0  ;;  %v2990_v32 = vadd.f32 %v9395_v20, %v2951_v22  ;;  %v9461_v22 = vpack.c.bf16 %v395_v10, %v394_v54 }
 0x3ba   : > { %v2954_v24 = vpop.f32.mrb[15].mxu0  ;;  %v2993_v50 = vadd.f32 %v6966_v1, %v9409_v53  ;;  %v2996_v19 = vmax.f32 %v2992_v12, 0.0  ;;  %v396_v1 = vld [vmem:[%s9734_s8 + $0x20] sm:$0xff] }
 0x3bb   : > { %v2991_v55 = vadd.f32 %v9407_v15, %v2954_v24  ;;  %v2994_v28 = vmax.f32 %v2990_v32, 0.0  ;;  %v397_v24 = vld [vmem:[%s9734_s8 + $0x28] sm:$0xff]  ;;  %v9482_v32 = vld [vmem:[%s9734_s8 + $0x30] sm:$0x3] }
 0x3bc   : > { %v2997_v52 = vmax.f32 %v2993_v50, 0.0  ;;  %v9473_v12 = vpack.c.bf16 %v397_v24, %v396_v1 }
 0x3bd   : > { %v2995_v4 = vmax.f32 %v2991_v55, 0.0 }
 0x3e6   : > { %v7019_v36 = vpop.f32.mrb[12].mxu1 }
 0x3e7   : > { %v3524_v31 = vadd.f32 %v7019_v36, %v9397_v42  ;;  %v3503_v63 = vpop.f32.mrb[13].mxu1 }
 0x3e8   : > { %v3522_v26 = vadd.f32 %v3503_v63, %v9395_v20  ;;  %v7020_v23 = vpop.f32.mrb[14].mxu1 }
 0x3e9   : > { %v3528_v29 = vmax.f32 %v3524_v31, 0.0  ;;  %v3525_v62 = vadd.f32 %v7020_v23, %v9409_v53  ;;  %v3506_v35 = vpop.f32.mrb[15].mxu1 }
 0x3ea   : > { %v3526_v0 = vmax.f32 %v3522_v26, 0.0  ;;  %v3523_v9 = vadd.f32 %v3506_v35, %v9407_v15 }
 0x3eb   : > { %v3532_v41 = vmax.f32 %v2996_v19, %v3528_v29  ;;  %v3529_v60 = vmax.f32 %v3525_v62, 0.0 }
 0x3ec   : > { %v3530_v30 = vmax.f32 %v2994_v28, %v3526_v0  ;;  %v3527_v43 = vmax.f32 %v3523_v9, 0.0 }
 0x3ed   : > { %v3533_v56 = vmax.f32 %v2997_v52, %v3529_v60 }
 0x3ee   : > { %v3531_v34 = vmax.f32 %v2995_v4, %v3527_v43  ;;  %7035 = vmatprep.mubr.msk.f32.mxu0 %vm3534_vm4, %v3530_v30 }
 0x3f0   : > { %7036 = vmatmul.mubr.msk.f32.vlgmr.msra.gmra.mrb[16].mxu0 %vm3534_vm4, %v3531_v34 }
 0x3f1   : > { %7642 = vmatpush3.bf16.msra.mxu0 %v9427_v57  ;;  %7038 = vmatprep.mubr.msk.f32.mxu0 %vm3534_vm4, %v3532_v41 }
 0x3f2   : > { %7644 = vmatprep.subr.bf16.mxu0 %v9461_v22 }
 0x3f4   : > { %7039 = vmatmul.mubr.msk.f32.gmra.mrb[18].mxu0 %vm3534_vm4, %v3533_v56 }
 0x3f5   : > { %7646 = vmatpush3.bf16.msra.mxu0 %v9461_v22  ;;  %7055 = vmatprep.mubr.msk.f32.mxu0 %vm3534_vm4, %v3530_v30 }
 0x3f6   : > { %7648 = vmatprep.subr.bf16.mxu0 %v9473_v12 }
 0x3f9   : > { %7650 = vmatpush3.bf16.msra.mxu0 %v9473_v12 }
 0x3fa   : > { %7053 = vmatprep.subr.msk.mxu0 %vm3547_vm3, %v9482_v32 }
 0x3fd   : > { %7054 = vmatpush3.msk.msra.mxu0 %vm3547_vm3, %v9482_v32 }
 0x3fe   : > { %7056 = vmatmul.mubr.msk.f32.vlgmr.msra.gmra.mrb[20].mxu0 %vm3534_vm4, %v3531_v34  ;;  %7115 = vmatprep.subr.bf16.mxu0 %v9329_v27 }
 0x3ff   : > { %7058 = vmatprep.mubr.msk.f32.mxu0 %vm3534_vm4, %v3532_v41  ;;  %7116 = vmatpush3.bf16.msra.mxu0 %v9329_v27 }
 0x400   : > { %7121 = vmatprep.subr.bf16.mxu0 %v9119_v16 }
 0x402   : > { %7059 = vmatmul.mubr.msk.f32.gmra.mrb[22].mxu0 %vm3534_vm4, %v3533_v56 }
 0x403   : > { %7117 = vmatprep.mubr.msk.bf16.mxu0 %vm2563_vm2, %v9105_v39 }
 0x406   : > { %7118 = vmatmul.mubr.msk.bf16.vlgmr.msra.gmra.mrb[24].mxu0 %vm2563_vm2, %v9145_v45 }
 0x407   : > { %7122 = vmatpush3.bf16.msra.mxu0 %v9119_v16  ;;  %7123 = vmatprep.mubr.msk.bf16.mxu0 %vm2563_vm2, %v9157_v5  ;;  %v9529_v16 = vpop.permute.xlu0 %4581 }
 0x408   : > { %7127 = vmatprep.subr.bf16.mxu0 %v9333_v49 }
 0x412   : > { %7124 = vmatmul.mubr.msk.bf16.vlgmr.msra.gmra.mrb[24].mxu0 %vm2563_vm2, %v9177_v37 }
 0x413   : > { %7128 = vmatpush3.bf16.msra.mxu0 %v9333_v49  ;;  %7129 = vmatprep.mubr.msk.bf16.mxu0 %vm2563_vm2, %v9187_v14  ;;  %v9537_v49 = vpop.permute.xlu1 %4637 }
 0x414   : > { %7133 = vmatprep.subr.bf16.mxu0 %v9209_v44 }
 0x41e   : > { %7130 = vmatmul.mubr.msk.bf16.vlgmr.msra.gmra.mrb[24].mxu0 %vm2563_vm2, %v9207_v21 }
 0x41f   : > { %7134 = vmatpush3.bf16.msra.mxu0 %v9209_v44  ;;  %7135 = vmatprep.mubr.msk.bf16.mxu0 %vm2563_vm2, %v9152_v7 }
 0x420   : > { %7139 = vmatprep.subr.bf16.mxu0 %v9401_v2 }
 0x42a   : > { %7136 = vmatmul.mubr.msk.bf16.vlgmr.msra.gmra.mrb[24].mxu0 %vm2563_vm2, %v9172_v6 }
 0x42b   : > { %7140 = vmatpush3.bf16.msra.mxu0 %v9401_v2  ;;  %7141 = vmatprep.mubr.msk.bf16.mxu0 %vm2563_vm2, %v9100_v48 }
 0x42c   : > { %7145 = vmatprep.subr.bf16.mxu0 %v9413_v13 }
 0x436   : > { %7142 = vmatmul.mubr.msk.bf16.vlgmr.msra.gmra.mrb[24].mxu0 %vm2563_vm2, %v9140_v61 }
 0x437   : > { %7146 = vmatpush3.bf16.msra.mxu0 %v9413_v13  ;;  %7147 = vmatprep.mubr.msk.bf16.mxu0 %vm2563_vm2, %v9182_v40 }
 0x438   : > { %7151 = vmatprep.subr.bf16.mxu0 %v9291_v25 }
 0x442   : > { %7148 = vmatmul.mubr.msk.bf16.vlgmr.msra.gmra.mrb[24].mxu0 %vm2563_vm2, %v9202_v18 }
 0x443   : > { %7152 = vmatpush3.bf16.msra.mxu0 %v9291_v25  ;;  %7153 = vmatprep.mubr.msk.bf16.mxu0 %vm2563_vm2, %v9214_v8 }
 0x444   : > { %7157 = vmatprep.subr.bf16.mxu0 %v9529_v16 }
 0x44e   : > { %7154 = vmatmul.mubr.msk.bf16.vlgmr.msra.gmra.mrb[24].mxu0 %vm2563_vm2, %v9233_v11  ;;  %v7113_v27 = vpop.f32.mrb[16].mxu1 }
 0x44f   : > { %7158 = vmatpush3.bf16.msra.mxu0 %v9529_v16  ;;  %v4190_v36 = vpop.f32.mrb[17].mxu1  ;;  %7159 = vmatprep.mubr.msk.bf16.mxu0 %vm2563_vm2, %v9238_v47  ;;  %v4211_v41 = vadd.f32 %v7113_v27, %v9397_v42 }
 0x450   : > { %7163 = vmatprep.subr.bf16.mxu0 %v9537_v49  ;;  %v7114_v50 = vpop.f32.mrb[18].mxu1  ;;  %v4209_v60 = vadd.f32 %v4190_v36, %v9395_v20 }
 0x451   : > { %v4193_v31 = vpop.f32.mrb[19].mxu1  ;;  %v4212_v10 = vadd.f32 %v7114_v50, %v9409_v53  ;;  %v4215_v1 = vmax.f32 %v4211_v41, 0.0 }
 0x452   : > { %v4210_v43 = vadd.f32 %v4193_v31, %v9407_v15 }
 0x45a   : > { %7160 = vmatmul.mubr.msk.bf16.vlgmr.msra.gmra.mrb[24].mxu0 %vm2563_vm2, %v9259_v17 }
 0x45b   : > { %7164 = vmatpush3.bf16.msra.mxu0 %v9537_v49  ;;  %7165 = vmatprep.mubr.msk.bf16.mxu0 %vm2563_vm2, %v9266_v46 }
 0x45c   : > { %7664 = vmatprep.subr.bf16.mxu0 %v9427_v57 }
 0x466   : > { %7166 = vmatmul.mubr.msk.bf16.vlgmr.msra.gmra.mrb[24].mxu0 %vm2563_vm2, %v9282_v59 }
 0x467   : > { %7666 = vmatpush3.bf16.msra.mxu0 %v9427_v57 }
 0x468   : > { %7668 = vmatprep.subr.bf16.mxu0 %v9461_v22 }
 0x46b   : > { %7670 = vmatpush3.bf16.msra.mxu0 %v9461_v22 }
 0x46c   : > { %7672 = vmatprep.subr.bf16.mxu0 %v9473_v12 }
 0x46f   : > { %7674 = vmatpush3.bf16.msra.mxu0 %v9473_v12 }
 0x470   : > { %7201 = vmatprep.subr.msk.mxu0 %vm3547_vm3, %v9482_v32 }
 0x473   : > { %7202 = vmatpush3.msk.msra.mxu0 %vm3547_vm3, %v9482_v32 }
 0x474   : > { %7263 = vmatprep.subr.bf16.mxu0 %v9529_v16 }
 0x4c3   : > { %v7037_v63 = vpop.f32.mrb[16].mxu0 }
 0x4c4   : > { %v3617_v55 = vpop.f32.mrb[17].mxu0 }
 0x4c7   : > { %v7040_v26 = vpop.f32.mrb[18].mxu0 }
 0x4c8   : > { %v3627_v23 = vpop.f32.mrb[19].mxu0 }
 0x4d1   : > { %v7057_v19 = vpop.f32.mrb[20].mxu0 }
 0x4d2   : > { %v3725_v29 = vmax.f32 %v7037_v63, %v7057_v19  ;;  %v3705_v62 = vpop.f32.mrb[21].mxu0 }
 0x4d3   : > { %v3724_v35 = vmax.f32 %v3617_v55, %v3705_v62 }
 0x4d4   : > { %3730 = vst.msk [vmem:[%s9565_s28 + $0x8] sm:$0xff] %vm3728_vm5, %v3725_v29  ;;  %v4214_v29 = vmax.f32 %v4210_v43, 0.0 }
 0x4d5   : > { %3729 = vst.msk [vmem:[%s9565_s28] sm:$0xff] %vm3728_vm5, %v3724_v35  ;;  %v7060_v28 = vpop.f32.mrb[22].mxu0 }
 0x4d6   : > { %v3727_v0 = vmax.f32 %v7040_v26, %v7060_v28  ;;  %v3715_v9 = vpop.f32.mrb[23].mxu0  ;;  %v4213_v26 = vmax.f32 %v4209_v60, 0.0 }
 0x4d7   : > { %v3726_v52 = vmax.f32 %v3627_v23, %v3715_v9  ;;  %v4216_v23 = vmax.f32 %v4212_v10, 0.0 }
 0x4d8   : > { %3732 = vst.msk [vmem:[%s9565_s28 + $0x18] sm:$0xff] %vm3728_vm5, %v3727_v0 }
 0x4d9   : > { %3731 = vst.msk [vmem:[%s9565_s28 + $0x10] sm:$0xff] %vm3728_vm5, %v3726_v52 }
 0x539   : > { %v7167_v54 = vpop.f32.mrb[24].mxu0 }
 0x53a   : > { %v4695_v4 = vadd.f32 %v7167_v54, %v9397_v42  ;;  %v4674_v30 = vpop.f32.mrb[25].mxu0 }
 0x53b   : > { %v4693_v56 = vadd.f32 %v4674_v30, %v9395_v20  ;;  %v7168_v34 = vpop.f32.mrb[26].mxu0 }
 0x53c   : > { %v4699_v24 = vmax.f32 %v4695_v4, 0.0  ;;  %v4696_v63 = vadd.f32 %v7168_v34, %v9409_v53  ;;  %v4677_v55 = vpop.f32.mrb[27].mxu0 }
 0x53d   : > { %v4697_v27 = vmax.f32 %v4693_v56, 0.0  ;;  %v4694_v36 = vadd.f32 %v4677_v55, %v9407_v15 }
 0x53e   : > { %v4703_v19 = vmax.f32 %v4215_v1, %v4699_v24  ;;  %v4700_v50 = vmax.f32 %v4696_v63, 0.0 }
 0x53f   : > { %v4701_v62 = vmax.f32 %v4213_v26, %v4697_v27  ;;  %v4698_v35 = vmax.f32 %v4694_v36, 0.0 }
 0x540   : > { %v4704_v28 = vmax.f32 %v4216_v23, %v4700_v50 }
 0x541   : > { %v4702_v31 = vmax.f32 %v4214_v29, %v4698_v35  ;;  %7183 = vmatprep.mubr.msk.f32.mxu1 %vm3534_vm4, %v4701_v62  ;;  %7203 = vmatprep.mubr.msk.f32.mxu0 %vm3534_vm4, %v4701_v62 }
 0x543   : > { %7184 = vmatmul.mubr.msk.f32.vlgmr.msra.gmra.mrb[20].mxu1 %vm3534_vm4, %v4702_v31  ;;  %7204 = vmatmul.mubr.msk.f32.vlgmr.msra.gmra.mrb[28].mxu0 %vm3534_vm4, %v4702_v31 }
 0x544   : > { %7210 = vmatpush3.bf16.msra.mxu1 %v9401_v2  ;;  %7264 = vmatpush3.bf16.msra.mxu0 %v9529_v16 }
 0x545   : > { %7186 = vmatprep.mubr.msk.f32.mxu1 %vm3534_vm4, %v4703_v19  ;;  %7206 = vmatprep.mubr.msk.f32.mxu0 %vm3534_vm4, %v4703_v19 }
 0x546   : > { %7215 = vmatprep.subr.bf16.mxu1 %v9209_v44  ;;  %7269 = vmatprep.subr.bf16.mxu0 %v9291_v25 }
 0x547   : > { %7187 = vmatmul.mubr.msk.f32.gmra.mrb[22].mxu1 %vm3534_vm4, %v4704_v28  ;;  %7207 = vmatmul.mubr.msk.f32.gmra.mrb[30].mxu0 %vm3534_vm4, %v4704_v28 }
 0x548   : > { %7211 = vmatprep.mubr.msk.bf16.mxu1 %vm2563_vm2, %v9105_v39  ;;  %7265 = vmatprep.mubr.msk.bf16.mxu0 %vm2563_vm2, %v9105_v39  ;;  %v5261_v39 = vpop.permute.xlu0 %5260 }
 0x54b   : > { %7212 = vmatmul.mubr.msk.bf16.vlgmr.msra.gmra.mrb[24].mxu1 %vm2563_vm2, %v9145_v45  ;;  %7266 = vmatmul.mubr.msk.bf16.vlgmr.msra.gmra.mrb[32].mxu0 %vm2563_vm2, %v9145_v45  ;;  %v5317_v45 = vpop.permute.xlu1 %5316 }
 0x54c   : > { %7216 = vmatpush3.bf16.msra.mxu1 %v9209_v44  ;;  %7270 = vmatpush3.bf16.msra.mxu0 %v9291_v25 }
 0x54d   : > { %7221 = vmatprep.subr.bf16.mxu1 %v9413_v13  ;;  %7275 = vmatprep.subr.bf16.mxu0 %v9537_v49 }
 0x54e   : > { %7217 = vmatprep.mubr.msk.bf16.mxu1 %vm2563_vm2, %v9157_v5  ;;  %7271 = vmatprep.mubr.msk.bf16.mxu0 %vm2563_vm2, %v9157_v5 }
 0x557   : > { %7218 = vmatmul.mubr.msk.bf16.vlgmr.msra.gmra.mrb[24].mxu1 %vm2563_vm2, %v9177_v37  ;;  %7272 = vmatmul.mubr.msk.bf16.vlgmr.msra.gmra.mrb[32].mxu0 %vm2563_vm2, %v9177_v37 }
 0x558   : > { %7222 = vmatpush3.bf16.msra.mxu1 %v9413_v13  ;;  %7276 = vmatpush3.bf16.msra.mxu0 %v9537_v49 }
 0x559   : > { %7227 = vmatprep.subr.bf16.mxu1 %v9291_v25  ;;  %7281 = vmatprep.subr.bf16.mxu0 %v9359_v51 }
 0x55a   : > { %7223 = vmatprep.mubr.msk.bf16.mxu1 %vm2563_vm2, %v9187_v14  ;;  %7277 = vmatprep.mubr.msk.bf16.mxu0 %vm2563_vm2, %v9187_v14 }
 0x563   : > { %7224 = vmatmul.mubr.msk.bf16.vlgmr.msra.gmra.mrb[24].mxu1 %vm2563_vm2, %v9207_v21  ;;  %7278 = vmatmul.mubr.msk.bf16.vlgmr.msra.gmra.mrb[32].mxu0 %vm2563_vm2, %v9207_v21 }
 0x564   : > { %7228 = vmatpush3.bf16.msra.mxu1 %v9291_v25  ;;  %7282 = vmatpush3.bf16.msra.mxu0 %v9359_v51 }
 0x565   : > { %7233 = vmatprep.subr.bf16.mxu1 %v9529_v16  ;;  %7287 = vmatprep.subr.bf16.mxu0 %v5261_v39 }
 0x566   : > { %7229 = vmatprep.mubr.msk.bf16.mxu1 %vm2563_vm2, %v9152_v7  ;;  %7283 = vmatprep.mubr.msk.bf16.mxu0 %vm2563_vm2, %v9152_v7 }
 0x56f   : > { %7230 = vmatmul.mubr.msk.bf16.vlgmr.msra.gmra.mrb[24].mxu1 %vm2563_vm2, %v9172_v6  ;;  %7284 = vmatmul.mubr.msk.bf16.vlgmr.msra.gmra.mrb[32].mxu0 %vm2563_vm2, %v9172_v6 }
 0x570   : > { %7234 = vmatpush3.bf16.msra.mxu1 %v9529_v16  ;;  %7288 = vmatpush3.bf16.msra.mxu0 %v5261_v39 }
 0x571   : > { %7239 = vmatprep.subr.bf16.mxu1 %v9537_v49  ;;  %7293 = vmatprep.subr.bf16.mxu0 %v5317_v45 }
 0x572   : > { %7235 = vmatprep.mubr.msk.bf16.mxu1 %vm2563_vm2, %v9100_v48  ;;  %7289 = vmatprep.mubr.msk.bf16.mxu0 %vm2563_vm2, %v9100_v48 }
 0x57b   : > { %7236 = vmatmul.mubr.msk.bf16.vlgmr.msra.gmra.mrb[24].mxu1 %vm2563_vm2, %v9140_v61  ;;  %7290 = vmatmul.mubr.msk.bf16.vlgmr.msra.gmra.mrb[32].mxu0 %vm2563_vm2, %v9140_v61 }
 0x57c   : > { %7240 = vmatpush3.bf16.msra.mxu1 %v9537_v49  ;;  %7294 = vmatpush3.bf16.msra.mxu0 %v5317_v45 }
 0x57d   : > { %7245 = vmatprep.subr.bf16.mxu1 %v9359_v51  ;;  %7241 = vmatprep.mubr.msk.bf16.mxu1 %vm2563_vm2, %v9182_v40 }
 0x57e   : > { %7295 = vmatprep.mubr.msk.bf16.mxu0 %vm2563_vm2, %v9182_v40  ;;  %7676 = vmatprep.subr.bf16.mxu0 %v9305_v3 }
 0x587   : > { %7242 = vmatmul.mubr.msk.bf16.vlgmr.msra.gmra.mrb[24].mxu1 %vm2563_vm2, %v9202_v18  ;;  %7296 = vmatmul.mubr.msk.bf16.vlgmr.msra.gmra.mrb[32].mxu0 %vm2563_vm2, %v9202_v18 }
 0x588   : > { %7246 = vmatpush3.bf16.msra.mxu1 %v9359_v51  ;;  %7247 = vmatprep.mubr.msk.bf16.mxu1 %vm2563_vm2, %v9214_v8 }
 0x589   : > { %7251 = vmatprep.subr.bf16.mxu1 %v5261_v39  ;;  %7678 = vmatpush3.bf16.msra.mxu0 %v9305_v3 }
 0x58a   : > { %7680 = vmatprep.subr.bf16.mxu0 %v9317_v33 }
 0x58d   : > { %7682 = vmatpush3.bf16.msra.mxu0 %v9317_v33 }
 0x58e   : > { %7684 = vmatprep.subr.bf16.mxu0 %v9327_v38 }
 0x591   : > { %7686 = vmatpush3.bf16.msra.mxu0 %v9327_v38 }
 0x592   : > { %7311 = vmatprep.subr.msk.mxu0 %vm3547_vm3, %v9339_v58 }
 0x593   : > { %7248 = vmatmul.mubr.msk.bf16.vlgmr.msra.gmra.mrb[24].mxu1 %vm2563_vm2, %v9233_v11 }
 0x594   : > { %7252 = vmatpush3.bf16.msra.mxu1 %v5261_v39  ;;  %7253 = vmatprep.mubr.msk.bf16.mxu1 %vm2563_vm2, %v9238_v47 }
 0x595   : > { %7257 = vmatprep.subr.bf16.mxu1 %v5317_v45  ;;  %7312 = vmatpush3.msk.msra.mxu0 %vm3547_vm3, %v9339_v58 }
 0x596   : > { %7688 = vmatprep.subr.bf16.mxu0 %v9427_v57 }
 0x59f   : > { %7254 = vmatmul.mubr.msk.bf16.vlgmr.msra.gmra.mrb[24].mxu1 %vm2563_vm2, %v9259_v17 }
 0x5a0   : > { %7258 = vmatpush3.bf16.msra.mxu1 %v5317_v45  ;;  %7259 = vmatprep.mubr.msk.bf16.mxu1 %vm2563_vm2, %v9266_v46 }
 0x5ab   : > { %7260 = vmatmul.mubr.msk.bf16.vlgmr.msra.gmra.mrb[24].mxu1 %vm2563_vm2, %v9282_v59 }
 0x616   : > { %v7185_v48 = vpop.f32.mrb[20].mxu1  ;;  %v7205_v61 = vpop.f32.mrb[28].mxu0 }
 0x617   : > { %v4888_v7 = vmax.f32 %v7185_v48, %v7205_v61  ;;  %v4783_v5 = vpop.f32.mrb[21].mxu1  ;;  %v4868_v6 = vpop.f32.mrb[29].mxu0 }
 0x618   : > { %v4887_v37 = vmax.f32 %v4783_v5, %v4868_v6 }
 0x619   : > { %6143 = vst.msk [vmem:[%s9565_s28 + $0x28] sm:$0xff] %vm3728_vm5, %v4888_v7 }
 0x61a   : > { %6142 = vst.msk [vmem:[%s9565_s28 + $0x20] sm:$0xff] %vm3728_vm5, %v4887_v37  ;;  %v7188_v40 = vpop.f32.mrb[22].mxu1  ;;  %v7208_v14 = vpop.f32.mrb[30].mxu0 }
 0x61b   : > { %v4890_v18 = vmax.f32 %v7188_v40, %v7208_v14  ;;  %v4793_v21 = vpop.f32.mrb[23].mxu1  ;;  %v4878_v44 = vpop.f32.mrb[31].mxu0 }
 0x61c   : > { %v4889_v8 = vmax.f32 %v4793_v21, %v4878_v44 }
 0x61d   : > { %6145 = vst.msk [vmem:[%s9565_s28 + $0x38] sm:$0xff] %vm3728_vm5, %v4890_v18 }
 0x61e   : > { %6144 = vst.msk [vmem:[%s9565_s28 + $0x30] sm:$0xff] %vm3728_vm5, %v4889_v8 }
 0x65a   : > { %v7297_v11 = vpop.f32.mrb[32].mxu0 }
 0x65b   : > { %v5671_v47 = vpop.f32.mrb[33].mxu0  ;;  %v5692_v59 = vadd.f32 %v7297_v11, %v9397_v42 }
 0x65c   : > { %v7298_v17 = vpop.f32.mrb[34].mxu0  ;;  %v5690_v25 = vadd.f32 %v5671_v47, %v9395_v20 }
 0x65d   : > { %v5674_v46 = vpop.f32.mrb[35].mxu0  ;;  %v5693_v33 = vadd.f32 %v7298_v17, %v9409_v53  ;;  %v5696_v16 = vmax.f32 %v5692_v59, 0.0 }
 0x65e   : > { %v5691_v51 = vadd.f32 %v5674_v46, %v9407_v15  ;;  %v5694_v52 = vmax.f32 %v5690_v25, 0.0 }
 0x65f   : > { %v5697_v54 = vmax.f32 %v5693_v33, 0.0 }
 0x660   : > { %v5695_v30 = vmax.f32 %v5691_v51, 0.0 }
 0x67e   : > { %v7261_v3 = vpop.f32.mrb[24].mxu1 }
 0x67f   : > { %v5374_v38 = vadd.f32 %v7261_v3, %v9397_v42  ;;  %v5353_v58 = vpop.f32.mrb[25].mxu1 }
 0x680   : > { %v5372_v2 = vadd.f32 %v5353_v58, %v9395_v20  ;;  %v7262_v13 = vpop.f32.mrb[26].mxu1 }
 0x681   : > { %v5378_v49 = vmax.f32 %v5374_v38, 0.0  ;;  %v5375_v0 = vadd.f32 %v7262_v13, %v9409_v53  ;;  %v5356_v9 = vpop.f32.mrb[27].mxu1 }
 0x682   : > { %v5376_v41 = vmax.f32 %v5372_v2, 0.0  ;;  %v5373_v60 = vadd.f32 %v5356_v9, %v9407_v15 }
 0x683   : > { %v5700_v10 = vmax.f32 %v5378_v49, %v5696_v16  ;;  %v5379_v4 = vmax.f32 %v5375_v0, 0.0 }
 0x684   : > { %v5698_v42 = vmax.f32 %v5376_v41, %v5694_v52  ;;  %v5377_v43 = vmax.f32 %v5373_v60, 0.0 }
 0x685   : > { %v5701_v56 = vmax.f32 %v5379_v4, %v5697_v54 }
 0x686   : > { %v5699_v34 = vmax.f32 %v5377_v43, %v5695_v30  ;;  %7313 = vmatprep.mubr.msk.f32.mxu0 %vm3534_vm4, %v5698_v42 }
 0x688   : > { %7314 = vmatmul.mubr.msk.f32.vlgmr.msra.gmra.mrb[36].mxu0 %vm3534_vm4, %v5699_v34 }
 0x689   : > { %7690 = vmatpush3.bf16.msra.mxu0 %v9427_v57  ;;  %7316 = vmatprep.mubr.msk.f32.mxu0 %vm3534_vm4, %v5700_v10 }
 0x68a   : > { %7692 = vmatprep.subr.bf16.mxu0 %v9461_v22 }
 0x68c   : > { %7317 = vmatmul.mubr.msk.f32.gmra.mrb[38].mxu0 %vm3534_vm4, %v5701_v56 }
 0x68d   : > { %7694 = vmatpush3.bf16.msra.mxu0 %v9461_v22  ;;  %7333 = vmatprep.mubr.msk.f32.mxu0 %vm3534_vm4, %v5698_v42 }
 0x68e   : > { %7696 = vmatprep.subr.bf16.mxu0 %v9473_v12 }
 0x691   : > { %7698 = vmatpush3.bf16.msra.mxu0 %v9473_v12 }
 0x692   : > { %7331 = vmatprep.subr.msk.mxu0 %vm3547_vm3, %v9482_v32 }
 0x695   : > { %7332 = vmatpush3.msk.msra.mxu0 %vm3547_vm3, %v9482_v32 }
 0x696   : > { %7334 = vmatmul.mubr.msk.f32.vlgmr.msra.gmra.mrb[40].mxu0 %vm3534_vm4, %v5699_v34 }
 0x697   : > { %7336 = vmatprep.mubr.msk.f32.mxu0 %vm3534_vm4, %v5700_v10 }
 0x69a   : > { %7337 = vmatmul.mubr.msk.f32.gmra.mrb[42].mxu0 %vm3534_vm4, %v5701_v56 }
 0x75b   : > { %v7315_v20 = vpop.f32.mrb[36].mxu0 }
 0x75c   : > { %v5780_v15 = vpop.f32.mrb[37].mxu0 }
 0x75f   : > { %v7318_v53 = vpop.f32.mrb[38].mxu0 }
 0x760   : > { %v5790_v57 = vpop.f32.mrb[39].mxu0 }
 0x769   : > { %v7335_v22 = vpop.f32.mrb[40].mxu0 }
 0x76a   : > { %v5885_v12 = vmax.f32 %v7315_v20, %v7335_v22  ;;  %v5865_v1 = vpop.f32.mrb[41].mxu0 }
 0x76b   : > { %v5884_v24 = vmax.f32 %v5780_v15, %v5865_v1 }
 0x76c   : > { %6187 = vst.msk [vmem:[%s9565_s28 + $0x48] sm:$0xff] %vm3728_vm5, %v5885_v12 }
 0x76d   : > { %6186 = vst.msk [vmem:[%s9565_s28 + $0x40] sm:$0xff] %vm3728_vm5, %v5884_v24  ;;  %v7338_v32 = vpop.f32.mrb[42].mxu0 }
 0x76e   : > { %v5887_v63 = vmax.f32 %v7318_v53, %v7338_v32  ;;  %v5875_v55 = vpop.f32.mrb[43].mxu0 }
 0x76f   : > { %v5886_v26 = vmax.f32 %v5790_v57, %v5875_v55 }
 0x770   : > { %6189 = vst.msk [vmem:[%s9565_s28 + $0x58] sm:$0xff] %vm3728_vm5, %v5887_v63 }
 0x771   : > { %6188 = vst.msk [vmem:[%s9565_s28 + $0x50] sm:$0xff] %vm3728_vm5, %v5886_v26 }
 0x772 PF: > { %s20_s30 = sadd.s32 1, %s7972_s30  }
 0x773   : > { %p17_p3 = scmp.ge.s32.totalorder %s20_s30, 4  }
 0x775   :  { %19 = sbr.rel (!%p17_p3) target bundleno = 1 (0x1), region = 101 }
 0x77c   :  { %5914 = vsyncpa [#allocation3], 1 }
 0x77d   :  { %5916 = vsyncpa [#allocation3 + $0x1], 1 }

</bundles_post_ra>
